<compile_context>
chip_gen: v7x
topology: tpu7x:2x2x1
jax: 0.10.0
libtpu: 0.0.40
codegen_flags: <defaults>
</compile_context>

<pallas_src>
import functools
import numpy as np

import jax
import jax.numpy as jnp
from jax.experimental import pallas as pl
from jax.experimental.pallas import tpu as pltpu


_PAR = pltpu.CompilerParams(dimension_semantics=("parallel",))


# ----------------------------------------------------------------------------
# In-kernel helpers
# ----------------------------------------------------------------------------

def _sigmoid(y):
    # divide moved off the VPU onto the EUP reciprocal slot
    return pl.reciprocal(1.0 + jnp.exp(-y), approx=True)


def _erf(x):
    # Abramowitz & Stegun 7.1.26 (max abs err ~1.5e-7): exact-GELU semantics
    # without relying on an erf lowering inside Mosaic.
    a1, a2, a3, a4, a5 = 0.254829592, -0.284496736, 1.421413741, -1.453152027, 1.061405429
    pc = 0.3275911
    ax = jnp.abs(x)
    t = 1.0 / (1.0 + pc * ax)
    poly = ((((a5 * t + a4) * t + a3) * t + a2) * t + a1) * t
    y = 1.0 - poly * jnp.exp(-ax * ax)
    return jnp.where(x >= 0.0, y, -y)


def _gelu_exact(x):
    return 0.5 * x * (1.0 + _erf(x * 0.7071067811865476))


def _group_onehot(rows, cols, span, fine_axis):
    """0/1 f32 matrix M with M[r, c] = 1 iff fine_index // span == coarse_index,
    where `fine_axis` selects which of (row, col) is the fine index."""
    r = jax.lax.broadcasted_iota(jnp.int32, (rows, cols), 0)
    c = jax.lax.broadcasted_iota(jnp.int32, (rows, cols), 1)
    fine, coarse = (r, c) if fine_axis == 0 else (c, r)
    return ((fine >= coarse * span) & (fine < (coarse + 1) * span)).astype(jnp.float32)


# ----------------------------------------------------------------------------
# Kernel 1: conv3x3 (as one big-K matmul over im2col rows) + GroupNorm (+SiLU)
# ----------------------------------------------------------------------------

def _conv_gn_kernel(p_ref, w_ref, b_ref, g_ref, bb_ref, o_ref, *,
                    groups, spatial, samples, silu, eps):
    rows, cout = o_ref.shape
    cg = cout // groups

    # conv: bf16 x bf16 -> f32 on the MXU (K = Cin*9)
    y = jnp.dot(p_ref[...], w_ref[...], preferred_element_type=jnp.float32) + b_ref[...]

    # GroupNorm statistics via selector matmuls (kernel stays purely 2-D).
    sel_cg = _group_onehot(cout, groups, cg, fine_axis=0)          # (Cout, G)
    sel_gc = _group_onehot(groups, cout, cg, fine_axis=1)          # (G, Cout)
    agg_pr = _group_onehot(samples, rows, spatial, fine_axis=1)    # (S, rows)
    agg_rp = _group_onehot(rows, samples, spatial, fine_axis=0)    # (rows, S)

    s1 = jnp.dot(agg_pr, jnp.dot(y, sel_cg, preferred_element_type=jnp.float32),
                 preferred_element_type=jnp.float32)               # (S, G) group sums
    s2 = jnp.dot(agg_pr, jnp.dot(y * y, sel_cg, preferred_element_type=jnp.float32),
                 preferred_element_type=jnp.float32)
    inv_cnt = 1.0 / float(spatial * cg)
    mu = s1 * inv_cnt
    var = s2 * inv_cnt - mu * mu
    inv = jax.lax.rsqrt(var + eps)
    mu_r = jnp.dot(agg_rp, jnp.dot(mu, sel_gc, preferred_element_type=jnp.float32),
                   preferred_element_type=jnp.float32)             # (rows, Cout)
    inv_r = jnp.dot(agg_rp, jnp.dot(inv, sel_gc, preferred_element_type=jnp.float32),
                    preferred_element_type=jnp.float32)

    yn = (y - mu_r) * inv_r * g_ref[...] + bb_ref[...]
    if silu:
        yn = yn * _sigmoid(yn)
    o_ref[...] = yn


def conv_gn(patches, w9, bias, gamma, beta, *, groups, spatial, silu, eps=1e-5):
    """patches: (samples*spatial, Cin*9) bf16 im2col rows.  Fused conv + GroupNorm(+SiLU)."""
    M, K = patches.shape
    cout = w9.shape[1]
    samples = M // spatial
    # whole problem in 2 grid steps so both v7x TensorCores get work
    spb = samples // 2 if (samples % 2 == 0 and ((samples // 2) * spatial) % 8 == 0) else samples
    tm = spb * spatial
    kern = functools.partial(_conv_gn_kernel, groups=groups, spatial=spatial,
                             samples=spb, silu=silu, eps=eps)
    return pl.pallas_call(
        kern,
        out_shape=jax.ShapeDtypeStruct((M, cout), jnp.float32),
        grid=(M // tm,),
        in_specs=[
            pl.BlockSpec((tm, K), lambda i: (i, 0)),
            pl.BlockSpec((K, cout), lambda i: (0, 0)),
            pl.BlockSpec((1, cout), lambda i: (0, 0)),
            pl.BlockSpec((1, cout), lambda i: (0, 0)),
            pl.BlockSpec((1, cout), lambda i: (0, 0)),
        ],
        out_specs=pl.BlockSpec((tm, cout), lambda i: (i, 0)),
        compiler_params=_PAR,
    )(patches, w9,
      bias.reshape(1, -1).astype(jnp.float32),
      gamma.reshape(1, -1).astype(jnp.float32),
      beta.reshape(1, -1).astype(jnp.float32))


# ----------------------------------------------------------------------------
# Kernel 2: LayerNorm + matmul(+bias)   (used for LN1 + QKV projection)
# ----------------------------------------------------------------------------

def _ln_matmul_kernel(x_ref, g_ref, b_ref, w_ref, wb_ref, o_ref, *, eps):
    x = x_ref[...]
    mu = jnp.mean(x, axis=-1, keepdims=True)
    var = jnp.mean(jnp.square(x - mu), axis=-1, keepdims=True)
    xn = (x - mu) * jax.lax.rsqrt(var + eps) * g_ref[...] + b_ref[...]
    o_ref[...] = jnp.dot(xn.astype(jnp.bfloat16), w_ref[...],
                         preferred_element_type=jnp.float32) + wb_ref[...]


def ln_matmul(x, gamma, beta, w_t, b, eps=1e-5):
    M, K = x.shape
    N = w_t.shape[1]
    tm = M // 2 if (M % 2 == 0 and (M // 2) % 8 == 0) else M
    return pl.pallas_call(
        functools.partial(_ln_matmul_kernel, eps=eps),
        out_shape=jax.ShapeDtypeStruct((M, N), jnp.float32),
        grid=(M // tm,),
        in_specs=[
            pl.BlockSpec((tm, K), lambda i: (i, 0)),
            pl.BlockSpec((1, K), lambda i: (0, 0)),
            pl.BlockSpec((1, K), lambda i: (0, 0)),
            pl.BlockSpec((K, N), lambda i: (0, 0)),
            pl.BlockSpec((1, N), lambda i: (0, 0)),
        ],
        out_specs=pl.BlockSpec((tm, N), lambda i: (i, 0)),
        compiler_params=_PAR,
    )(x, gamma.reshape(1, -1), beta.reshape(1, -1), w_t, b.reshape(1, -1))


# ----------------------------------------------------------------------------
# Kernel 3: overlapping-window attention, grid over heads
# ----------------------------------------------------------------------------

def _oca_attn_kernel(q_ref, k_ref, v_ref, bias_ref, o_ref, *, scale):
    q = (q_ref[...] * scale).astype(jnp.bfloat16)       # (b_, nq, d)
    k = k_ref[...].astype(jnp.bfloat16)                 # (b_, n, d)
    v = v_ref[...].astype(jnp.bfloat16)
    s = jnp.einsum("bqd,bkd->bqk", q, k, preferred_element_type=jnp.float32)
    s = s + bias_ref[...]                               # (1, nq, n) broadcast over windows
    m = jnp.max(s, axis=-1, keepdims=True)
    e = jnp.exp(s - m)
    denom = jnp.sum(e, axis=-1, keepdims=True)
    attn = e * pl.reciprocal(denom, approx=True)
    o_ref[...] = jnp.einsum("bqk,bkd->bqd", attn.astype(jnp.bfloat16), v,
                            preferred_element_type=jnp.float32)


def oca_attention(qh, kh, vh, bias, scale):
    """qh: (nH*b_, nq, d) head-major.  bias: (nH, nq, n) selected per head by index_map."""
    nH = bias.shape[0]
    bw = qh.shape[0] // nH
    nq, d = qh.shape[1], qh.shape[2]
    n = kh.shape[1]
    return pl.pallas_call(
        functools.partial(_oca_attn_kernel, scale=scale),
        out_shape=jax.ShapeDtypeStruct(qh.shape, jnp.float32),
        grid=(nH,),
        in_specs=[
            pl.BlockSpec((bw, nq, d), lambda i: (i, 0, 0)),
            pl.BlockSpec((bw, n, d), lambda i: (i, 0, 0)),
            pl.BlockSpec((bw, n, d), lambda i: (i, 0, 0)),
            pl.BlockSpec((1, nq, n), lambda i: (i, 0, 0)),
        ],
        out_specs=pl.BlockSpec((bw, nq, d), lambda i: (i, 0, 0)),
        compiler_params=_PAR,
    )(qh, kh, vh, bias)


# ----------------------------------------------------------------------------
# Kernel 4: proj + residual + LayerNorm2 + MLP(GELU) + residual
# ----------------------------------------------------------------------------

def _proj_mlp_kernel(a_ref, s_ref, pw_ref, pb_ref, nw_ref, nb_ref,
                     f1w_ref, f1b_ref, f2w_ref, f2b_ref, o_ref, *, eps):
    x1 = jnp.dot(a_ref[...].astype(jnp.bfloat16), pw_ref[...],
                 preferred_element_type=jnp.float32) + pb_ref[...] + s_ref[...]
    mu = jnp.mean(x1, axis=-1, keepdims=True)
    var = jnp.mean(jnp.square(x1 - mu), axis=-1, keepdims=True)
    xn = (x1 - mu) * jax.lax.rsqrt(var + eps) * nw_ref[...] + nb_ref[...]
    h = jnp.dot(xn.astype(jnp.bfloat16), f1w_ref[...],
                preferred_element_type=jnp.float32) + f1b_ref[...]
    h = _gelu_exact(h)
    y = jnp.dot(h.astype(jnp.bfloat16), f2w_ref[...],
                preferred_element_type=jnp.float32) + f2b_ref[...]
    o_ref[...] = x1 + y


def proj_mlp(attn_rows, shortcut_rows, p, eps=1e-5):
    M, C = attn_rows.shape
    hid = p["fc1_w_t"].shape[1]
    tm = M // 2 if (M % 2 == 0 and (M // 2) % 8 == 0) else M
    row = lambda i: (i, 0)
    rep = lambda i: (0, 0)
    return pl.pallas_call(
        functools.partial(_proj_mlp_kernel, eps=eps),
        out_shape=jax.ShapeDtypeStruct((M, C), jnp.float32),
        grid=(M // tm,),
        in_specs=[
            pl.BlockSpec((tm, C), row),
            pl.BlockSpec((tm, C), row),
            pl.BlockSpec((C, C), rep),
            pl.BlockSpec((1, C), rep),
            pl.BlockSpec((1, C), rep),
            pl.BlockSpec((1, C), rep),
            pl.BlockSpec((C, hid), rep),
            pl.BlockSpec((1, hid), rep),
            pl.BlockSpec((hid, C), rep),
            pl.BlockSpec((1, C), rep),
        ],
        out_specs=pl.BlockSpec((tm, C), row),
        compiler_params=_PAR,
    )(attn_rows, shortcut_rows, p["proj_w_t"], p["proj_b"].reshape(1, -1),
      p["norm2_w"].reshape(1, -1), p["norm2_b"].reshape(1, -1),
      p["fc1_w_t"], p["fc1_b"].reshape(1, -1),
      p["fc2_w_t"], p["fc2_b"].reshape(1, -1))


# ----------------------------------------------------------------------------
# Kernel 5: 1x1 conv (on the shortcut) + residual add + ReLU
# ----------------------------------------------------------------------------

def _conv1x1_add_relu_kernel(x_ref, w_ref, b_ref, r_ref, o_ref):
    o3 = jnp.dot(w_ref[...], x_ref[0].astype(jnp.bfloat16),
                 preferred_element_type=jnp.float32) + b_ref[...]
    o_ref[0] = jnp.maximum(o3 + r_ref[0], 0.0)


def conv1x1_add_relu(x_nchw, w2d, b, other):
    """x_nchw: (B, Cin, HW) f32; other: (B, Cout, HW) f32 (already in the flat layout
    that the reference's reshape produces).  out = relu(other + conv1x1(x))."""
    B, Cin, HW = x_nchw.shape
    Cout = w2d.shape[0]
    return pl.pallas_call(
        _conv1x1_add_relu_kernel,
        out_shape=jax.ShapeDtypeStruct((B, Cout, HW), jnp.float32),
        grid=(B,),
        in_specs=[
            pl.BlockSpec((1, Cin, HW), lambda i: (i, 0, 0)),
            pl.BlockSpec((Cout, Cin), lambda i: (0, 0)),
            pl.BlockSpec((Cout, 1), lambda i: (0, 0)),
            pl.BlockSpec((1, Cout, HW), lambda i: (i, 0, 0)),
        ],
        out_specs=pl.BlockSpec((1, Cout, HW), lambda i: (i, 0, 0)),
        compiler_params=_PAR,
    )(x_nchw, w2d, b.reshape(-1, 1).astype(jnp.float32), other)


# ----------------------------------------------------------------------------
# XLA layout glue (reshapes / padding only, no FLOPs)
# ----------------------------------------------------------------------------

def im2col_3x3(x_nchw):
    """3x3 / stride-1 / pad-1 im2col; rows=(n, oh, ow), features=(cin, tap). bf16."""
    N, Cin, Hs, Ws = x_nchw.shape
    xp = jnp.pad(x_nchw, ((0, 0), (0, 0), (1, 1), (1, 1)))
    cols = [xp[:, :, kh:kh + Hs, kw:kw + Ws] for kh in range(3) for kw in range(3)]
    pat = jnp.stack(cols, axis=2)                                  # (N, Cin, 9, Hs, Ws)
    pat = pat.transpose(0, 3, 4, 1, 2).reshape(N * Hs * Ws, Cin * 9)
    return pat.astype(jnp.bfloat16)


def calculate_rpi_oca(window_size, overlap_ratio=0.5):
    """Relative position index for OCA (HAT formula; negative indices wrapped like torch)."""
    ws = window_size
    wse = ws + int(overlap_ratio * ws)
    coords_ori = np.stack(np.meshgrid(np.arange(ws), np.arange(ws), indexing="ij"))
    coords_ori = coords_ori.reshape(2, -1)
    coords_ext = np.stack(np.meshgrid(np.arange(wse), np.arange(wse), indexing="ij"))
    coords_ext = coords_ext.reshape(2, -1)
    rel = coords_ext[:, None, :] - coords_ori[:, :, None]
    rel = rel.transpose(1, 2, 0).astype(np.int64)
    rel = rel + (ws - wse + 1)
    rel[:, :, 0] *= ws + wse - 1
    return rel.sum(-1)                                             # (ws*ws, wse*wse)


# ----------------------------------------------------------------------------
# OCAB + ATOCA forward
# ----------------------------------------------------------------------------

def ocab_forward(x, p, x_size, rpi, ws, num_heads, overlap_ratio=0.5):
    H, W = x_size
    B, L, C = x.shape
    owsz = ws + int(overlap_ratio * ws)
    d = C // num_heads
    scale = float(d) ** -0.5
    nwh, nww = H // ws, W // ws
    b_ = B * nwh * nww
    nq, n = ws * ws, owsz * owsz

    x2d = x.reshape(B * L, C)
    # fused LayerNorm1 + QKV projection
    qkv = ln_matmul(x2d, p["norm1_w"], p["norm1_b"], p["qkv_w_t"], p["qkv_b"])
    qkv = qkv.reshape(B, H, W, 3, C)
    q, k, v = qkv[..., 0, :], qkv[..., 1, :], qkv[..., 2, :]

    # q windows (Swin window_partition)
    q_win = q.reshape(B, nwh, ws, nww, ws, C).transpose(0, 1, 3, 2, 4, 5).reshape(b_, nq, C)

    # overlapping k/v windows (nn.Unfold: kernel owsz, stride ws, zero pad)
    pad = (owsz - ws) // 2

    def unfold_win(img):                                           # (B, H, W, C) -> (b_, n, C)
        ip = jnp.pad(img, ((0, 0), (pad, pad), (pad, pad), (0, 0)))
        wins = [ip[:, oh * ws:oh * ws + owsz, ow * ws:ow * ws + owsz, :]
                for oh in range(nwh) for ow in range(nww)]
        return jnp.stack(wins, axis=1).reshape(b_, n, C)

    k_win, v_win = unfold_win(k), unfold_win(v)

    def to_heads(t, ntok):                                         # -> (nH*b_, ntok, d)
        return (t.reshape(b_, ntok, num_heads, d)
                 .transpose(2, 0, 1, 3)
                 .reshape(num_heads * b_, ntok, d))

    qh, kh, vh = to_heads(q_win, nq), to_heads(k_win, n), to_heads(v_win, n)

    # relative position bias kept as a single (nH, nq, n) tensor (no b_*nH broadcast)
    table = p["rpb_table"]
    trows = table.shape[0]
    idx = rpi.reshape(-1)
    idx = jnp.where(idx < 0, idx + trows, idx)                     # torch negative indexing
    bias = table[idx].reshape(nq, n, num_heads).transpose(2, 0, 1)

    attn = oca_attention(qh, kh, vh, bias, scale)                  # (nH*b_, nq, d)
    attn = (attn.reshape(num_heads, b_, nq, d)
                .transpose(1, 2, 0, 3)
                .reshape(b_, nq, C))

    # merge windows (window_reverse)
    xw = (attn.reshape(B, nwh, nww, ws, ws, C)
              .transpose(0, 1, 3, 2, 4, 5)
              .reshape(B * L, C))

    # fused proj + residual + LayerNorm2 + MLP(GELU) + residual
    out = proj_mlp(xw, x2d, p)
    return out.reshape(B, L, C)


def atoca_forward(x, params, w=4, h=4, num_heads=6):
    B, C, H, W = x.shape
    npb = (H // h) * (W // w)
    N = B * npb
    shortcut = x

    # conv1 (3x3 per 4x4 window) + GroupNorm + SiLU, fused in one kernel
    p1 = im2col_3x3(x.reshape(N, C, h, w))
    out = conv_gn(p1, params["conv1_w9"], params["conv1_b"],
                  params["gn1_w"], params["gn1_b"],
                  groups=num_heads, spatial=h * w, silu=True)      # (N*h*w, Cmid)
    cmid = out.shape[-1]

    tokens = out.reshape(B, H * W, cmid)
    tokens = ocab_forward(tokens, params["ocab"], (H, W), params["rpi"], w, num_heads)

    # conv2 (3x3 per 4x4 window) + GroupNorm (no activation), fused
    p2 = im2col_3x3(tokens.reshape(N, h, w, cmid).transpose(0, 3, 1, 2))
    out2 = conv_gn(p2, params["conv2_w9"], params["conv2_b"],
                   params["gn2_w"], params["gn2_b"],
                   groups=num_heads, spatial=h * w, silu=False)    # (N*h*w, Cout)
    cout = out2.shape[-1]

    # reproduce the reference's flat reshape to (B, Cout, H, W) before the residual add
    out2_nchw = (out2.reshape(B, npb, h * w, cout)
                     .transpose(0, 1, 3, 2)
                     .reshape(B, cout, H * W))

    # fused 1x1 conv on the shortcut + residual add + ReLU
    y = conv1x1_add_relu(shortcut.reshape(B, C, H * W),
                         params["conv3_w"], params["conv3_b"], out2_nchw)
    return y.reshape(B, cout, H, W)


# ----------------------------------------------------------------------------
# Deterministic parameter init (shapes from ATOCA.__init__; r=1, w=h=4, 6 heads)
# ----------------------------------------------------------------------------

def init_params(key, in_channel, ou_channel, num_heads=6, ws=4, mlp_ratio=2):
    mid = in_channel                      # r = 1
    owsz = ws + int(0.5 * ws)
    ks = jax.random.split(key, 24)

    def rnd(k, shape, s=0.05):
        return (s * jax.random.normal(k, shape)).astype(jnp.float32)

    def as_w9(wconv, cout, cin):          # (Cout, Cin, 3, 3) -> (Cin*9, Cout) bf16
        return wconv.reshape(cout, cin * 9).T.astype(jnp.bfloat16)

    conv1_w = rnd(ks[0], (mid, in_channel, 3, 3))
    conv2_w = rnd(ks[4], (ou_channel, mid, 3, 3))
    conv3_w = rnd(ks[8], (ou_channel, in_channel, 1, 1))
    qkv_w = rnd(ks[12], (3 * mid, mid))
    proj_w = rnd(ks[15], (mid, mid))
    fc1_w = rnd(ks[19], (mlp_ratio * mid, mid))
    fc2_w = rnd(ks[21], (mid, mlp_ratio * mid))

    rpi_np = calculate_rpi_oca(ws)
    assert (rpi_np > -((ws + owsz - 1) ** 2)).all()   # negative-index wrap stays in range

    params = {
        "conv1_w9": as_w9(conv1_w, mid, in_channel),
        "conv1_b": rnd(ks[1], (mid,)),
        "gn1_w": 1.0 + rnd(ks[2], (mid,)),
        "gn1_b": rnd(ks[3], (mid,)),
        "conv2_w9": as_w9(conv2_w, ou_channel, mid),
        "conv2_b": rnd(ks[5], (ou_channel,)),
        "gn2_w": 0.5 + rnd(ks[6], (ou_channel,)),   # reference zero-inits; see TODO(synk) above
        "gn2_b": rnd(ks[7], (ou_channel,)),
        "conv3_w": conv3_w.reshape(ou_channel, in_channel).astype(jnp.bfloat16),
        "conv3_b": rnd(ks[9], (ou_channel,)),
        "rpi": jnp.asarray(rpi_np, dtype=jnp.int32),
        "ocab": {
            "norm1_w": 1.0 + rnd(ks[10], (mid,)),
            "norm1_b": rnd(ks[11], (mid,)),
            "qkv_w_t": qkv_w.T.astype(jnp.bfloat16),              # (C, 3C)
            "qkv_b": rnd(ks[13], (3 * mid,)),
            "rpb_table": rnd(ks[14], ((ws + owsz - 1) ** 2, num_heads), 0.02),
            "proj_w_t": proj_w.T.astype(jnp.bfloat16),
            "proj_b": rnd(ks[16], (mid,)),
            "norm2_w": 1.0 + rnd(ks[17], (mid,)),
            "norm2_b": rnd(ks[18], (mid,)),
            "fc1_w_t": fc1_w.T.astype(jnp.bfloat16),
            "fc1_b": rnd(ks[20], (mlp_ratio * mid,)),
            "fc2_w_t": fc2_w.T.astype(jnp.bfloat16),
            "fc2_b": rnd(ks[22], (mid,)),
        },
    }
    return params


if __name__ == "__main__":
    key = jax.random.PRNGKey(0)
    kx, kp = jax.random.split(key)

    # Shapes consistent with the module: 6 heads / 6 GN groups -> C % 6 == 0,
    # spatial divisible by the 4x4 window.
    B, C, H, W = 2, 24, 8, 8
    x = jax.random.normal(kx, (B, C, H, W), dtype=jnp.float32)
    params = init_params(kp, in_channel=C, ou_channel=C)

    fwd = jax.jit(functools.partial(atoca_forward, w=4, h=4, num_heads=6))
    y = fwd(x, params)
    y = jax.block_until_ready(y)

    assert y.shape == (B, C, H, W), y.shape
    assert bool(jnp.all(jnp.isfinite(y)))
    assert bool(jnp.all(y >= 0.0))   # final ReLU
    print("KERNEL_OK")
</pallas_src>

<mosaic_0001>
module attributes {stable_mosaic.version = 11 : i64} {
  func.func @_conv_gn_kernel(%arg0: i32, %arg1: memref<64x216xbf16, #tpu.memory_space<vmem>>, %arg2: memref<216x24xbf16, #tpu.memory_space<vmem>>, %arg3: memref<1x24xf32, #tpu.memory_space<vmem>>, %arg4: memref<1x24xf32, #tpu.memory_space<vmem>>, %arg5: memref<1x24xf32, #tpu.memory_space<vmem>>, %arg6: memref<64x24xf32, #tpu.memory_space<vmem>>) attributes {dimension_semantics = [#tpu.dimension_semantics<parallel>], iteration_bounds = array<i64: 2>, scalar_prefetch = 0 : i64, scratch_operands = 0 : i64, tpu.core_type = #tpu.core_type<tc>, window_params = [{transform_indices = @transform_0, window_bounds = array<i64: 64, 216>}, {pipeline_mode = #tpu.pipeline_mode<synchronous>, transform_indices = @transform_1, window_bounds = array<i64: 216, 24>}, {pipeline_mode = #tpu.pipeline_mode<synchronous>, transform_indices = @transform_2, window_bounds = array<i64: 1, 24>}, {pipeline_mode = #tpu.pipeline_mode<synchronous>, transform_indices = @transform_3, window_bounds = array<i64: 1, 24>}, {pipeline_mode = #tpu.pipeline_mode<synchronous>, transform_indices = @transform_4, window_bounds = array<i64: 1, 24>}, {transform_indices = @transform_5, window_bounds = array<i64: 64, 24>}]} {
    %c0 = arith.constant 0 : index
    %c0_0 = arith.constant 0 : index
    %0 = vector.load %arg1[%c0, %c0_0] : memref<64x216xbf16, #tpu.memory_space<vmem>>, vector<64x216xbf16>
    %c0_1 = arith.constant 0 : index
    %c0_2 = arith.constant 0 : index
    %1 = vector.load %arg2[%c0_1, %c0_2] : memref<216x24xbf16, #tpu.memory_space<vmem>>, vector<216x24xbf16>
    %cst = arith.constant dense<0.000000e+00> : vector<64x24xf32>
    %2 = tpu.matmul %0, %1, %cst {dimension_numbers = #tpu.dot_dimension_numbers<[1], [0], [0], [1], [0, 0, 1, 1], [], []>} : vector<64x216xbf16>, vector<216x24xbf16>, vector<64x24xf32> -> vector<64x24xf32>
    %c0_3 = arith.constant 0 : index
    %c0_4 = arith.constant 0 : index
    %3 = vector.load %arg3[%c0_3, %c0_4] : memref<1x24xf32, #tpu.memory_space<vmem>>, vector<1x24xf32>
    %4 = vector.broadcast %3 : vector<1x24xf32> to vector<64x24xf32>
    %5 = arith.addf %2, %4 : vector<64x24xf32>
    %6 = tpu.iota {dimensions = array<i32: 0>} : vector<24x6xi32>
    %7 = tpu.iota {dimensions = array<i32: 1>} : vector<24x6xi32>
    %c4_i32 = arith.constant 4 : i32
    %8 = vector.broadcast %c4_i32 : i32 to vector<24x6xi32>
    %9 = arith.muli %7, %8 : vector<24x6xi32>
    %10 = arith.cmpi sge, %6, %9 : vector<24x6xi32>
    %c1_i32 = arith.constant 1 : i32
    %11 = vector.broadcast %c1_i32 : i32 to vector<24x6xi32>
    %12 = arith.addi %7, %11 : vector<24x6xi32>
    %c4_i32_5 = arith.constant 4 : i32
    %13 = vector.broadcast %c4_i32_5 : i32 to vector<24x6xi32>
    %14 = arith.muli %12, %13 : vector<24x6xi32>
    %15 = arith.cmpi slt, %6, %14 : vector<24x6xi32>
    %16 = arith.andi %10, %15 : vector<24x6xi1>
    %17 = arith.extui %16 : vector<24x6xi1> to vector<24x6xi32>
    %18 = arith.sitofp %17 : vector<24x6xi32> to vector<24x6xf32>
    %19 = tpu.iota {dimensions = array<i32: 0>} : vector<6x24xi32>
    %20 = tpu.iota {dimensions = array<i32: 1>} : vector<6x24xi32>
    %c4_i32_6 = arith.constant 4 : i32
    %21 = vector.broadcast %c4_i32_6 : i32 to vector<6x24xi32>
    %22 = arith.muli %19, %21 : vector<6x24xi32>
    %23 = arith.cmpi sge, %20, %22 : vector<6x24xi32>
    %c1_i32_7 = arith.constant 1 : i32
    %24 = vector.broadcast %c1_i32_7 : i32 to vector<6x24xi32>
    %25 = arith.addi %19, %24 : vector<6x24xi32>
    %c4_i32_8 = arith.constant 4 : i32
    %26 = vector.broadcast %c4_i32_8 : i32 to vector<6x24xi32>
    %27 = arith.muli %25, %26 : vector<6x24xi32>
    %28 = arith.cmpi slt, %20, %27 : vector<6x24xi32>
    %29 = arith.andi %23, %28 : vector<6x24xi1>
    %30 = arith.extui %29 : vector<6x24xi1> to vector<6x24xi32>
    %31 = arith.sitofp %30 : vector<6x24xi32> to vector<6x24xf32>
    %32 = tpu.iota {dimensions = array<i32: 0>} : vector<4x64xi32>
    %33 = tpu.iota {dimensions = array<i32: 1>} : vector<4x64xi32>
    %c16_i32 = arith.constant 16 : i32
    %34 = vector.broadcast %c16_i32 : i32 to vector<4x64xi32>
    %35 = arith.muli %32, %34 : vector<4x64xi32>
    %36 = arith.cmpi sge, %33, %35 : vector<4x64xi32>
    %c1_i32_9 = arith.constant 1 : i32
    %37 = vector.broadcast %c1_i32_9 : i32 to vector<4x64xi32>
    %38 = arith.addi %32, %37 : vector<4x64xi32>
    %c16_i32_10 = arith.constant 16 : i32
    %39 = vector.broadcast %c16_i32_10 : i32 to vector<4x64xi32>
    %40 = arith.muli %38, %39 : vector<4x64xi32>
    %41 = arith.cmpi slt, %33, %40 : vector<4x64xi32>
    %42 = arith.andi %36, %41 : vector<4x64xi1>
    %43 = arith.extui %42 : vector<4x64xi1> to vector<4x64xi32>
    %44 = arith.sitofp %43 : vector<4x64xi32> to vector<4x64xf32>
    %45 = tpu.iota {dimensions = array<i32: 0>} : vector<64x4xi32>
    %46 = tpu.iota {dimensions = array<i32: 1>} : vector<64x4xi32>
    %c16_i32_11 = arith.constant 16 : i32
    %47 = vector.broadcast %c16_i32_11 : i32 to vector<64x4xi32>
    %48 = arith.muli %46, %47 : vector<64x4xi32>
    %49 = arith.cmpi sge, %45, %48 : vector<64x4xi32>
    %c1_i32_12 = arith.constant 1 : i32
    %50 = vector.broadcast %c1_i32_12 : i32 to vector<64x4xi32>
    %51 = arith.addi %46, %50 : vector<64x4xi32>
    %c16_i32_13 = arith.constant 16 : i32
    %52 = vector.broadcast %c16_i32_13 : i32 to vector<64x4xi32>
    %53 = arith.muli %51, %52 : vector<64x4xi32>
    %54 = arith.cmpi slt, %45, %53 : vector<64x4xi32>
    %55 = arith.andi %49, %54 : vector<64x4xi1>
    %56 = arith.extui %55 : vector<64x4xi1> to vector<64x4xi32>
    %57 = arith.sitofp %56 : vector<64x4xi32> to vector<64x4xf32>
    %cst_14 = arith.constant dense<0.000000e+00> : vector<64x6xf32>
    %58 = tpu.matmul %5, %18, %cst_14 {dimension_numbers = #tpu.dot_dimension_numbers<[1], [0], [0], [1], [0, 0, 1, 1], [], []>} : vector<64x24xf32>, vector<24x6xf32>, vector<64x6xf32> -> vector<64x6xf32>
    %cst_15 = arith.constant dense<0.000000e+00> : vector<4x6xf32>
    %59 = tpu.matmul %44, %58, %cst_15 {dimension_numbers = #tpu.dot_dimension_numbers<[1], [0], [0], [1], [0, 0, 1, 1], [], []>} : vector<4x64xf32>, vector<64x6xf32>, vector<4x6xf32> -> vector<4x6xf32>
    %60 = arith.mulf %5, %5 : vector<64x24xf32>
    %cst_16 = arith.constant dense<0.000000e+00> : vector<64x6xf32>
    %61 = tpu.matmul %60, %18, %cst_16 {dimension_numbers = #tpu.dot_dimension_numbers<[1], [0], [0], [1], [0, 0, 1, 1], [], []>} : vector<64x24xf32>, vector<24x6xf32>, vector<64x6xf32> -> vector<64x6xf32>
    %cst_17 = arith.constant dense<0.000000e+00> : vector<4x6xf32>
    %62 = tpu.matmul %44, %61, %cst_17 {dimension_numbers = #tpu.dot_dimension_numbers<[1], [0], [0], [1], [0, 0, 1, 1], [], []>} : vector<4x64xf32>, vector<64x6xf32>, vector<4x6xf32> -> vector<4x6xf32>
    %cst_18 = arith.constant 1.562500e-02 : f32
    %63 = vector.broadcast %cst_18 : f32 to vector<4x6xf32>
    %64 = arith.mulf %59, %63 : vector<4x6xf32>
    %cst_19 = arith.constant 1.562500e-02 : f32
    %65 = vector.broadcast %cst_19 : f32 to vector<4x6xf32>
    %66 = arith.mulf %62, %65 : vector<4x6xf32>
    %67 = arith.mulf %64, %64 : vector<4x6xf32>
    %68 = arith.subf %66, %67 : vector<4x6xf32>
    %cst_20 = arith.constant 9.99999974E-6 : f32
    %69 = vector.broadcast %cst_20 : f32 to vector<4x6xf32>
    %70 = arith.addf %68, %69 : vector<4x6xf32>
    %71 = math.rsqrt %70 : vector<4x6xf32>
    %cst_21 = arith.constant dense<0.000000e+00> : vector<4x24xf32>
    %72 = tpu.matmul %64, %31, %cst_21 {dimension_numbers = #tpu.dot_dimension_numbers<[1], [0], [0], [1], [0, 0, 1, 1], [], []>} : vector<4x6xf32>, vector<6x24xf32>, vector<4x24xf32> -> vector<4x24xf32>
    %cst_22 = arith.constant dense<0.000000e+00> : vector<64x24xf32>
    %73 = tpu.matmul %57, %72, %cst_22 {dimension_numbers = #tpu.dot_dimension_numbers<[1], [0], [0], [1], [0, 0, 1, 1], [], []>} : vector<64x4xf32>, vector<4x24xf32>, vector<64x24xf32> -> vector<64x24xf32>
    %cst_23 = arith.constant dense<0.000000e+00> : vector<4x24xf32>
    %74 = tpu.matmul %71, %31, %cst_23 {dimension_numbers = #tpu.dot_dimension_numbers<[1], [0], [0], [1], [0, 0, 1, 1], [], []>} : vector<4x6xf32>, vector<6x24xf32>, vector<4x24xf32> -> vector<4x24xf32>
    %cst_24 = arith.constant dense<0.000000e+00> : vector<64x24xf32>
    %75 = tpu.matmul %57, %74, %cst_24 {dimension_numbers = #tpu.dot_dimension_numbers<[1], [0], [0], [1], [0, 0, 1, 1], [], []>} : vector<64x4xf32>, vector<4x24xf32>, vector<64x24xf32> -> vector<64x24xf32>
    %76 = arith.subf %5, %73 : vector<64x24xf32>
    %77 = arith.mulf %76, %75 : vector<64x24xf32>
    %c0_25 = arith.constant 0 : index
    %c0_26 = arith.constant 0 : index
    %78 = vector.load %arg4[%c0_25, %c0_26] : memref<1x24xf32, #tpu.memory_space<vmem>>, vector<1x24xf32>
    %79 = vector.broadcast %78 : vector<1x24xf32> to vector<64x24xf32>
    %80 = arith.mulf %77, %79 : vector<64x24xf32>
    %c0_27 = arith.constant 0 : index
    %c0_28 = arith.constant 0 : index
    %81 = vector.load %arg5[%c0_27, %c0_28] : memref<1x24xf32, #tpu.memory_space<vmem>>, vector<1x24xf32>
    %82 = vector.broadcast %81 : vector<1x24xf32> to vector<64x24xf32>
    %83 = arith.addf %80, %82 : vector<64x24xf32>
    %cst_29 = arith.constant 0.000000e+00 : f32
    %84 = vector.broadcast %cst_29 : f32 to vector<64x24xf32>
    %85 = arith.subf %84, %83 : vector<64x24xf32>
    %86 = math.exp %85 : vector<64x24xf32>
    %cst_30 = arith.constant 1.000000e+00 : f32
    %87 = vector.broadcast %cst_30 : f32 to vector<64x24xf32>
    %88 = arith.addf %87, %86 : vector<64x24xf32>
    %89 = tpu.reciprocal %88 {approx = true} : vector<64x24xf32> -> vector<64x24xf32>
    %90 = arith.mulf %83, %89 : vector<64x24xf32>
    %c0_31 = arith.constant 0 : index
    %c0_32 = arith.constant 0 : index
    %91 = vector.load %arg6[%c0_31, %c0_32] : memref<64x24xf32, #tpu.memory_space<vmem>>, vector<64x24xf32>
    tpu.vector_store %arg6[%c0_31, %c0_32], %90 {strides = array<i32>} : memref<64x24xf32, #tpu.memory_space<vmem>>, vector<64x24xf32>,
    return
  }
  func.func @transform_0(%arg0: i32) -> (i32, i32) {
    %c0_i32 = arith.constant 0 : i32
    %c0_i32_0 = arith.constant 0 : i32
    return %arg0, %c0_i32 : i32, i32
  }
  func.func @transform_1(%arg0: i32) -> (i32, i32) {
    %c0_i32 = arith.constant 0 : i32
    %c0_i32_0 = arith.constant 0 : i32
    %c0_i32_1 = arith.constant 0 : i32
    return %c0_i32, %c0_i32_0 : i32, i32
  }
  func.func @transform_2(%arg0: i32) -> (i32, i32) {
    %c0_i32 = arith.constant 0 : i32
    %c0_i32_0 = arith.constant 0 : i32
    %c0_i32_1 = arith.constant 0 : i32
    return %c0_i32, %c0_i32_0 : i32, i32
  }
  func.func @transform_3(%arg0: i32) -> (i32, i32) {
    %c0_i32 = arith.constant 0 : i32
    %c0_i32_0 = arith.constant 0 : i32
    %c0_i32_1 = arith.constant 0 : i32
    return %c0_i32, %c0_i32_0 : i32, i32
  }
  func.func @transform_4(%arg0: i32) -> (i32, i32) {
    %c0_i32 = arith.constant 0 : i32
    %c0_i32_0 = arith.constant 0 : i32
    %c0_i32_1 = arith.constant 0 : i32
    return %c0_i32, %c0_i32_0 : i32, i32
  }
  func.func @transform_5(%arg0: i32) -> (i32, i32) {
    %c0_i32 = arith.constant 0 : i32
    %c0_i32_0 = arith.constant 0 : i32
    return %arg0, %c0_i32 : i32, i32
  }
}

module attributes {stable_mosaic.version = 11 : i64} {
  func.func @_ln_matmul_kernel(%arg0: i32, %arg1: memref<64x24xf32, #tpu.memory_space<vmem>>, %arg2: memref<1x24xf32, #tpu.memory_space<vmem>>, %arg3: memref<1x24xf32, #tpu.memory_space<vmem>>, %arg4: memref<24x72xbf16, #tpu.memory_space<vmem>>, %arg5: memref<1x72xf32, #tpu.memory_space<vmem>>, %arg6: memref<64x72xf32, #tpu.memory_space<vmem>>) attributes {dimension_semantics = [#tpu.dimension_semantics<parallel>], iteration_bounds = array<i64: 2>, scalar_prefetch = 0 : i64, scratch_operands = 0 : i64, tpu.core_type = #tpu.core_type<tc>, window_params = [{transform_indices = @transform_0, window_bounds = array<i64: 64, 24>}, {pipeline_mode = #tpu.pipeline_mode<synchronous>, transform_indices = @transform_1, window_bounds = array<i64: 1, 24>}, {pipeline_mode = #tpu.pipeline_mode<synchronous>, transform_indices = @transform_2, window_bounds = array<i64: 1, 24>}, {pipeline_mode = #tpu.pipeline_mode<synchronous>, transform_indices = @transform_3, window_bounds = array<i64: 24, 72>}, {pipeline_mode = #tpu.pipeline_mode<synchronous>, transform_indices = @transform_4, window_bounds = array<i64: 1, 72>}, {transform_indices = @transform_5, window_bounds = array<i64: 64, 72>}]} {
    %c0 = arith.constant 0 : index
    %c0_0 = arith.constant 0 : index
    %0 = vector.load %arg1[%c0, %c0_0] : memref<64x24xf32, #tpu.memory_space<vmem>>, vector<64x24xf32>
    %cst = arith.constant dense<0.000000e+00> : vector<64xf32>
    %1 = vector.multi_reduction <add>, %0, %cst [1] : vector<64x24xf32> to vector<64xf32>
    %2 = vector.shape_cast %1 : vector<64xf32> to vector<64x1xf32>
    %cst_1 = arith.constant 2.400000e+01 : f32
    %3 = vector.broadcast %cst_1 : f32 to vector<64x1xf32>
    %4 = arith.divf %2, %3 : vector<64x1xf32>
    %5 = vector.broadcast %4 : vector<64x1xf32> to vector<64x24xf32>
    %6 = arith.subf %0, %5 : vector<64x24xf32>
    %7 = arith.mulf %6, %6 : vector<64x24xf32>
    %cst_2 = arith.constant dense<0.000000e+00> : vector<64xf32>
    %8 = vector.multi_reduction <add>, %7, %cst_2 [1] : vector<64x24xf32> to vector<64xf32>
    %9 = vector.shape_cast %8 : vector<64xf32> to vector<64x1xf32>
    %cst_3 = arith.constant 2.400000e+01 : f32
    %10 = vector.broadcast %cst_3 : f32 to vector<64x1xf32>
    %11 = arith.divf %9, %10 : vector<64x1xf32>
    %12 = vector.broadcast %4 : vector<64x1xf32> to vector<64x24xf32>
    %13 = arith.subf %0, %12 : vector<64x24xf32>
    %cst_4 = arith.constant 9.99999974E-6 : f32
    %14 = vector.broadcast %cst_4 : f32 to vector<64x1xf32>
    %15 = arith.addf %11, %14 : vector<64x1xf32>
    %16 = math.rsqrt %15 : vector<64x1xf32>
    %17 = vector.broadcast %16 : vector<64x1xf32> to vector<64x24xf32>
    %18 = arith.mulf %13, %17 : vector<64x24xf32>
    %c0_5 = arith.constant 0 : index
    %c0_6 = arith.constant 0 : index
    %19 = vector.load %arg2[%c0_5, %c0_6] : memref<1x24xf32, #tpu.memory_space<vmem>>, vector<1x24xf32>
    %20 = vector.broadcast %19 : vector<1x24xf32> to vector<64x24xf32>
    %21 = arith.mulf %18, %20 : vector<64x24xf32>
    %c0_7 = arith.constant 0 : index
    %c0_8 = arith.constant 0 : index
    %22 = vector.load %arg3[%c0_7, %c0_8] : memref<1x24xf32, #tpu.memory_space<vmem>>, vector<1x24xf32>
    %23 = vector.broadcast %22 : vector<1x24xf32> to vector<64x24xf32>
    %24 = arith.addf %21, %23 : vector<64x24xf32>
    %25 = arith.truncf %24 : vector<64x24xf32> to vector<64x24xbf16>
    %c0_9 = arith.constant 0 : index
    %c0_10 = arith.constant 0 : index
    %26 = vector.load %arg4[%c0_9, %c0_10] : memref<24x72xbf16, #tpu.memory_space<vmem>>, vector<24x72xbf16>
    %cst_11 = arith.constant dense<0.000000e+00> : vector<64x72xf32>
    %27 = tpu.matmul %25, %26, %cst_11 {dimension_numbers = #tpu.dot_dimension_numbers<[1], [0], [0], [1], [0, 0, 1, 1], [], []>} : vector<64x24xbf16>, vector<24x72xbf16>, vector<64x72xf32> -> vector<64x72xf32>
    %c0_12 = arith.constant 0 : index
    %c0_13 = arith.constant 0 : index
    %28 = vector.load %arg5[%c0_12, %c0_13] : memref<1x72xf32, #tpu.memory_space<vmem>>, vector<1x72xf32>
    %29 = vector.broadcast %28 : vector<1x72xf32> to vector<64x72xf32>
    %30 = arith.addf %27, %29 : vector<64x72xf32>
    %c0_14 = arith.constant 0 : index
    %c0_15 = arith.constant 0 : index
    %31 = vector.load %arg6[%c0_14, %c0_15] : memref<64x72xf32, #tpu.memory_space<vmem>>, vector<64x72xf32>
    tpu.vector_store %arg6[%c0_14, %c0_15], %30 {strides = array<i32>} : memref<64x72xf32, #tpu.memory_space<vmem>>, vector<64x72xf32>,
    return
  }
  func.func @transform_0(%arg0: i32) -> (i32, i32) {
    %c0_i32 = arith.constant 0 : i32
    %c0_i32_0 = arith.constant 0 : i32
    return %arg0, %c0_i32 : i32, i32
  }
  func.func @transform_1(%arg0: i32) -> (i32, i32) {
    %c0_i32 = arith.constant 0 : i32
    %c0_i32_0 = arith.constant 0 : i32
    %c0_i32_1 = arith.constant 0 : i32
    return %c0_i32, %c0_i32_0 : i32, i32
  }
  func.func @transform_2(%arg0: i32) -> (i32, i32) {
    %c0_i32 = arith.constant 0 : i32
    %c0_i32_0 = arith.constant 0 : i32
    %c0_i32_1 = arith.constant 0 : i32
    return %c0_i32, %c0_i32_0 : i32, i32
  }
  func.func @transform_3(%arg0: i32) -> (i32, i32) {
    %c0_i32 = arith.constant 0 : i32
    %c0_i32_0 = arith.constant 0 : i32
    %c0_i32_1 = arith.constant 0 : i32
    return %c0_i32, %c0_i32_0 : i32, i32
  }
  func.func @transform_4(%arg0: i32) -> (i32, i32) {
    %c0_i32 = arith.constant 0 : i32
    %c0_i32_0 = arith.constant 0 : i32
    %c0_i32_1 = arith.constant 0 : i32
    return %c0_i32, %c0_i32_0 : i32, i32
  }
  func.func @transform_5(%arg0: i32) -> (i32, i32) {
    %c0_i32 = arith.constant 0 : i32
    %c0_i32_0 = arith.constant 0 : i32
    return %arg0, %c0_i32 : i32, i32
  }
}

module attributes {stable_mosaic.version = 11 : i64} {
  func.func @_oca_attn_kernel(%arg0: i32, %arg1: memref<8x16x4xf32, #tpu.memory_space<vmem>>, %arg2: memref<8x36x4xf32, #tpu.memory_space<vmem>>, %arg3: memref<8x36x4xf32, #tpu.memory_space<vmem>>, %arg4: memref<1x16x36xf32, #tpu.memory_space<vmem>>, %arg5: memref<8x16x4xf32, #tpu.memory_space<vmem>>) attributes {dimension_semantics = [#tpu.dimension_semantics<parallel>], iteration_bounds = array<i64: 6>, scalar_prefetch = 0 : i64, scratch_operands = 0 : i64, tpu.core_type = #tpu.core_type<tc>, window_params = [{transform_indices = @transform_0, window_bounds = array<i64: 8, 16, 4>}, {transform_indices = @transform_1, window_bounds = array<i64: 8, 36, 4>}, {transform_indices = @transform_2, window_bounds = array<i64: 8, 36, 4>}, {transform_indices = @transform_3, window_bounds = array<i64: 1, 16, 36>}, {transform_indices = @transform_4, window_bounds = array<i64: 8, 16, 4>}]} {
    %c0 = arith.constant 0 : index
    %c0_0 = arith.constant 0 : index
    %c0_1 = arith.constant 0 : index
    %0 = vector.load %arg1[%c0, %c0_0, %c0_1] : memref<8x16x4xf32, #tpu.memory_space<vmem>>, vector<8x16x4xf32>
    %cst = arith.constant 5.000000e-01 : f32
    %1 = vector.broadcast %cst : f32 to vector<8x16x4xf32>
    %2 = arith.mulf %0, %1 : vector<8x16x4xf32>
    %3 = arith.truncf %2 : vector<8x16x4xf32> to vector<8x16x4xbf16>
    %c0_2 = arith.constant 0 : index
    %c0_3 = arith.constant 0 : index
    %c0_4 = arith.constant 0 : index
    %4 = vector.load %arg2[%c0_2, %c0_3, %c0_4] : memref<8x36x4xf32, #tpu.memory_space<vmem>>, vector<8x36x4xf32>
    %5 = arith.truncf %4 : vector<8x36x4xf32> to vector<8x36x4xbf16>
    %c0_5 = arith.constant 0 : index
    %c0_6 = arith.constant 0 : index
    %c0_7 = arith.constant 0 : index
    %6 = vector.load %arg3[%c0_5, %c0_6, %c0_7] : memref<8x36x4xf32, #tpu.memory_space<vmem>>, vector<8x36x4xf32>
    %7 = arith.truncf %6 : vector<8x36x4xf32> to vector<8x36x4xbf16>
    "tpu.trace_start"() <{level = 10 : i32, message = "bqd,bkd->bqk"}> : () -> ()
    %cst_8 = arith.constant dense<0.000000e+00> : vector<8x16x36xf32>
    %8 = tpu.matmul %3, %5, %cst_8 {dimension_numbers = #tpu.dot_dimension_numbers<[2], [2], [1], [1], [0, 0, 0, 1, 1, 1], [0], [0]>} : vector<8x16x4xbf16>, vector<8x36x4xbf16>, vector<8x16x36xf32> -> vector<8x16x36xf32>
    "tpu.trace_stop"() : () -> ()
    %c0_9 = arith.constant 0 : index
    %c0_10 = arith.constant 0 : index
    %c0_11 = arith.constant 0 : index
    %9 = vector.load %arg4[%c0_9, %c0_10, %c0_11] : memref<1x16x36xf32, #tpu.memory_space<vmem>>, vector<1x16x36xf32>
    %10 = vector.broadcast %9 : vector<1x16x36xf32> to vector<8x16x36xf32>
    %11 = arith.addf %8, %10 : vector<8x16x36xf32>
    %cst_12 = arith.constant dense<0xFF800000> : vector<8x16xf32>
    %12 = vector.multi_reduction <maximumf>, %11, %cst_12 [2] : vector<8x16x36xf32> to vector<8x16xf32>
    %13 = vector.shape_cast %12 : vector<8x16xf32> to vector<8x16x1xf32>
    %14 = vector.broadcast %13 : vector<8x16x1xf32> to vector<8x16x36xf32>
    %15 = arith.subf %11, %14 : vector<8x16x36xf32>
    %16 = math.exp %15 : vector<8x16x36xf32>
    %cst_13 = arith.constant dense<0.000000e+00> : vector<8x16xf32>
    %17 = vector.multi_reduction <add>, %16, %cst_13 [2] : vector<8x16x36xf32> to vector<8x16xf32>
    %18 = vector.shape_cast %17 : vector<8x16xf32> to vector<8x16x1xf32>
    %19 = tpu.reciprocal %18 {approx = true} : vector<8x16x1xf32> -> vector<8x16x1xf32>
    %20 = vector.broadcast %19 : vector<8x16x1xf32> to vector<8x16x36xf32>
    %21 = arith.mulf %16, %20 : vector<8x16x36xf32>
    %22 = arith.truncf %21 : vector<8x16x36xf32> to vector<8x16x36xbf16>
    "tpu.trace_start"() <{level = 10 : i32, message = "bqk,bkd->bqd"}> : () -> ()
    %cst_14 = arith.constant dense<0.000000e+00> : vector<8x16x4xf32>
    %23 = tpu.matmul %22, %7, %cst_14 {dimension_numbers = #tpu.dot_dimension_numbers<[2], [1], [1], [2], [0, 0, 0, 1, 1, 2], [0], [0]>} : vector<8x16x36xbf16>, vector<8x36x4xbf16>, vector<8x16x4xf32> -> vector<8x16x4xf32>
    "tpu.trace_stop"() : () -> ()
    %c0_15 = arith.constant 0 : index
    %c0_16 = arith.constant 0 : index
    %c0_17 = arith.constant 0 : index
    %24 = vector.load %arg5[%c0_15, %c0_16, %c0_17] : memref<8x16x4xf32, #tpu.memory_space<vmem>>, vector<8x16x4xf32>
    tpu.vector_store %arg5[%c0_15, %c0_16, %c0_17], %23 {strides = array<i32>} : memref<8x16x4xf32, #tpu.memory_space<vmem>>, vector<8x16x4xf32>,
    return
  }
  func.func @transform_0(%arg0: i32) -> (i32, i32, i32) {
    %c0_i32 = arith.constant 0 : i32
    %c0_i32_0 = arith.constant 0 : i32
    %c0_i32_1 = arith.constant 0 : i32
    return %arg0, %c0_i32, %c0_i32_0 : i32, i32, i32
  }
  func.func @transform_1(%arg0: i32) -> (i32, i32, i32) {
    %c0_i32 = arith.constant 0 : i32
    %c0_i32_0 = arith.constant 0 : i32
    %c0_i32_1 = arith.constant 0 : i32
    return %arg0, %c0_i32, %c0_i32_0 : i32, i32, i32
  }
  func.func @transform_2(%arg0: i32) -> (i32, i32, i32) {
    %c0_i32 = arith.constant 0 : i32
    %c0_i32_0 = arith.constant 0 : i32
    %c0_i32_1 = arith.constant 0 : i32
    return %arg0, %c0_i32, %c0_i32_0 : i32, i32, i32
  }
  func.func @transform_3(%arg0: i32) -> (i32, i32, i32) {
    %c0_i32 = arith.constant 0 : i32
    %c0_i32_0 = arith.constant 0 : i32
    %c0_i32_1 = arith.constant 0 : i32
    return %arg0, %c0_i32, %c0_i32_0 : i32, i32, i32
  }
  func.func @transform_4(%arg0: i32) -> (i32, i32, i32) {
    %c0_i32 = arith.constant 0 : i32
    %c0_i32_0 = arith.constant 0 : i32
    %c0_i32_1 = arith.constant 0 : i32
    return %arg0, %c0_i32, %c0_i32_0 : i32, i32, i32
  }
}

module attributes {stable_mosaic.version = 11 : i64} {
  func.func @_proj_mlp_kernel(%arg0: i32, %arg1: memref<64x24xf32, #tpu.memory_space<vmem>>, %arg2: memref<64x24xf32, #tpu.memory_space<vmem>>, %arg3: memref<24x24xbf16, #tpu.memory_space<vmem>>, %arg4: memref<1x24xf32, #tpu.memory_space<vmem>>, %arg5: memref<1x24xf32, #tpu.memory_space<vmem>>, %arg6: memref<1x24xf32, #tpu.memory_space<vmem>>, %arg7: memref<24x48xbf16, #tpu.memory_space<vmem>>, %arg8: memref<1x48xf32, #tpu.memory_space<vmem>>, %arg9: memref<48x24xbf16, #tpu.memory_space<vmem>>, %arg10: memref<1x24xf32, #tpu.memory_space<vmem>>, %arg11: memref<64x24xf32, #tpu.memory_space<vmem>>) attributes {dimension_semantics = [#tpu.dimension_semantics<parallel>], iteration_bounds = array<i64: 2>, scalar_prefetch = 0 : i64, scratch_operands = 0 : i64, tpu.core_type = #tpu.core_type<tc>, window_params = [{transform_indices = @transform_0, window_bounds = array<i64: 64, 24>}, {transform_indices = @transform_1, window_bounds = array<i64: 64, 24>}, {pipeline_mode = #tpu.pipeline_mode<synchronous>, transform_indices = @transform_2, window_bounds = array<i64: 24, 24>}, {pipeline_mode = #tpu.pipeline_mode<synchronous>, transform_indices = @transform_3, window_bounds = array<i64: 1, 24>}, {pipeline_mode = #tpu.pipeline_mode<synchronous>, transform_indices = @transform_4, window_bounds = array<i64: 1, 24>}, {pipeline_mode = #tpu.pipeline_mode<synchronous>, transform_indices = @transform_5, window_bounds = array<i64: 1, 24>}, {pipeline_mode = #tpu.pipeline_mode<synchronous>, transform_indices = @transform_6, window_bounds = array<i64: 24, 48>}, {pipeline_mode = #tpu.pipeline_mode<synchronous>, transform_indices = @transform_7, window_bounds = array<i64: 1, 48>}, {pipeline_mode = #tpu.pipeline_mode<synchronous>, transform_indices = @transform_8, window_bounds = array<i64: 48, 24>}, {pipeline_mode = #tpu.pipeline_mode<synchronous>, transform_indices = @transform_9, window_bounds = array<i64: 1, 24>}, {transform_indices = @transform_10, window_bounds = array<i64: 64, 24>}]} {
    %c0 = arith.constant 0 : index
    %c0_0 = arith.constant 0 : index
    %0 = vector.load %arg1[%c0, %c0_0] : memref<64x24xf32, #tpu.memory_space<vmem>>, vector<64x24xf32>
    %1 = arith.truncf %0 : vector<64x24xf32> to vector<64x24xbf16>
    %c0_1 = arith.constant 0 : index
    %c0_2 = arith.constant 0 : index
    %2 = vector.load %arg3[%c0_1, %c0_2] : memref<24x24xbf16, #tpu.memory_space<vmem>>, vector<24x24xbf16>
    %cst = arith.constant dense<0.000000e+00> : vector<64x24xf32>
    %3 = tpu.matmul %1, %2, %cst {dimension_numbers = #tpu.dot_dimension_numbers<[1], [0], [0], [1], [0, 0, 1, 1], [], []>} : vector<64x24xbf16>, vector<24x24xbf16>, vector<64x24xf32> -> vector<64x24xf32>
    %c0_3 = arith.constant 0 : index
    %c0_4 = arith.constant 0 : index
    %4 = vector.load %arg4[%c0_3, %c0_4] : memref<1x24xf32, #tpu.memory_space<vmem>>, vector<1x24xf32>
    %5 = vector.broadcast %4 : vector<1x24xf32> to vector<64x24xf32>
    %6 = arith.addf %3, %5 : vector<64x24xf32>
    %c0_5 = arith.constant 0 : index
    %c0_6 = arith.constant 0 : index
    %7 = vector.load %arg2[%c0_5, %c0_6] : memref<64x24xf32, #tpu.memory_space<vmem>>, vector<64x24xf32>
    %8 = arith.addf %6, %7 : vector<64x24xf32>
    %cst_7 = arith.constant dense<0.000000e+00> : vector<64xf32>
    %9 = vector.multi_reduction <add>, %8, %cst_7 [1] : vector<64x24xf32> to vector<64xf32>
    %10 = vector.shape_cast %9 : vector<64xf32> to vector<64x1xf32>
    %cst_8 = arith.constant 2.400000e+01 : f32
    %11 = vector.broadcast %cst_8 : f32 to vector<64x1xf32>
    %12 = arith.divf %10, %11 : vector<64x1xf32>
    %13 = vector.broadcast %12 : vector<64x1xf32> to vector<64x24xf32>
    %14 = arith.subf %8, %13 : vector<64x24xf32>
    %15 = arith.mulf %14, %14 : vector<64x24xf32>
    %cst_9 = arith.constant dense<0.000000e+00> : vector<64xf32>
    %16 = vector.multi_reduction <add>, %15, %cst_9 [1] : vector<64x24xf32> to vector<64xf32>
    %17 = vector.shape_cast %16 : vector<64xf32> to vector<64x1xf32>
    %cst_10 = arith.constant 2.400000e+01 : f32
    %18 = vector.broadcast %cst_10 : f32 to vector<64x1xf32>
    %19 = arith.divf %17, %18 : vector<64x1xf32>
    %20 = vector.broadcast %12 : vector<64x1xf32> to vector<64x24xf32>
    %21 = arith.subf %8, %20 : vector<64x24xf32>
    %cst_11 = arith.constant 9.99999974E-6 : f32
    %22 = vector.broadcast %cst_11 : f32 to vector<64x1xf32>
    %23 = arith.addf %19, %22 : vector<64x1xf32>
    %24 = math.rsqrt %23 : vector<64x1xf32>
    %25 = vector.broadcast %24 : vector<64x1xf32> to vector<64x24xf32>
    %26 = arith.mulf %21, %25 : vector<64x24xf32>
    %c0_12 = arith.constant 0 : index
    %c0_13 = arith.constant 0 : index
    %27 = vector.load %arg5[%c0_12, %c0_13] : memref<1x24xf32, #tpu.memory_space<vmem>>, vector<1x24xf32>
    %28 = vector.broadcast %27 : vector<1x24xf32> to vector<64x24xf32>
    %29 = arith.mulf %26, %28 : vector<64x24xf32>
    %c0_14 = arith.constant 0 : index
    %c0_15 = arith.constant 0 : index
    %30 = vector.load %arg6[%c0_14, %c0_15] : memref<1x24xf32, #tpu.memory_space<vmem>>, vector<1x24xf32>
    %31 = vector.broadcast %30 : vector<1x24xf32> to vector<64x24xf32>
    %32 = arith.addf %29, %31 : vector<64x24xf32>
    %33 = arith.truncf %32 : vector<64x24xf32> to vector<64x24xbf16>
    %c0_16 = arith.constant 0 : index
    %c0_17 = arith.constant 0 : index
    %34 = vector.load %arg7[%c0_16, %c0_17] : memref<24x48xbf16, #tpu.memory_space<vmem>>, vector<24x48xbf16>
    %cst_18 = arith.constant dense<0.000000e+00> : vector<64x48xf32>
    %35 = tpu.matmul %33, %34, %cst_18 {dimension_numbers = #tpu.dot_dimension_numbers<[1], [0], [0], [1], [0, 0, 1, 1], [], []>} : vector<64x24xbf16>, vector<24x48xbf16>, vector<64x48xf32> -> vector<64x48xf32>
    %c0_19 = arith.constant 0 : index
    %c0_20 = arith.constant 0 : index
    %36 = vector.load %arg8[%c0_19, %c0_20] : memref<1x48xf32, #tpu.memory_space<vmem>>, vector<1x48xf32>
    %37 = vector.broadcast %36 : vector<1x48xf32> to vector<64x48xf32>
    %38 = arith.addf %35, %37 : vector<64x48xf32>
    %cst_21 = arith.constant 5.000000e-01 : f32
    %39 = vector.broadcast %cst_21 : f32 to vector<64x48xf32>
    %40 = arith.mulf %39, %38 : vector<64x48xf32>
    %cst_22 = arith.constant 0.707106769 : f32
    %41 = vector.broadcast %cst_22 : f32 to vector<64x48xf32>
    %42 = arith.mulf %38, %41 : vector<64x48xf32>
    %43 = math.absf %42 : vector<64x48xf32>
    %cst_23 = arith.constant 0.327591091 : f32
    %44 = vector.broadcast %cst_23 : f32 to vector<64x48xf32>
    %45 = arith.mulf %44, %43 : vector<64x48xf32>
    %cst_24 = arith.constant 1.000000e+00 : f32
    %46 = vector.broadcast %cst_24 : f32 to vector<64x48xf32>
    %47 = arith.addf %46, %45 : vector<64x48xf32>
    %cst_25 = arith.constant 1.000000e+00 : f32
    %48 = vector.broadcast %cst_25 : f32 to vector<64x48xf32>
    %49 = arith.divf %48, %47 : vector<64x48xf32>
    %cst_26 = arith.constant 1.06140542 : f32
    %50 = vector.broadcast %cst_26 : f32 to vector<64x48xf32>
    %51 = arith.mulf %50, %49 : vector<64x48xf32>
    %cst_27 = arith.constant -1.45315206 : f32
    %52 = vector.broadcast %cst_27 : f32 to vector<64x48xf32>
    %53 = arith.addf %51, %52 : vector<64x48xf32>
    %54 = arith.mulf %53, %49 : vector<64x48xf32>
    %cst_28 = arith.constant 1.42141378 : f32
    %55 = vector.broadcast %cst_28 : f32 to vector<64x48xf32>
    %56 = arith.addf %54, %55 : vector<64x48xf32>
    %57 = arith.mulf %56, %49 : vector<64x48xf32>
    %cst_29 = arith.constant -0.284496725 : f32
    %58 = vector.broadcast %cst_29 : f32 to vector<64x48xf32>
    %59 = arith.addf %57, %58 : vector<64x48xf32>
    %60 = arith.mulf %59, %49 : vector<64x48xf32>
    %cst_30 = arith.constant 0.254829586 : f32
    %61 = vector.broadcast %cst_30 : f32 to vector<64x48xf32>
    %62 = arith.addf %60, %61 : vector<64x48xf32>
    %63 = arith.mulf %62, %49 : vector<64x48xf32>
    %cst_31 = arith.constant 0.000000e+00 : f32
    %64 = vector.broadcast %cst_31 : f32 to vector<64x48xf32>
    %65 = arith.subf %64, %43 : vector<64x48xf32>
    %66 = arith.mulf %65, %43 : vector<64x48xf32>
    %67 = math.exp %66 : vector<64x48xf32>
    %68 = arith.mulf %63, %67 : vector<64x48xf32>
    %cst_32 = arith.constant 1.000000e+00 : f32
    %69 = vector.broadcast %cst_32 : f32 to vector<64x48xf32>
    %70 = arith.subf %69, %68 : vector<64x48xf32>
    %cst_33 = arith.constant 0.000000e+00 : f32
    %71 = vector.broadcast %cst_33 : f32 to vector<64x48xf32>
    %72 = arith.cmpf oge, %42, %71 : vector<64x48xf32>
    %cst_34 = arith.constant 0.000000e+00 : f32
    %73 = vector.broadcast %cst_34 : f32 to vector<64x48xf32>
    %74 = arith.subf %73, %70 : vector<64x48xf32>
    %75 = arith.select %72, %70, %74 : vector<64x48xi1>, vector<64x48xf32>
    %cst_35 = arith.constant 1.000000e+00 : f32
    %76 = vector.broadcast %cst_35 : f32 to vector<64x48xf32>
    %77 = arith.addf %76, %75 : vector<64x48xf32>
    %78 = arith.mulf %40, %77 : vector<64x48xf32>
    %79 = arith.truncf %78 : vector<64x48xf32> to vector<64x48xbf16>
    %c0_36 = arith.constant 0 : index
    %c0_37 = arith.constant 0 : index
    %80 = vector.load %arg9[%c0_36, %c0_37] : memref<48x24xbf16, #tpu.memory_space<vmem>>, vector<48x24xbf16>
    %cst_38 = arith.constant dense<0.000000e+00> : vector<64x24xf32>
    %81 = tpu.matmul %79, %80, %cst_38 {dimension_numbers = #tpu.dot_dimension_numbers<[1], [0], [0], [1], [0, 0, 1, 1], [], []>} : vector<64x48xbf16>, vector<48x24xbf16>, vector<64x24xf32> -> vector<64x24xf32>
    %c0_39 = arith.constant 0 : index
    %c0_40 = arith.constant 0 : index
    %82 = vector.load %arg10[%c0_39, %c0_40] : memref<1x24xf32, #tpu.memory_space<vmem>>, vector<1x24xf32>
    %83 = vector.broadcast %82 : vector<1x24xf32> to vector<64x24xf32>
    %84 = arith.addf %81, %83 : vector<64x24xf32>
    %85 = arith.addf %8, %84 : vector<64x24xf32>
    %c0_41 = arith.constant 0 : index
    %c0_42 = arith.constant 0 : index
    %86 = vector.load %arg11[%c0_41, %c0_42] : memref<64x24xf32, #tpu.memory_space<vmem>>, vector<64x24xf32>
    tpu.vector_store %arg11[%c0_41, %c0_42], %85 {strides = array<i32>} : memref<64x24xf32, #tpu.memory_space<vmem>>, vector<64x24xf32>,
    return
  }
  func.func @transform_0(%arg0: i32) -> (i32, i32) {
    %c0_i32 = arith.constant 0 : i32
    %c0_i32_0 = arith.constant 0 : i32
    return %arg0, %c0_i32 : i32, i32
  }
  func.func @transform_1(%arg0: i32) -> (i32, i32) {
    %c0_i32 = arith.constant 0 : i32
    %c0_i32_0 = arith.constant 0 : i32
    return %arg0, %c0_i32 : i32, i32
  }
  func.func @transform_2(%arg0: i32) -> (i32, i32) {
    %c0_i32 = arith.constant 0 : i32
    %c0_i32_0 = arith.constant 0 : i32
    %c0_i32_1 = arith.constant 0 : i32
    return %c0_i32, %c0_i32_0 : i32, i32
  }
  func.func @transform_3(%arg0: i32) -> (i32, i32) {
    %c0_i32 = arith.constant 0 : i32
    %c0_i32_0 = arith.constant 0 : i32
    %c0_i32_1 = arith.constant 0 : i32
    return %c0_i32, %c0_i32_0 : i32, i32
  }
  func.func @transform_4(%arg0: i32) -> (i32, i32) {
    %c0_i32 = arith.constant 0 : i32
    %c0_i32_0 = arith.constant 0 : i32
    %c0_i32_1 = arith.constant 0 : i32
    return %c0_i32, %c0_i32_0 : i32, i32
  }
  func.func @transform_5(%arg0: i32) -> (i32, i32) {
    %c0_i32 = arith.constant 0 : i32
    %c0_i32_0 = arith.constant 0 : i32
    %c0_i32_1 = arith.constant 0 : i32
    return %c0_i32, %c0_i32_0 : i32, i32
  }
  func.func @transform_6(%arg0: i32) -> (i32, i32) {
    %c0_i32 = arith.constant 0 : i32
    %c0_i32_0 = arith.constant 0 : i32
    %c0_i32_1 = arith.constant 0 : i32
    return %c0_i32, %c0_i32_0 : i32, i32
  }
  func.func @transform_7(%arg0: i32) -> (i32, i32) {
    %c0_i32 = arith.constant 0 : i32
    %c0_i32_0 = arith.constant 0 : i32
    %c0_i32_1 = arith.constant 0 : i32
    return %c0_i32, %c0_i32_0 : i32, i32
  }
  func.func @transform_8(%arg0: i32) -> (i32, i32) {
    %c0_i32 = arith.constant 0 : i32
    %c0_i32_0 = arith.constant 0 : i32
    %c0_i32_1 = arith.constant 0 : i32
    return %c0_i32, %c0_i32_0 : i32, i32
  }
  func.func @transform_9(%arg0: i32) -> (i32, i32) {
    %c0_i32 = arith.constant 0 : i32
    %c0_i32_0 = arith.constant 0 : i32
    %c0_i32_1 = arith.constant 0 : i32
    return %c0_i32, %c0_i32_0 : i32, i32
  }
  func.func @transform_10(%arg0: i32) -> (i32, i32) {
    %c0_i32 = arith.constant 0 : i32
    %c0_i32_0 = arith.constant 0 : i32
    return %arg0, %c0_i32 : i32, i32
  }
}

module attributes {stable_mosaic.version = 11 : i64} {
  func.func @_conv_gn_kernel(%arg0: i32, %arg1: memref<64x216xbf16, #tpu.memory_space<vmem>>, %arg2: memref<216x24xbf16, #tpu.memory_space<vmem>>, %arg3: memref<1x24xf32, #tpu.memory_space<vmem>>, %arg4: memref<1x24xf32, #tpu.memory_space<vmem>>, %arg5: memref<1x24xf32, #tpu.memory_space<vmem>>, %arg6: memref<64x24xf32, #tpu.memory_space<vmem>>) attributes {dimension_semantics = [#tpu.dimension_semantics<parallel>], iteration_bounds = array<i64: 2>, scalar_prefetch = 0 : i64, scratch_operands = 0 : i64, tpu.core_type = #tpu.core_type<tc>, window_params = [{transform_indices = @transform_0, window_bounds = array<i64: 64, 216>}, {pipeline_mode = #tpu.pipeline_mode<synchronous>, transform_indices = @transform_1, window_bounds = array<i64: 216, 24>}, {pipeline_mode = #tpu.pipeline_mode<synchronous>, transform_indices = @transform_2, window_bounds = array<i64: 1, 24>}, {pipeline_mode = #tpu.pipeline_mode<synchronous>, transform_indices = @transform_3, window_bounds = array<i64: 1, 24>}, {pipeline_mode = #tpu.pipeline_mode<synchronous>, transform_indices = @transform_4, window_bounds = array<i64: 1, 24>}, {transform_indices = @transform_5, window_bounds = array<i64: 64, 24>}]} {
    %c0 = arith.constant 0 : index
    %c0_0 = arith.constant 0 : index
    %0 = vector.load %arg1[%c0, %c0_0] : memref<64x216xbf16, #tpu.memory_space<vmem>>, vector<64x216xbf16>
    %c0_1 = arith.constant 0 : index
    %c0_2 = arith.constant 0 : index
    %1 = vector.load %arg2[%c0_1, %c0_2] : memref<216x24xbf16, #tpu.memory_space<vmem>>, vector<216x24xbf16>
    %cst = arith.constant dense<0.000000e+00> : vector<64x24xf32>
    %2 = tpu.matmul %0, %1, %cst {dimension_numbers = #tpu.dot_dimension_numbers<[1], [0], [0], [1], [0, 0, 1, 1], [], []>} : vector<64x216xbf16>, vector<216x24xbf16>, vector<64x24xf32> -> vector<64x24xf32>
    %c0_3 = arith.constant 0 : index
    %c0_4 = arith.constant 0 : index
    %3 = vector.load %arg3[%c0_3, %c0_4] : memref<1x24xf32, #tpu.memory_space<vmem>>, vector<1x24xf32>
    %4 = vector.broadcast %3 : vector<1x24xf32> to vector<64x24xf32>
    %5 = arith.addf %2, %4 : vector<64x24xf32>
    %6 = tpu.iota {dimensions = array<i32: 0>} : vector<24x6xi32>
    %7 = tpu.iota {dimensions = array<i32: 1>} : vector<24x6xi32>
    %c4_i32 = arith.constant 4 : i32
    %8 = vector.broadcast %c4_i32 : i32 to vector<24x6xi32>
    %9 = arith.muli %7, %8 : vector<24x6xi32>
    %10 = arith.cmpi sge, %6, %9 : vector<24x6xi32>
    %c1_i32 = arith.constant 1 : i32
    %11 = vector.broadcast %c1_i32 : i32 to vector<24x6xi32>
    %12 = arith.addi %7, %11 : vector<24x6xi32>
    %c4_i32_5 = arith.constant 4 : i32
    %13 = vector.broadcast %c4_i32_5 : i32 to vector<24x6xi32>
    %14 = arith.muli %12, %13 : vector<24x6xi32>
    %15 = arith.cmpi slt, %6, %14 : vector<24x6xi32>
    %16 = arith.andi %10, %15 : vector<24x6xi1>
    %17 = arith.extui %16 : vector<24x6xi1> to vector<24x6xi32>
    %18 = arith.sitofp %17 : vector<24x6xi32> to vector<24x6xf32>
    %19 = tpu.iota {dimensions = array<i32: 0>} : vector<6x24xi32>
    %20 = tpu.iota {dimensions = array<i32: 1>} : vector<6x24xi32>
    %c4_i32_6 = arith.constant 4 : i32
    %21 = vector.broadcast %c4_i32_6 : i32 to vector<6x24xi32>
    %22 = arith.muli %19, %21 : vector<6x24xi32>
    %23 = arith.cmpi sge, %20, %22 : vector<6x24xi32>
    %c1_i32_7 = arith.constant 1 : i32
    %24 = vector.broadcast %c1_i32_7 : i32 to vector<6x24xi32>
    %25 = arith.addi %19, %24 : vector<6x24xi32>
    %c4_i32_8 = arith.constant 4 : i32
    %26 = vector.broadcast %c4_i32_8 : i32 to vector<6x24xi32>
    %27 = arith.muli %25, %26 : vector<6x24xi32>
    %28 = arith.cmpi slt, %20, %27 : vector<6x24xi32>
    %29 = arith.andi %23, %28 : vector<6x24xi1>
    %30 = arith.extui %29 : vector<6x24xi1> to vector<6x24xi32>
    %31 = arith.sitofp %30 : vector<6x24xi32> to vector<6x24xf32>
    %32 = tpu.iota {dimensions = array<i32: 0>} : vector<4x64xi32>
    %33 = tpu.iota {dimensions = array<i32: 1>} : vector<4x64xi32>
    %c16_i32 = arith.constant 16 : i32
    %34 = vector.broadcast %c16_i32 : i32 to vector<4x64xi32>
    %35 = arith.muli %32, %34 : vector<4x64xi32>
    %36 = arith.cmpi sge, %33, %35 : vector<4x64xi32>
    %c1_i32_9 = arith.constant 1 : i32
    %37 = vector.broadcast %c1_i32_9 : i32 to vector<4x64xi32>
    %38 = arith.addi %32, %37 : vector<4x64xi32>
    %c16_i32_10 = arith.constant 16 : i32
    %39 = vector.broadcast %c16_i32_10 : i32 to vector<4x64xi32>
    %40 = arith.muli %38, %39 : vector<4x64xi32>
    %41 = arith.cmpi slt, %33, %40 : vector<4x64xi32>
    %42 = arith.andi %36, %41 : vector<4x64xi1>
    %43 = arith.extui %42 : vector<4x64xi1> to vector<4x64xi32>
    %44 = arith.sitofp %43 : vector<4x64xi32> to vector<4x64xf32>
    %45 = tpu.iota {dimensions = array<i32: 0>} : vector<64x4xi32>
    %46 = tpu.iota {dimensions = array<i32: 1>} : vector<64x4xi32>
    %c16_i32_11 = arith.constant 16 : i32
    %47 = vector.broadcast %c16_i32_11 : i32 to vector<64x4xi32>
    %48 = arith.muli %46, %47 : vector<64x4xi32>
    %49 = arith.cmpi sge, %45, %48 : vector<64x4xi32>
    %c1_i32_12 = arith.constant 1 : i32
    %50 = vector.broadcast %c1_i32_12 : i32 to vector<64x4xi32>
    %51 = arith.addi %46, %50 : vector<64x4xi32>
    %c16_i32_13 = arith.constant 16 : i32
    %52 = vector.broadcast %c16_i32_13 : i32 to vector<64x4xi32>
    %53 = arith.muli %51, %52 : vector<64x4xi32>
    %54 = arith.cmpi slt, %45, %53 : vector<64x4xi32>
    %55 = arith.andi %49, %54 : vector<64x4xi1>
    %56 = arith.extui %55 : vector<64x4xi1> to vector<64x4xi32>
    %57 = arith.sitofp %56 : vector<64x4xi32> to vector<64x4xf32>
    %cst_14 = arith.constant dense<0.000000e+00> : vector<64x6xf32>
    %58 = tpu.matmul %5, %18, %cst_14 {dimension_numbers = #tpu.dot_dimension_numbers<[1], [0], [0], [1], [0, 0, 1, 1], [], []>} : vector<64x24xf32>, vector<24x6xf32>, vector<64x6xf32> -> vector<64x6xf32>
    %cst_15 = arith.constant dense<0.000000e+00> : vector<4x6xf32>
    %59 = tpu.matmul %44, %58, %cst_15 {dimension_numbers = #tpu.dot_dimension_numbers<[1], [0], [0], [1], [0, 0, 1, 1], [], []>} : vector<4x64xf32>, vector<64x6xf32>, vector<4x6xf32> -> vector<4x6xf32>
    %60 = arith.mulf %5, %5 : vector<64x24xf32>
    %cst_16 = arith.constant dense<0.000000e+00> : vector<64x6xf32>
    %61 = tpu.matmul %60, %18, %cst_16 {dimension_numbers = #tpu.dot_dimension_numbers<[1], [0], [0], [1], [0, 0, 1, 1], [], []>} : vector<64x24xf32>, vector<24x6xf32>, vector<64x6xf32> -> vector<64x6xf32>
    %cst_17 = arith.constant dense<0.000000e+00> : vector<4x6xf32>
    %62 = tpu.matmul %44, %61, %cst_17 {dimension_numbers = #tpu.dot_dimension_numbers<[1], [0], [0], [1], [0, 0, 1, 1], [], []>} : vector<4x64xf32>, vector<64x6xf32>, vector<4x6xf32> -> vector<4x6xf32>
    %cst_18 = arith.constant 1.562500e-02 : f32
    %63 = vector.broadcast %cst_18 : f32 to vector<4x6xf32>
    %64 = arith.mulf %59, %63 : vector<4x6xf32>
    %cst_19 = arith.constant 1.562500e-02 : f32
    %65 = vector.broadcast %cst_19 : f32 to vector<4x6xf32>
    %66 = arith.mulf %62, %65 : vector<4x6xf32>
    %67 = arith.mulf %64, %64 : vector<4x6xf32>
    %68 = arith.subf %66, %67 : vector<4x6xf32>
    %cst_20 = arith.constant 9.99999974E-6 : f32
    %69 = vector.broadcast %cst_20 : f32 to vector<4x6xf32>
    %70 = arith.addf %68, %69 : vector<4x6xf32>
    %71 = math.rsqrt %70 : vector<4x6xf32>
    %cst_21 = arith.constant dense<0.000000e+00> : vector<4x24xf32>
    %72 = tpu.matmul %64, %31, %cst_21 {dimension_numbers = #tpu.dot_dimension_numbers<[1], [0], [0], [1], [0, 0, 1, 1], [], []>} : vector<4x6xf32>, vector<6x24xf32>, vector<4x24xf32> -> vector<4x24xf32>
    %cst_22 = arith.constant dense<0.000000e+00> : vector<64x24xf32>
    %73 = tpu.matmul %57, %72, %cst_22 {dimension_numbers = #tpu.dot_dimension_numbers<[1], [0], [0], [1], [0, 0, 1, 1], [], []>} : vector<64x4xf32>, vector<4x24xf32>, vector<64x24xf32> -> vector<64x24xf32>
    %cst_23 = arith.constant dense<0.000000e+00> : vector<4x24xf32>
    %74 = tpu.matmul %71, %31, %cst_23 {dimension_numbers = #tpu.dot_dimension_numbers<[1], [0], [0], [1], [0, 0, 1, 1], [], []>} : vector<4x6xf32>, vector<6x24xf32>, vector<4x24xf32> -> vector<4x24xf32>
    %cst_24 = arith.constant dense<0.000000e+00> : vector<64x24xf32>
    %75 = tpu.matmul %57, %74, %cst_24 {dimension_numbers = #tpu.dot_dimension_numbers<[1], [0], [0], [1], [0, 0, 1, 1], [], []>} : vector<64x4xf32>, vector<4x24xf32>, vector<64x24xf32> -> vector<64x24xf32>
    %76 = arith.subf %5, %73 : vector<64x24xf32>
    %77 = arith.mulf %76, %75 : vector<64x24xf32>
    %c0_25 = arith.constant 0 : index
    %c0_26 = arith.constant 0 : index
    %78 = vector.load %arg4[%c0_25, %c0_26] : memref<1x24xf32, #tpu.memory_space<vmem>>, vector<1x24xf32>
    %79 = vector.broadcast %78 : vector<1x24xf32> to vector<64x24xf32>
    %80 = arith.mulf %77, %79 : vector<64x24xf32>
    %c0_27 = arith.constant 0 : index
    %c0_28 = arith.constant 0 : index
    %81 = vector.load %arg5[%c0_27, %c0_28] : memref<1x24xf32, #tpu.memory_space<vmem>>, vector<1x24xf32>
    %82 = vector.broadcast %81 : vector<1x24xf32> to vector<64x24xf32>
    %83 = arith.addf %80, %82 : vector<64x24xf32>
    %c0_29 = arith.constant 0 : index
    %c0_30 = arith.constant 0 : index
    %84 = vector.load %arg6[%c0_29, %c0_30] : memref<64x24xf32, #tpu.memory_space<vmem>>, vector<64x24xf32>
    tpu.vector_store %arg6[%c0_29, %c0_30], %83 {strides = array<i32>} : memref<64x24xf32, #tpu.memory_space<vmem>>, vector<64x24xf32>,
    return
  }
  func.func @transform_0(%arg0: i32) -> (i32, i32) {
    %c0_i32 = arith.constant 0 : i32
    %c0_i32_0 = arith.constant 0 : i32
    return %arg0, %c0_i32 : i32, i32
  }
  func.func @transform_1(%arg0: i32) -> (i32, i32) {
    %c0_i32 = arith.constant 0 : i32
    %c0_i32_0 = arith.constant 0 : i32
    %c0_i32_1 = arith.constant 0 : i32
    return %c0_i32, %c0_i32_0 : i32, i32
  }
  func.func @transform_2(%arg0: i32) -> (i32, i32) {
    %c0_i32 = arith.constant 0 : i32
    %c0_i32_0 = arith.constant 0 : i32
    %c0_i32_1 = arith.constant 0 : i32
    return %c0_i32, %c0_i32_0 : i32, i32
  }
  func.func @transform_3(%arg0: i32) -> (i32, i32) {
    %c0_i32 = arith.constant 0 : i32
    %c0_i32_0 = arith.constant 0 : i32
    %c0_i32_1 = arith.constant 0 : i32
    return %c0_i32, %c0_i32_0 : i32, i32
  }
  func.func @transform_4(%arg0: i32) -> (i32, i32) {
    %c0_i32 = arith.constant 0 : i32
    %c0_i32_0 = arith.constant 0 : i32
    %c0_i32_1 = arith.constant 0 : i32
    return %c0_i32, %c0_i32_0 : i32, i32
  }
  func.func @transform_5(%arg0: i32) -> (i32, i32) {
    %c0_i32 = arith.constant 0 : i32
    %c0_i32_0 = arith.constant 0 : i32
    return %arg0, %c0_i32 : i32, i32
  }
}

module attributes {stable_mosaic.version = 11 : i64} {
  func.func @_conv1x1_add_relu_kernel(%arg0: i32, %arg1: memref<1x24x64xf32, #tpu.memory_space<vmem>>, %arg2: memref<24x24xbf16, #tpu.memory_space<vmem>>, %arg3: memref<24x1xf32, #tpu.memory_space<vmem>>, %arg4: memref<1x24x64xf32, #tpu.memory_space<vmem>>, %arg5: memref<1x24x64xf32, #tpu.memory_space<vmem>>) attributes {dimension_semantics = [#tpu.dimension_semantics<parallel>], iteration_bounds = array<i64: 2>, scalar_prefetch = 0 : i64, scratch_operands = 0 : i64, tpu.core_type = #tpu.core_type<tc>, window_params = [{transform_indices = @transform_0, window_bounds = array<i64: 1, 24, 64>}, {pipeline_mode = #tpu.pipeline_mode<synchronous>, transform_indices = @transform_1, window_bounds = array<i64: 24, 24>}, {pipeline_mode = #tpu.pipeline_mode<synchronous>, transform_indices = @transform_2, window_bounds = array<i64: 24, 1>}, {transform_indices = @transform_3, window_bounds = array<i64: 1, 24, 64>}, {transform_indices = @transform_4, window_bounds = array<i64: 1, 24, 64>}]} {
    %c0 = arith.constant 0 : index
    %c0_0 = arith.constant 0 : index
    %0 = vector.load %arg2[%c0, %c0_0] : memref<24x24xbf16, #tpu.memory_space<vmem>>, vector<24x24xbf16>
    %c0_1 = arith.constant 0 : index
    %c0_2 = arith.constant 0 : index
    %c0_3 = arith.constant 0 : index
    %1 = vector.load %arg1[%c0_1, %c0_2, %c0_3] : memref<1x24x64xf32, #tpu.memory_space<vmem>>, vector<1x24x64xf32>
    %2 = vector.shape_cast %1 : vector<1x24x64xf32> to vector<24x64xf32>
    %3 = arith.truncf %2 : vector<24x64xf32> to vector<24x64xbf16>
    %cst = arith.constant dense<0.000000e+00> : vector<24x64xf32>
    %4 = tpu.matmul %0, %3, %cst {dimension_numbers = #tpu.dot_dimension_numbers<[1], [0], [0], [1], [0, 0, 1, 1], [], []>} : vector<24x24xbf16>, vector<24x64xbf16>, vector<24x64xf32> -> vector<24x64xf32>
    %c0_4 = arith.constant 0 : index
    %c0_5 = arith.constant 0 : index
    %5 = vector.load %arg3[%c0_4, %c0_5] : memref<24x1xf32, #tpu.memory_space<vmem>>, vector<24x1xf32>
    %6 = vector.broadcast %5 : vector<24x1xf32> to vector<24x64xf32>
    %7 = arith.addf %4, %6 : vector<24x64xf32>
    %c0_6 = arith.constant 0 : index
    %c0_7 = arith.constant 0 : index
    %c0_8 = arith.constant 0 : index
    %8 = vector.load %arg4[%c0_6, %c0_7, %c0_8] : memref<1x24x64xf32, #tpu.memory_space<vmem>>, vector<1x24x64xf32>
    %9 = vector.shape_cast %8 : vector<1x24x64xf32> to vector<24x64xf32>
    %10 = arith.addf %7, %9 : vector<24x64xf32>
    %cst_9 = arith.constant 0.000000e+00 : f32
    %11 = vector.broadcast %cst_9 : f32 to vector<24x64xf32>
    %12 = arith.maximumf %10, %11 : vector<24x64xf32>
    %c0_10 = arith.constant 0 : index
    %c0_11 = arith.constant 0 : index
    %c0_12 = arith.constant 0 : index
    %13 = vector.load %arg5[%c0_10, %c0_11, %c0_12] : memref<1x24x64xf32, #tpu.memory_space<vmem>>, vector<1x24x64xf32>
    %14 = vector.shape_cast %13 : vector<1x24x64xf32> to vector<24x64xf32>
    %15 = vector.shape_cast %12 : vector<24x64xf32> to vector<1x24x64xf32>
    tpu.vector_store %arg5[%c0_10, %c0_11, %c0_12], %15 {strides = array<i32>} : memref<1x24x64xf32, #tpu.memory_space<vmem>>, vector<1x24x64xf32>,
    return
  }
  func.func @transform_0(%arg0: i32) -> (i32, i32, i32) {
    %c0_i32 = arith.constant 0 : i32
    %c0_i32_0 = arith.constant 0 : i32
    %c0_i32_1 = arith.constant 0 : i32
    return %arg0, %c0_i32, %c0_i32_0 : i32, i32, i32
  }
  func.func @transform_1(%arg0: i32) -> (i32, i32) {
    %c0_i32 = arith.constant 0 : i32
    %c0_i32_0 = arith.constant 0 : i32
    %c0_i32_1 = arith.constant 0 : i32
    return %c0_i32, %c0_i32_0 : i32, i32
  }
  func.func @transform_2(%arg0: i32) -> (i32, i32) {
    %c0_i32 = arith.constant 0 : i32
    %c0_i32_0 = arith.constant 0 : i32
    %c0_i32_1 = arith.constant 0 : i32
    return %c0_i32, %c0_i32_0 : i32, i32
  }
  func.func @transform_3(%arg0: i32) -> (i32, i32, i32) {
    %c0_i32 = arith.constant 0 : i32
    %c0_i32_0 = arith.constant 0 : i32
    %c0_i32_1 = arith.constant 0 : i32
    return %arg0, %c0_i32, %c0_i32_0 : i32, i32, i32
  }
  func.func @transform_4(%arg0: i32) -> (i32, i32, i32) {
    %c0_i32 = arith.constant 0 : i32
    %c0_i32_0 = arith.constant 0 : i32
    %c0_i32_1 = arith.constant 0 : i32
    return %arg0, %c0_i32, %c0_i32_0 : i32, i32, i32
  }
}

</mosaic_0001>

<bundles_post_ra>
// kernel: atoca_forward.6
= control target key start
LH: loop header
LB: loop body
LE: loop exit
PB: predicated region body
PF: predicated region fallthrough
CT: control target
= control target key end

     0   :  { %s1951_s18 = smov 0   ;;  %s2321_s0 = inlined_call_operand.vmem [shape: bf16[128,216], index: 0, kind: input, shape index: {}]   ;;  %s2322_s1 = inlined_call_operand.vmem [shape: bf16[216,24], index: 1, kind: input, shape index: {}]   ;;  %s2323_s2 = inlined_call_operand.vmem [shape: f32[1,24], index: 2, kind: input, shape index: {}]   ;;  %s2324_s3 = inlined_call_operand.vmem [shape: f32[1,24], index: 3, kind: input, shape index: {}]   ;;  %s2325_s4 = inlined_call_operand.vmem [shape: f32[1,24], index: 4, kind: input, shape index: {}]   ;;  %s2326_s5 = inlined_call_operand.vmem [shape: f32[128,24], index: 5, kind: output, shape index: {}]  }
   0x1 LB: > { %s1526_s19 = sadd.s32 4294967295, %s1913_s18   ;;  %p1530_p0 = scmp.ge.s32.totalorder %s1913_s18, 1  ;;  %s1913_s18 = sphi %s1951_s18, %s15_s18  }
   0x2   : > { %p189_p1 = scmp.lt.s32.totalorder %s1913_s18, 3 }
   0x4   : > { %p190_p2 = pnand %p1530_p0, %p189_p1 }
   0x5   : > { %v1847_v0 = vld [vmem:[%s2322_s1] sm:$0xff] (!%p190_p2)   ;;  %v1915_v1 = vmov (!%p190_p2), 0   ;;  %v1848_v2 = vld [vmem:[%s2322_s1 + $0x8] sm:$0xff] (!%p190_p2)   ;;  %s1531_s24 = sshll.u32 (!%p190_p2), %s1526_s19, 3  ;;  %v473_v3 = vlaneseq (!%p190_p2)  ;;  %v1849_v4 = vld [vmem:[%s2322_s1 + $0x10] sm:$0xff] (!%p190_p2)   ;;  %vm391_vm0 = vcmask (!%p190_p2), 719872  }
   0x6   : > { %193 = sbr.rel (%p190_p2) target bundleno = 1468 (0x5bc), region = 40  ;;  %408 = vmatprep.subr.bf16.mxu0 (!%p190_p2), %v1915_v1  ;;  %p219_p3 = scmp.lt.s32.totalorder (!%p190_p2), %s1531_s24, 15  ;;  %v1850_v7 = vld [vmem:[%s2322_s1 + $0x18] sm:$0xff] (!%p190_p2)   ;;  %v1851_v11 = vld [vmem:[%s2322_s1 + $0x20] sm:$0xff] (!%p190_p2)   ;;  %v1852_v14 = vld [vmem:[%s2322_s1 + $0x28] sm:$0xff] (!%p190_p2)   ;;  %vm404_vm8 = vcmask (!%p190_p2), 1043456  }
   0x7   : > { %409 = vmatpush1.bf16.msra.mxu0 (!%p190_p2), %v1847_v0  ;;  %v1974_v5 = vshrl.u32 (!%p190_p2), %v473_v3, 7  ;;  %v1976_v6 = vand.u32 (!%p190_p2), 127, %v473_v3  ;;  %v1853_v16 = vld [vmem:[%s2322_s1 + $0x30] sm:$0xff] (!%p190_p2)   ;;  %v1916_v17 = vmov (!%p190_p2), 1.0|1.0   ;;  %v1854_v18 = vld [vmem:[%s2322_s1 + $0x38] sm:$0xff] (!%p190_p2)  }
   0x8   : > { %410 = vmatprep.subr.bf16.mxu0 (!%p190_p2), %v1915_v1  ;;  %v1855_v19 = vld [vmem:[%s2322_s1 + $0x40] sm:$0xff] (!%p190_p2)   ;;  %v1856_v20 = vld [vmem:[%s2322_s1 + $0x48] sm:$0xff] (!%p190_p2)   ;;  %v1857_v21 = vld [vmem:[%s2322_s1 + $0x50] sm:$0xff] (!%p190_p2)   ;;  %v1917_v35 = vmov (!%p190_p2), 1.0   ;;  %vm2327_vm12 = vcmask (!%p190_p2), 195584   ;;  %v1918_v61 = vmov (!%p190_p2), 0.0|0.0  }
   0x9   : > { %v1990_v8 = vmul.u32 (!%p190_p2), 4, %v1976_v6  ;;  %v1993_v9 = vadd.s32 (!%p190_p2), 1, %v1976_v6  ;;  %v1996_v10 = vadd.s32 (!%p190_p2), 8, %v1974_v5  ;;  %v1858_v22 = vld [vmem:[%s2322_s1 + $0x58] sm:$0xff] (!%p190_p2)   ;;  %v1859_v23 = vld [vmem:[%s2322_s1 + $0x60] sm:$0xff] (!%p190_p2)   ;;  %v2069_v33 = vadd.s32 (!%p190_p2), 16, %v1974_v5 }
   0xa   : > { %v1860_v24 = vld [vmem:[%s2322_s1 + $0x68] ss:$0 sps:$4 sm:$0xff] (!%p190_p2)   ;;  %v1536_v36 = vld [vmem:[%s2323_s2] ss:$0 sm:$0xff] (!%p190_p2)  ;;  %vm2329_vm13 = vmmov (!%p190_p2), 0   ;;  %v1920_v62 = vmov (!%p190_p2), 0.0  }
   0xb   : > { %411 = vmatpush1.bf16.msra.mxu0 (!%p190_p2), %v1848_v2  ;;  %v484_v13 = vmul.u32 (!%p190_p2), 4, %v1993_v9  ;;  %vm480_vm1 = vcmp.ge.s32.totalorder (!%p190_p2), %v1974_v5, %v1990_v8  ;;  %vm481_vm3 = vcmp.ge.s32.totalorder (!%p190_p2), %v1996_v10, %v1990_v8  ;;  %v406_v25 = vsel (!%p190_p2), %vm404_vm8, %v1860_v24, 0 }
   0xc   : > { %412 = vmatprep.subr.bf16.mxu0 (!%p190_p2), %v1915_v1  ;;  %vm482_vm9 = vcmp.ge.s32.totalorder (!%p190_p2), %v2069_v33, %v1990_v8 }
   0xd   : > { %s2359_s24 = smov (!%p219_p3, %s1531_s24), 15  ;;  %vm485_vm2 = vcmp.lt.s32.totalorder %v1974_v5, %v484_v13  ;;  %vm486_vm4 = vcmp.lt.s32.totalorder %v1996_v10, %v484_v13  ;;  %vm487_vm10 = vcmp.lt.s32.totalorder %v2069_v33, %v484_v13  ;;  %v505_v13 = vmul.u32 16, %v1974_v5 }
   0xe   : > { %s1626_s27 = sshll.u32 %s2359_s24, 3  ;;  %vm488_vm5 = vmand %vm480_vm1, %vm485_vm2  ;;  %vm689_vm1 = vcmask 523264  }
   0xf   : > { %413 = vmatpush1.bf16.msra.mxu0 %v1849_v4  ;;  %s1987_s7 = scalar_lea.vmem %s2321_s0, %s1626_s27  ;;  %vm489_vm6 = vmand %vm481_vm3, %vm486_vm4  ;;  %vm506_vm14 = vcmp.ge.s32.totalorder %v1976_v6, %v505_v13  ;;  %s229_s14 = scalar_lea.vmem %s2326_s5, %s1626_s27 }
  0x10   : > { %414 = vmatprep.subr.bf16.mxu0 %v1915_v1  ;;  %v1863_v12 = vld [vmem:[%s1987_s7 + $0x4] ss:$8 sps:$4 sm:$0xff]   ;;  %vm2015_vm7 = vmpackc.low %vm489_vm6, %vm488_vm5  ;;  %v1861_v26 = vld [vmem:[%s1987_s7] ss:$8 sps:$4 sm:$0xff]   ;;  %vm980_vm5 = vcmask 1045504   ;;  %vm2328_vm6 = vcmask 48128  }
  0x11   : > { %1559 = vmatprep.mubr.msk.bf16.mxu0 %vm391_vm0, %v1863_v12  ;;  %1802 = vmatprep.subr.msk.bf16.mxu1 %vm2015_vm7, %v1916_v17  ;;  %v1864_v27 = vld [vmem:[%s1987_s7 + $0x14] ss:$8 sps:$4 sm:$0xff]   ;;  %v1866_v28 = vld [vmem:[%s1987_s7 + $0x10] ss:$8 sps:$4 sm:$0xff]   ;;  %v1867_v29 = vld [vmem:[%s1987_s7 + $0x24] ss:$8 sps:$4 sm:$0xff]  }
  0x12   : > { %1804 = vmatpush3.bf16.msk.msra.mxu1 %vm2015_vm7, %v1916_v17  ;;  %v1869_v30 = vld [vmem:[%s1987_s7 + $0x20] ss:$8 sps:$4 sm:$0xff]   ;;  %v1870_v31 = vld [vmem:[%s1987_s7 + $0x34] ss:$8 sps:$4 sm:$0xff]   ;;  %v1872_v32 = vld [vmem:[%s1987_s7 + $0x30] ss:$8 sps:$4 sm:$0xff]  }
  0x13   : > { %415 = vmatpush1.bf16.msra.mxu0 %v1850_v7  ;;  %vm2074_vm11 = vmand %vm482_vm9, %vm487_vm10  ;;  %v499_v7 = vadd.s32 1, %v1974_v5 }
  0x14   : > { %416 = vmatprep.subr.bf16.mxu0 %v1915_v1  ;;  %1693 = vmatprep.subr.msk.mxu1 %vm2074_vm11, %v1917_v35 }
  0x16   : > { %1694 = vmatpush3.msk.msra.mxu1 %vm2074_vm11, %v1917_v35 }
  0x17   : > { %417 = vmatpush1.bf16.msra.mxu0 %v1851_v11  ;;  %1805 = vmatprep.subr.bf16.mxu1 %v1918_v61 }
  0x18   : > { %418 = vmatprep.subr.bf16.mxu0 %v1915_v1 }
  0x1b   : > { %419 = vmatpush1.bf16.msra.mxu0 %v1852_v14  ;;  %v507_v14 = vmul.u32 16, %v499_v7 }
  0x1c   : > { %420 = vmatprep.subr.bf16.mxu0 %v1915_v1 }
  0x1d   : > { %vm508_vm15 = vcmp.lt.s32.totalorder %v1976_v6, %v507_v14 }
  0x1f   : > { %421 = vmatpush1.bf16.msra.mxu0 %v1853_v16 }
  0x20   : > { %422 = vmatprep.subr.bf16.mxu0 %v1915_v1 }
  0x23   : > { %423 = vmatpush1.bf16.msra.mxu0 %v1854_v18 }
  0x24   : > { %424 = vmatprep.subr.bf16.mxu0 %v1915_v1 }
  0x27   : > { %425 = vmatpush1.bf16.msra.mxu0 %v1855_v19 }
  0x28   : > { %426 = vmatprep.subr.bf16.mxu0 %v1915_v1 }
  0x2b   : > { %427 = vmatpush1.bf16.msra.mxu0 %v1856_v20 }
  0x2c   : > { %428 = vmatprep.subr.bf16.mxu0 %v1915_v1 }
  0x2f   : > { %429 = vmatpush1.bf16.msra.mxu0 %v1857_v21 }
  0x30   : > { %430 = vmatprep.subr.bf16.mxu0 %v1915_v1 }
  0x33   : > { %431 = vmatpush1.bf16.msra.mxu0 %v1858_v22 }
  0x34   : > { %432 = vmatprep.subr.bf16.mxu0 %v1915_v1 }
  0x37   : > { %433 = vmatpush1.bf16.msra.mxu0 %v1859_v23 }
  0x38   : > { %434 = vmatprep.subr.bf16.mxu0 %v1915_v1 }
  0x3b   : > { %435 = vmatpush1.bf16.msra.mxu0 %v406_v25 }
  0x3e   : > { %441 = vmatmul.mubr.bf16.vlgmr.msra.gmra.mrb[0].mxu0 %v1861_v26 }
  0x3f   : > { %1560 = vmatprep.mubr.msk.bf16.mxu0 %vm391_vm0, %v1864_v27 }
  0x46   : > { %449 = vmatmul.mubr.bf16.gmra.mrb[4].mxu0 %v1866_v28 }
  0x47   : > { %1561 = vmatprep.mubr.msk.bf16.mxu0 %vm391_vm0, %v1867_v29 }
  0x4e   : > { %457 = vmatmul.mubr.bf16.gmra.mrb[8].mxu0 %v1869_v30 }
  0x4f   : > { %1562 = vmatprep.mubr.msk.bf16.mxu0 %vm391_vm0, %v1870_v31  ;;  %vm509_vm0 = vmand %vm506_vm14, %vm508_vm15  ;;  %vm1054_vm15 = vcmask 31744  }
  0x50   : > { %v1567_v20 = vsel %vm509_vm0, 1.0, %v1920_v62 }
  0x56   : > { %465 = vmatmul.mubr.bf16.gmra.mrb[12].mxu0 %v1872_v32 }
 0x111   : > { %v442_v37 = vpop.f32.mrb[0].mxu0 }
 0x112   : > { %v2087_v38 = vadd.f32 %v1536_v36, %v442_v37  ;;  %v444_v39 = vpop.f32.mrb[1].mxu0  ;;  %v500_v37 = vmul.u32 4, %v499_v7 }
 0x113   : > { %v445_v40 = vpop.f32.mrb[2].mxu0 }
 0x114   : > { %v2089_v41 = vadd.f32 %v1536_v36, %v445_v40  ;;  %v447_v42 = vpop.f32.mrb[3].mxu0  ;;  %1695 = vmatprep.mubr.msk.f32.mxu1 %vm2327_vm12, %v2087_v38  ;;  %v763_v21 = vmul.f32 %v2087_v38, %v2087_v38  ;;  %vm501_vm3 = vcmp.lt.s32.totalorder %v1976_v6, %v500_v37  ;;  %v1623_v37 = vld [vmem:[%s2325_s4] ss:$0 sm:$0xff] }
 0x116   : > { %1696 = vmatmul.mubr.msk.f32.vlgmr.msra.gmra.mrb[0].mxu1 %vm2327_vm12, %v2089_v41  ;;  %v764_v22 = vmul.f32 %v2089_v41, %v2089_v41 }
 0x119   : > { %v450_v43 = vpop.f32.mrb[4].mxu0 }
 0x11a   : > { %v2095_v44 = vadd.f32 %v1536_v36, %v450_v43  ;;  %v452_v45 = vpop.f32.mrb[5].mxu0 }
 0x11b   : > { %v453_v46 = vpop.f32.mrb[6].mxu0 }
 0x11c   : > { %v2097_v47 = vadd.f32 %v1536_v36, %v453_v46  ;;  %v455_v48 = vpop.f32.mrb[7].mxu0  ;;  %1698 = vmatprep.mubr.msk.f32.mxu1 %vm2327_vm12, %v2095_v44  ;;  %v765_v23 = vmul.f32 %v2095_v44, %v2095_v44 }
 0x11e   : > { %1699 = vmatmul.mubr.msk.f32.gmra.mrb[2].mxu1 %vm2327_vm12, %v2097_v47  ;;  %v766_v15 = vmul.f32 %v2097_v47, %v2097_v47 }
 0x121   : > { %v458_v49 = vpop.f32.mrb[8].mxu0 }
 0x122   : > { %v2103_v50 = vadd.f32 %v1536_v36, %v458_v49  ;;  %v460_v51 = vpop.f32.mrb[9].mxu0 }
 0x123   : > { %v461_v52 = vpop.f32.mrb[10].mxu0  ;;  %v526_v51 = vmul.u32 16, %v1993_v9 }
 0x124   : > { %v2105_v53 = vadd.f32 %v1536_v36, %v461_v52  ;;  %v463_v54 = vpop.f32.mrb[11].mxu0  ;;  %1701 = vmatprep.mubr.msk.f32.mxu1 %vm2327_vm12, %v2103_v50  ;;  %v517_v52 = vmul.u32 16, %v1976_v6 }
 0x125   : > { %vm527_vm9 = vcmp.lt.s32.totalorder %v1974_v5, %v526_v51  ;;  %vm528_vm14 = vcmp.lt.s32.totalorder %v1996_v10, %v526_v51 }
 0x126   : > { %1702 = vmatmul.mubr.msk.f32.gmra.mrb[4].mxu1 %vm2327_vm12, %v2105_v53  ;;  %v768_v24 = vmul.f32 %v2105_v53, %v2105_v53 }
 0x129   : > { %v466_v55 = vpop.f32.mrb[12].mxu0 }
 0x12a   : > { %v2111_v56 = vadd.f32 %v1536_v36, %v466_v55  ;;  %v468_v57 = vpop.f32.mrb[13].mxu0 }
 0x12b   : > { %v469_v58 = vpop.f32.mrb[14].mxu0  ;;  %v513_v57 = vadd.s32 32, %v1974_v5 }
 0x12c   : > { %v2113_v59 = vadd.f32 %v1536_v36, %v469_v58  ;;  %v471_v60 = vpop.f32.mrb[15].mxu0  ;;  %1704 = vmatprep.mubr.msk.f32.mxu1 %vm2327_vm12, %v2111_v56  ;;  %v769_v25 = vmul.f32 %v2111_v56, %v2111_v56  ;;  %v497_v36 = vmul.u32 4, %v1974_v5  ;;  %v514_v58 = vadd.s32 40, %v1974_v5 }
 0x12e   : > { %1705 = vmatmul.mubr.msk.f32.gmra.mrb[6].mxu1 %vm2327_vm12, %v2113_v59  ;;  %v770_v26 = vmul.f32 %v2113_v59, %v2113_v59  ;;  %vm498_vm2 = vcmp.ge.s32.totalorder %v1976_v6, %v497_v36  ;;  %v512_v6 = vadd.s32 24, %v1974_v5 }
 0x12f   : > { %1723 = vmatprep.mubr.msk.f32.mxu1 %vm2329_vm13, %v1920_v62  ;;  %vm502_vm4 = vmand %vm498_vm2, %vm501_vm3  ;;  %vm529_vm2 = vcmp.lt.s32.totalorder %v2069_v33, %v526_v51 }
 0x130   : > { %v1566_v48 = vsel %vm502_vm4, 1.0, %v1920_v62  ;;  %vm521_vm4 = vcmp.ge.s32.totalorder %v512_v6, %v517_v52 }
 0x1e9   : > { %v1697_v63 = vpop.f32.mrb[0].mxu1 }
 0x1ea   : > { %v650_v0 = vpop.f32.mrb[1].mxu1 }
 0x1eb   : > { %v1806_v1 = vpack.c.bf16 %v1697_v63, %v650_v0  ;;  %v516_v63 = vadd.s32 56, %v1974_v5 }
 0x1ed   : > { %1807 = vmatpush3.bf16.msra.mxu1 %v1806_v1 }
 0x1ee   : > { %1808 = vmatprep.subr.bf16.mxu1 %v1918_v61 }
 0x1f1   : > { %v1700_v2 = vpop.f32.mrb[2].mxu1 }
 0x1f2   : > { %v660_v3 = vpop.f32.mrb[3].mxu1 }
 0x1f3   : > { %v1809_v4 = vpack.c.bf16 %v1700_v2, %v660_v3 }
 0x1f5   : > { %1810 = vmatpush3.bf16.msra.mxu1 %v1809_v4 }
 0x1f6   : > { %1811 = vmatprep.subr.bf16.mxu1 %v1918_v61 }
 0x1f9   : > { %v1703_v8 = vpop.f32.mrb[4].mxu1 }
 0x1fa   : > { %v670_v11 = vpop.f32.mrb[5].mxu1 }
 0x1fb   : > { %v1812_v12 = vpack.c.bf16 %v1703_v8, %v670_v11 }
 0x1fd   : > { %1813 = vmatpush3.bf16.msra.mxu1 %v1812_v12 }
 0x1fe   : > { %1814 = vmatprep.subr.bf16.mxu1 %v1918_v61 }
 0x201   : > { %v1706_v16 = vpop.f32.mrb[6].mxu1 }
 0x202   : > { %v680_v18 = vpop.f32.mrb[7].mxu1 }
 0x203   : > { %v1815_v19 = vpack.c.bf16 %v1706_v16, %v680_v18 }
 0x205   : > { %1816 = vmatpush3.bf16.msra.mxu1 %v1815_v19 }
 0x206   : > { %1818 = vmatprep.subr.msk.bf16.mxu1 %vm2015_vm7, %v1916_v17 }
 0x208   : > { %1724 = vmatmul.mubr.msk.f32.vlgmr.msra.gmra.mrb[8].mxu1 %vm689_vm1, %v1567_v20 }
 0x209   : > { %1820 = vmatpush3.bf16.msk.msra.mxu1 %vm2015_vm7, %v1916_v17  ;;  %1732 = vmatprep.mubr.msk.f32.mxu1 %vm2327_vm12, %v763_v21  ;;  %v767_v17 = vmul.f32 %v2103_v50, %v2103_v50  ;;  %vm518_vm7 = vcmp.ge.s32.totalorder %v1974_v5, %v517_v52 }
 0x20a   : > { %1730 = vmatprep.subr.msk.mxu1 %vm2074_vm11, %v1917_v35  ;;  %vm535_vm10 = vmand %vm518_vm7, %vm527_vm9  ;;  %vm530_vm7 = vcmp.lt.s32.totalorder %v512_v6, %v526_v51 }
 0x20b   : > { %v1568_v54 = vsel %vm535_vm10, 1.0, %v1920_v62  ;;  %vm2202_vm9 = vmand %vm521_vm4, %vm530_vm7  ;;  %vm522_vm10 = vcmp.ge.s32.totalorder %v513_v57, %v517_v52 }
 0x20c   : > { %v1571_v16 = vsel %vm2202_vm9, 1.0, %v1920_v62 }
 0x20d   : > { %1731 = vmatpush3.msk.msra.mxu1 %vm2074_vm11, %v1917_v35  ;;  %vm519_vm11 = vcmp.ge.s32.totalorder %v1996_v10, %v517_v52 }
 0x20e   : > { %1733 = vmatmul.mubr.msk.f32.vlgmr.msra.gmra.mrb[10].mxu1 %vm2327_vm12, %v764_v22  ;;  %1821 = vmatprep.subr.bf16.mxu1 %v1918_v61  ;;  %vm2190_vm0 = vmand %vm519_vm11, %vm528_vm14  ;;  %vm531_vm11 = vcmp.lt.s32.totalorder %v513_v57, %v526_v51 }
 0x20f   : > { %1735 = vmatprep.mubr.msk.f32.mxu1 %vm2327_vm12, %v765_v23  ;;  %vm2208_vm14 = vmand %vm522_vm10, %vm531_vm11  ;;  %vm525_vm10 = vcmp.ge.s32.totalorder %v516_v63, %v517_v52  ;;  %vm534_vm11 = vcmp.lt.s32.totalorder %v516_v63, %v526_v51 }
 0x210   : > { %v1572_v18 = vsel %vm2208_vm14, 1.0, %v1920_v62 }
 0x212   : > { %1736 = vmatmul.mubr.msk.f32.gmra.mrb[12].mxu1 %vm2327_vm12, %v766_v15 }
 0x213   : > { %1738 = vmatprep.mubr.msk.f32.mxu1 %vm2327_vm12, %v767_v17 }
 0x216   : > { %1739 = vmatmul.mubr.msk.f32.gmra.mrb[14].mxu1 %vm2327_vm12, %v768_v24 }
 0x217   : > { %1741 = vmatprep.mubr.msk.f32.mxu1 %vm2327_vm12, %v769_v25 }
 0x21a   : > { %1742 = vmatmul.mubr.msk.f32.gmra.mrb[16].mxu1 %vm2327_vm12, %v770_v26 }
 0x21b   : > { %1760 = vmatprep.mubr.msk.f32.mxu1 %vm2329_vm13, %v1920_v62 }
 0x2db   : > { %v759_v27 = vpop.f32.mrb[8].mxu1 }
 0x2dc   : > { %v1725_v28 = vpop.f32.mrb[9].mxu1  ;;  %v970_v49 = vmul.f32 0.015625, %v759_v27 }
 0x2de   : > { %v972_v3 = vmul.f32 %v970_v49, %v970_v49 }
 0x2e1   : > { %v1734_v29 = vpop.f32.mrb[10].mxu1 }
 0x2e2   : > { %v861_v30 = vpop.f32.mrb[11].mxu1 }
 0x2e3   : > { %v1822_v31 = vpack.c.bf16 %v1734_v29, %v861_v30 }
 0x2e5   : > { %v1737_v32 = vpop.f32.mrb[12].mxu1  ;;  %1823 = vmatpush3.bf16.msra.mxu1 %v1822_v31 }
 0x2e6   : > { %v871_v34 = vpop.f32.mrb[13].mxu1  ;;  %1824 = vmatprep.subr.bf16.mxu1 %v1918_v61 }
 0x2e7   : > { %v1825_v35 = vpack.c.bf16 %v1737_v32, %v871_v34  ;;  %v1622_v34 = vld [vmem:[%s2324_s3] ss:$0 sm:$0xff] }
 0x2e9   : > { %v1740_v39 = vpop.f32.mrb[14].mxu1  ;;  %1826 = vmatpush3.bf16.msra.mxu1 %v1825_v35 }
 0x2ea   : > { %v881_v40 = vpop.f32.mrb[15].mxu1  ;;  %1827 = vmatprep.subr.bf16.mxu1 %v1918_v61 }
 0x2eb   : > { %v1828_v42 = vpack.c.bf16 %v1740_v39, %v881_v40 }
 0x2ed   : > { %v1743_v43 = vpop.f32.mrb[16].mxu1  ;;  %1829 = vmatpush3.bf16.msra.mxu1 %v1828_v42 }
 0x2ee   : > { %v891_v45 = vpop.f32.mrb[17].mxu1  ;;  %1830 = vmatprep.subr.bf16.mxu1 %v1918_v61  ;;  %v515_v61 = vadd.s32 48, %v1974_v5  ;;  %v1569_v5 = vsel %vm2190_vm0, 1.0, %v1920_v62  ;;  %vm2349_vm0 = vcmask 48128  }
 0x2ef   : > { %v1831_v46 = vpack.c.bf16 %v1743_v43, %v891_v45 }
 0x2f0   : > { %vm524_vm4 = vcmp.ge.s32.totalorder %v515_v61, %v517_v52  ;;  %vm533_vm7 = vcmp.lt.s32.totalorder %v515_v61, %v526_v51 }
 0x2f1   : > { %1832 = vmatpush3.bf16.msra.mxu1 %v1831_v46 }
 0x2f2   : > { %1763 = vmatprep.subr.mxu1 %v1920_v62 }
 0x2f4   : > { %1761 = vmatmul.mubr.msk.f32.vlgmr.msra.gmra.mrb[18].mxu1 %vm689_vm1, %v1567_v20  ;;  %vm520_vm1 = vcmp.ge.s32.totalorder %v2069_v33, %v517_v52 }
 0x2f5   : > { %1764 = vmatpush3.msk.msra.mxu1 %vm980_vm5, %v1566_v48  ;;  %1765 = vmatprep.mubr.msk.f32.mxu1 %vm2329_vm13, %v1920_v62  ;;  %vm2198_vm3 = vmand %vm520_vm1, %vm529_vm2  ;;  %vm523_vm1 = vcmp.ge.s32.totalorder %v514_v58, %v517_v52  ;;  %vm532_vm2 = vcmp.lt.s32.totalorder %v514_v58, %v526_v51 }
 0x2f6   : > { %vm2212_vm12 = vmand %vm523_vm1, %vm532_vm2  ;;  %v1570_v13 = vsel %vm2198_vm3, 1.0, %v1920_v62 }
 0x2f7   : > { %vm2222_vm13 = vmand %vm525_vm10, %vm534_vm11  ;;  %v1573_v19 = vsel %vm2212_vm12, 1.0, %v1920_v62 }
 0x2f8   : > { %1766 = vmatmul.mubr.msk.f32.vlgmr.msra.gmra.mrb[20].mxu1 %vm2328_vm6, %v970_v49  ;;  %vm2218_vm6 = vmand %vm524_vm4, %vm533_vm7  ;;  %v1575_v21 = vsel %vm2222_vm13, 1.0, %v1920_v62 }
 0x2f9   : > { %1770 = vmatprep.mubr.msk.f32.mxu1 %vm1054_vm15, %v1568_v54  ;;  %v1574_v20 = vsel %vm2218_vm6, 1.0, %v1920_v62 }
 0x3c7   : > { %v966_v2 = vpop.f32.mrb[18].mxu1 }
 0x3c8   : > { %v971_v4 = vmul.f32 0.015625, %v966_v2  ;;  %v1762_v7 = vpop.f32.mrb[19].mxu1 }
 0x3ca   : > { %v973_v8 = vsub.f32 %v971_v4, %v972_v3 }
 0x3cb   : > { %v1050_v11 = vpop.f32.mrb[20].mxu1 }
 0x3cc   : > { %v1767_v12 = vpop.f32.mrb[21].mxu1  ;;  %1768 = vmatprep.subr.msk.mxu1 %vm404_vm8, %v1050_v11  ;;  %v974_v14 = vadd.f32 1e-05, %v973_v8 }
 0x3cd   : > { %1769 = vmatpush3.msk.msra.mxu1 %vm404_vm8, %v1050_v11 }
 0x3ce   : > { %1771 = vmatmul.mubr.msk.f32.vlgmr.msra.gmra.mrb[22].mxu1 %vm1054_vm15, %v1569_v5  ;;  %1782 = vmatprep.subr.mxu1 %v1920_v62  ;;  %1873 = vrsqrt.f32 %v974_v14 }
 0x3cf   : > { %1773 = vmatprep.mubr.msk.f32.mxu1 %vm1054_vm15, %v1570_v13  ;;  %1783 = vmatpush3.msk.msra.mxu1 %vm980_vm5, %v1566_v48  ;;  %vm2348_vm5 = vmmov 0  }
 0x3d2   : > { %1774 = vmatmul.mubr.msk.f32.gmra.mrb[24].mxu1 %vm1054_vm15, %v1571_v16 }
 0x3d3   : > { %1776 = vmatprep.mubr.msk.f32.mxu1 %vm1054_vm15, %v1572_v18 }
 0x3d6   : > { %1777 = vmatmul.mubr.msk.f32.gmra.mrb[26].mxu1 %vm1054_vm15, %v1573_v19 }
 0x3d7   : > { %1779 = vmatprep.mubr.msk.f32.mxu1 %vm1054_vm15, %v1574_v20 }
 0x3d8   : > { %v1874_v22 = vpop.eup %1873 }
 0x3da   : > { %1780 = vmatmul.mubr.msk.f32.gmra.mrb[28].mxu1 %vm1054_vm15, %v1575_v21 }
 0x3db   : > { %1784 = vmatprep.mubr.msk.f32.mxu1 %vm2348_vm5, %v1920_v62 }
 0x3de   : > { %1785 = vmatmul.mubr.msk.f32.vlgmr.msra.gmra.mrb[30].mxu1 %vm2349_vm0, %v1874_v22 }
 0x3df   : > { %1789 = vmatprep.mubr.msk.f32.mxu1 %vm1054_vm15, %v1568_v54 }
 0x4a1   : > { %v1772_v23 = vpop.f32.mrb[22].mxu1 }
 0x4a2   : > { %v1148_v15 = vpop.f32.mrb[23].mxu1  ;;  %v1369_v62 = vsub.f32 %v2089_v41, %v1772_v23 }
 0x4a3   : > { %v1368_v31 = vsub.f32 %v2087_v38, %v1148_v15 }
 0x4a5   : > { %v1775_v17 = vpop.f32.mrb[24].mxu1 }
 0x4a6   : > { %v1158_v24 = vpop.f32.mrb[25].mxu1  ;;  %v1371_v40 = vsub.f32 %v2097_v47, %v1775_v17 }
 0x4a7   : > { %v1370_v43 = vsub.f32 %v2095_v44, %v1158_v24 }
 0x4a9   : > { %v1778_v25 = vpop.f32.mrb[26].mxu1 }
 0x4aa   : > { %v1168_v26 = vpop.f32.mrb[27].mxu1  ;;  %v1373_v52 = vsub.f32 %v2105_v53, %v1778_v25 }
 0x4ab   : > { %v1372_v6 = vsub.f32 %v2103_v50, %v1168_v26 }
 0x4ad   : > { %v1781_v27 = vpop.f32.mrb[28].mxu1 }
 0x4ae   : > { %v1178_v28 = vpop.f32.mrb[29].mxu1  ;;  %v1375_v53 = vsub.f32 %v2113_v59, %v1781_v27 }
 0x4af   : > { %v1374_v50 = vsub.f32 %v2111_v56, %v1178_v28 }
 0x4b1   : > { %v1256_v29 = vpop.f32.mrb[30].mxu1 }
 0x4b2   : > { %v1786_v30 = vpop.f32.mrb[31].mxu1  ;;  %1787 = vmatprep.subr.msk.mxu1 %vm404_vm8, %v1256_v29 }
 0x4b3   : > { %1788 = vmatpush3.msk.msra.mxu1 %vm404_vm8, %v1256_v29  ;;  %vm2350_vm8 = vcmask 195584  }
 0x4b4   : > { %1790 = vmatmul.mubr.msk.f32.vlgmr.msra.gmra.mrb[32].mxu1 %vm1054_vm15, %v1569_v5  ;;  %vm2351_vm12 = vmmov %vm2350_vm8 }
 0x4b5   : > { %1792 = vmatprep.mubr.msk.f32.mxu1 %vm1054_vm15, %v1570_v13  ;;  %vm2352_vm13 = vmmov %vm2350_vm8 }
 0x4b6   : > { %vm2353_vm6 = vmmov %vm2350_vm8 }
 0x4b7   : > { %vm2355_vm3 = vmmov %vm2353_vm6 }
 0x4b8   : > { %1793 = vmatmul.mubr.msk.f32.gmra.mrb[34].mxu1 %vm1054_vm15, %v1571_v16  ;;  %vm2356_vm9 = vmmov %vm2355_vm3 }
 0x4b9   : > { %1795 = vmatprep.mubr.msk.f32.mxu1 %vm1054_vm15, %v1572_v18  ;;  %vm2357_vm14 = vmmov %vm2355_vm3 }
 0x4bc   : > { %1796 = vmatmul.mubr.msk.f32.gmra.mrb[36].mxu1 %vm1054_vm15, %v1573_v19 }
 0x4bd   : > { %1798 = vmatprep.mubr.msk.f32.mxu1 %vm1054_vm15, %v1574_v20 }
 0x4c0   : > { %1799 = vmatmul.mubr.msk.f32.gmra.mrb[38].mxu1 %vm1054_vm15, %v1575_v21  ;;  %vm2354_vm15 = vmmov %vm2353_vm6 }
 0x587   : > { %v1791_v32 = vpop.f32.mrb[32].mxu1 }
 0x588   : > { %v1377_v35 = vmul.f32 %v1791_v32, %v1369_v62  ;;  %v1329_v36 = vpop.f32.mrb[33].mxu1 }
 0x589   : > { %v1376_v39 = vmul.f32 %v1368_v31, %v1329_v36 }
 0x58a   : > { %v1392_v42 = vmul.f32 %v1622_v34, %v1377_v35 }
 0x58b   : > { %v1391_v41 = vmul.f32 %v1622_v34, %v1376_v39  ;;  %v1794_v45 = vpop.f32.mrb[34].mxu1 }
 0x58c   : > { %v2281_v38 = vadd.f32 %v1623_v37, %v1392_v42  ;;  %v1379_v46 = vmul.f32 %v1794_v45, %v1371_v40  ;;  %v1339_v48 = vpop.f32.mrb[35].mxu1 }
 0x58d   : > { %v2283_v49 = vadd.f32 %v1623_v37, %v1391_v41  ;;  %v1378_v51 = vmul.f32 %v1370_v43, %v1339_v48 }
 0x58e   : > { %v1415_v54 = vsub.f32 0.0, %v2281_v38  ;;  %v1394_v55 = vmul.f32 %v1622_v34, %v1379_v46 }
 0x58f   : > { %v1414_v47 = vsub.f32 0.0, %v2283_v49  ;;  %v1393_v9 = vmul.f32 %v1622_v34, %v1378_v51  ;;  %v1797_v44 = vpop.f32.mrb[36].mxu1 }
 0x590   : > { %v1424_v10 = vmul.f32 1.442695, %v1415_v54  ;;  %v2289_v57 = vadd.f32 %v1623_v37, %v1394_v55  ;;  %v1381_v58 = vmul.f32 %v1797_v44, %v1373_v52  ;;  %v1349_v60 = vpop.f32.mrb[37].mxu1 }
 0x591   : > { %v1422_v33 = vmul.f32 1.442695, %v1414_v47  ;;  %v2291_v61 = vadd.f32 %v1623_v37, %v1393_v9  ;;  %v1380_v63 = vmul.f32 %v1372_v6, %v1349_v60 }
 0x592   : > { %1875 = vpow2.f32 %v1424_v10  ;;  %v1417_v0 = vsub.f32 0.0, %v2289_v57  ;;  %v1396_v1 = vmul.f32 %v1622_v34, %v1381_v58 }
 0x593   : > { %1877 = vpow2.f32 %v1422_v33  ;;  %v1416_v2 = vsub.f32 0.0, %v2291_v61  ;;  %v1395_v3 = vmul.f32 %v1622_v34, %v1380_v63  ;;  %v1800_v4 = vpop.f32.mrb[38].mxu1 }
 0x594   : > { %v1428_v7 = vmul.f32 1.442695, %v1417_v0  ;;  %v2297_v8 = vadd.f32 %v1623_v37, %v1396_v1  ;;  %v1383_v11 = vmul.f32 %v1800_v4, %v1375_v53  ;;  %v1359_v5 = vpop.f32.mrb[39].mxu1 }
 0x595   : > { %v1426_v12 = vmul.f32 1.442695, %v1416_v2  ;;  %v1410_v13 = vadd.f32 %v1623_v37, %v1395_v3  ;;  %v1382_v14 = vmul.f32 %v1374_v50, %v1359_v5 }
 0x596   : > { %1879 = vpow2.f32 %v1428_v7  ;;  %v1419_v59 = vsub.f32 0.0, %v2297_v8  ;;  %v1398_v16 = vmul.f32 %v1622_v34, %v1383_v11 }
 0x597   : > { %1881 = vpow2.f32 %v1426_v12  ;;  %v1418_v18 = vsub.f32 0.0, %v1410_v13  ;;  %v1397_v56 = vmul.f32 %v1622_v34, %v1382_v14 }
 0x598   : > { %v1432_v19 = vmul.f32 1.442695, %v1419_v59  ;;  %v1413_v20 = vadd.f32 %v1623_v37, %v1398_v16 }
 0x599   : > { %v1430_v21 = vmul.f32 1.442695, %v1418_v18  ;;  %v1412_v22 = vadd.f32 %v1623_v37, %v1397_v56 }
 0x59a   : > { %1883 = vpow2.f32 %v1432_v19  ;;  %v1421_v23 = vsub.f32 0.0, %v1413_v20 }
 0x59b   : > { %1885 = vpow2.f32 %v1430_v21  ;;  %v1420_v15 = vsub.f32 0.0, %v1412_v22 }
 0x59c   : > { %v1876_v17 = vpop.eup %1875  ;;  %v1436_v24 = vmul.f32 1.442695, %v1421_v23 }
 0x59d   : > { %v1878_v25 = vpop.eup %1877  ;;  %v1439_v26 = vadd.f32 1.0, %v1876_v17  ;;  %v1434_v27 = vmul.f32 1.442695, %v1420_v15 }
 0x59e   : > { %v1438_v28 = vadd.f32 1.0, %v1878_v25  ;;  %1887 = vpow2.f32 %v1436_v24 }
 0x59f   : > { %1889 = vrcp.f32 %v1439_v26 }
 0x5a0   : > { %v1880_v29 = vpop.eup %1879  ;;  %1891 = vrcp.f32 %v1438_v28 }
 0x5a1   : > { %v1882_v30 = vpop.eup %1881  ;;  %v1441_v62 = vadd.f32 1.0, %v1880_v29  ;;  %1893 = vpow2.f32 %v1434_v27 }
 0x5a2   : > { %v1440_v31 = vadd.f32 1.0, %v1882_v30 }
 0x5a3   : > { %1895 = vrcp.f32 %v1441_v62 }
 0x5a4   : > { %v1884_v32 = vpop.eup %1883  ;;  %1897 = vrcp.f32 %v1440_v31 }
 0x5a5   : > { %v1886_v34 = vpop.eup %1885  ;;  %v1443_v35 = vadd.f32 1.0, %v1884_v32 }
 0x5a6   : > { %v1442_v36 = vadd.f32 1.0, %v1886_v34 }
 0x5a7   : > { %1899 = vrcp.f32 %v1443_v35 }
 0x5a8   : > { %v1888_v37 = vpop.eup %1887  ;;  %1901 = vrcp.f32 %v1442_v36 }
 0x5a9   : > { %v1890_v39 = vpop.eup %1889  ;;  %v1445_v40 = vadd.f32 1.0, %v1888_v37 }
 0x5aa   : > { %v1892_v42 = vpop.eup %1891  ;;  %v1455_v43 = vmul.f32 %v1890_v39, %v2281_v38 }
 0x5ab   : > { %v1894_v41 = vpop.eup %1893  ;;  %v1454_v45 = vmul.f32 %v1892_v42, %v2283_v49  ;;  %1903 = vrcp.f32 %v1445_v40 }
 0x5ac   : > { %1463 = vst.msk [vmem:[%s229_s14 + $0x8] sm:$0xff] %vm2350_vm8, %v1455_v43  ;;  %v1444_v46 = vadd.f32 1.0, %v1894_v41 }
 0x5ad   : > { %v1896_v48 = vpop.eup %1895  ;;  %1462 = vst.msk [vmem:[%s229_s14] sm:$0xff] %vm2351_vm12, %v1454_v45 }
 0x5ae   : > { %v1898_v51 = vpop.eup %1897  ;;  %v1457_v52 = vmul.f32 %v1896_v48, %v2289_v57  ;;  %1905 = vrcp.f32 %v1444_v46 }
 0x5af   : > { %v1456_v54 = vmul.f32 %v1898_v51, %v2291_v61 }
 0x5b0   : > { %1465 = vst.msk [vmem:[%s229_s14 + $0x18] sm:$0xff] %vm2352_vm13, %v1457_v52 }
 0x5b1   : > { %v1900_v55 = vpop.eup %1899  ;;  %1464 = vst.msk [vmem:[%s229_s14 + $0x10] sm:$0xff] %vm2353_vm6, %v1456_v54 }
 0x5b2   : > { %v1902_v38 = vpop.eup %1901  ;;  %v1459_v49 = vmul.f32 %v1900_v55, %v2297_v8 }
 0x5b3   : > { %v1458_v6 = vmul.f32 %v1902_v38, %v1410_v13 }
 0x5b4   : > { %1467 = vst.msk [vmem:[%s229_s14 + $0x28] sm:$0xff] %vm2354_vm15, %v1459_v49 }
 0x5b5   : > { %v1904_v47 = vpop.eup %1903  ;;  %1466 = vst.msk [vmem:[%s229_s14 + $0x20] sm:$0xff] %vm2355_vm3, %v1458_v6 }
 0x5b6   : > { %v1461_v9 = vmul.f32 %v1904_v47, %v1413_v20 }
 0x5b8   : > { %v1906_v44 = vpop.eup %1905  ;;  %1469 = vst.msk [vmem:[%s229_s14 + $0x38] sm:$0xff] %vm2356_vm9, %v1461_v9 }
 0x5b9   : > { %v1460_v10 = vmul.f32 %v1906_v44, %v1412_v22 }
 0x5bb   : > { %1468 = vst.msk [vmem:[%s229_s14 + $0x30] sm:$0xff] %vm2357_vm14, %v1460_v10 }
 0x5bc PF: > { %s15_s18 = sadd.s32 1, %s1913_s18  }
 0x5bd   : > { %p12_p4 = scmp.ge.s32.totalorder %s15_s18, 4  }
 0x5bf   :  { %14 = sbr.rel (!%p12_p4) target bundleno = 1 (0x1), region = 70 }

// kernel: atoca_forward.7
= control target key start
LH: loop header
LB: loop body
LE: loop exit
PB: predicated region body
PF: predicated region fallthrough
CT: control target
= control target key end

     0   :  { %s650_s18 = smov 0   ;;  %s757_s0 = inlined_call_operand.vmem [shape: f32[128,24], index: 0, kind: input, shape index: {}]   ;;  %s758_s1 = inlined_call_operand.vmem [shape: f32[1,24], index: 1, kind: input, shape index: {}]   ;;  %s759_s2 = inlined_call_operand.vmem [shape: f32[1,24], index: 2, kind: input, shape index: {}]   ;;  %s760_s3 = inlined_call_operand.vmem [shape: bf16[24,72], index: 3, kind: input, shape index: {}]   ;;  %s761_s4 = inlined_call_operand.vmem [shape: f32[1,72], index: 4, kind: input, shape index: {}]   ;;  %s762_s5 = inlined_call_operand.vmem [shape: f32[128,72], index: 5, kind: output, shape index: {}]  }
   0x1 LB: > { %s542_s19 = sadd.s32 4294967295, %s618_s18   ;;  %p546_p0 = scmp.ge.s32.totalorder %s618_s18, 1  ;;  %s618_s18 = sphi %s650_s18, %s15_s18  }
   0x2   : > { %p188_p1 = scmp.lt.s32.totalorder %s618_s18, 3 }
   0x4   : > { %p189_p2 = pnand %p546_p0, %p188_p1 }
   0x5   : > { %s547_s20 = sshll.u32 (!%p189_p2), %s542_s19, 3  ;;  %vm237_vm0 = vcmask (!%p189_p2), 195584   ;;  %v594_v56 = vld [vmem:[%s760_s3] sm:$0xff] (!%p189_p2)   ;;  %v595_v57 = vld [vmem:[%s760_s3 + $0x8] ss:$0 sps:$4 sm:$0xff] (!%p189_p2)   ;;  %vm408_vm1 = vcmask (!%p189_p2), 1043456  }
   0x6   : > { %192 = sbr.rel (%p189_p2) target bundleno = 566 (0x236), region = 40  ;;  %p217_p3 = scmp.lt.s32.totalorder (!%p189_p2), %s547_s20, 15  ;;  %568 = vmatprep.subr.bf16.mxu0 (!%p189_p2), %v594_v56  ;;  %580 = vmatprep.subr.bf16.mxu1 (!%p189_p2), %v594_v56  ;;  %v410_v58 = vsel (!%p189_p2), %vm408_vm1, %v595_v57, 0  ;;  %vm477_vm2 = vcmask (!%p189_p2), 588800  }
   0x7   : > { %569 = vmatpush3.bf16.msra.mxu0 (!%p189_p2), %v594_v56  ;;  %582 = vmatpush3.bf16.msra.mxu1 (!%p189_p2), %v594_v56 }
   0x8   : > { %584 = vmatprep.subr.msk.bf16.mxu0 (!%p189_p2), %vm408_vm1, %v595_v57  ;;  %585 = vmatprep.subr.msk.bf16.mxu1 (!%p189_p2), %vm408_vm1, %v595_v57 }
   0xb   : > { %571 = vmatpush3.bf16.msra.mxu0 (!%p189_p2), %v410_v58  ;;  %583 = vmatpush3.bf16.msra.mxu1 (!%p189_p2), %v410_v58 }
   0xd   : > { %s764_s20 = smov (!%p217_p3, %s547_s20), 15 }
   0xe   : > { %s548_s21 = sshll.u32 %s764_s20, 3 }
   0xf   : > { %s220_s24 = scalar_lea.vmem %s757_s0, %s548_s21  ;;  %s226_s12 = scalar_lea.vmem %s762_s5, %s548_s21 }
  0x10   : > { %v229_v0 = vld [vmem:[%s220_s24] sm:$0xff]  ;;  %v230_v2 = vld [vmem:[%s220_s24 + $0x8] sm:$0xff]  ;;  %v231_v8 = vld [vmem:[%s220_s24 + $0x10] sm:$0xff] }
  0x11   : > { %v233_v1 = vld [vmem:[%s220_s24 + $0x20] sm:$0xff]  ;;  %v238_v3 = vsel %vm237_vm0, %v229_v0, 0.0  ;;  %v234_v5 = vld [vmem:[%s220_s24 + $0x28] sm:$0xff]  ;;  %v241_v6 = vsel %vm237_vm0, %v230_v2, 0.0  ;;  %v232_v9 = vld [vmem:[%s220_s24 + $0x18] sm:$0xff]  ;;  %v244_v10 = vsel %vm237_vm0, %v231_v8, 0.0 }
  0x12   : > { %v250_v4 = vsel %vm237_vm0, %v233_v1, 0.0  ;;  %239 = vadd.xlane.f32.xlu0 %v238_v3  ;;  %v253_v7 = vsel %vm237_vm0, %v234_v5, 0.0  ;;  %v247_v11 = vsel %vm237_vm0, %v232_v9, 0.0  ;;  %v235_v12 = vld [vmem:[%s220_s24 + $0x30] sm:$0xff]  ;;  %v236_v13 = vld [vmem:[%s220_s24 + $0x38] sm:$0xff] }
  0x13   : > { %251 = vadd.xlane.f32.xlu1 %v250_v4  ;;  %v256_v14 = vsel %vm237_vm0, %v235_v12, 0.0  ;;  %v259_v15 = vsel %vm237_vm0, %v236_v13, 0.0 }
  0x16   : > { %242 = vadd.xlane.f32.xlu0 %v241_v6 }
  0x17   : > { %254 = vadd.xlane.f32.xlu1 %v253_v7 }
  0x1a   : > { %245 = vadd.xlane.f32.xlu0 %v244_v10 }
  0x1b   : > { %248 = vadd.xlane.f32.xlu1 %v247_v11 }
  0x1e   : > { %257 = vadd.xlane.f32.xlu0 %v256_v14 }
  0x1f   : > { %260 = vadd.xlane.f32.xlu1 %v259_v15 }
  0x9f   : > { %v240_v16 = vpop.xlane.xlu0 %239 }
  0xa0   : > { %v252_v17 = vpop.xlane.xlu1 %251  ;;  %v263_v18 = vmul.f32 0.041666668, %v240_v16 }
  0xa1   : > { %v267_v19 = vmul.f32 0.041666668, %v252_v17 }
  0xa2   : > { %v674_v20 = vsub.f32 %v229_v0, %v263_v18 }
  0xa3   : > { %v676_v21 = vsub.f32 %v233_v1, %v267_v19  ;;  %v243_v22 = vpop.xlane.xlu0 %242 }
  0xa4   : > { %v255_v23 = vpop.xlane.xlu1 %254  ;;  %v264_v24 = vmul.f32 0.041666668, %v243_v22  ;;  %v279_v26 = vmul.f32 %v674_v20, %v674_v20  ;;  %v551_v22 = vld [vmem:[%s758_s1] ss:$0 sm:$0xff] }
  0xa5   : > { %v268_v25 = vmul.f32 0.041666668, %v255_v23  ;;  %v283_v27 = vmul.f32 %v676_v21, %v676_v21 }
  0xa6   : > { %v682_v28 = vsub.f32 %v230_v2, %v264_v24  ;;  %v287_v30 = vsel %vm237_vm0, %v279_v26, 0.0 }
  0xa7   : > { %v684_v29 = vsub.f32 %v234_v5, %v268_v25  ;;  %288 = vadd.xlane.f32.xlu0 %v287_v30  ;;  %v246_v31 = vpop.xlane.xlu0 %245  ;;  %v299_v33 = vsel %vm237_vm0, %v283_v27, 0.0  ;;  %v552_v30 = vld [vmem:[%s759_s2] ss:$0 sm:$0xff] }
  0xa8   : > { %v249_v32 = vpop.xlane.xlu1 %248  ;;  %v265_v34 = vmul.f32 0.041666668, %v246_v31  ;;  %v280_v36 = vmul.f32 %v682_v28, %v682_v28 }
  0xa9   : > { %v266_v35 = vmul.f32 0.041666668, %v249_v32  ;;  %v284_v37 = vmul.f32 %v684_v29, %v684_v29 }
  0xaa   : > { %v692_v38 = vsub.f32 %v231_v8, %v265_v34  ;;  %v290_v40 = vsel %vm237_vm0, %v280_v36, 0.0 }
  0xab   : > { %v694_v39 = vsub.f32 %v232_v9, %v266_v35  ;;  %300 = vadd.xlane.f32.xlu0 %v299_v33  ;;  %291 = vadd.xlane.f32.xlu1 %v290_v40  ;;  %v258_v41 = vpop.xlane.xlu0 %257  ;;  %v302_v43 = vsel %vm237_vm0, %v284_v37, 0.0 }
  0xac   : > { %v261_v42 = vpop.xlane.xlu1 %260  ;;  %v269_v44 = vmul.f32 0.041666668, %v258_v41  ;;  %v281_v46 = vmul.f32 %v692_v38, %v692_v38 }
  0xad   : > { %v270_v45 = vmul.f32 0.041666668, %v261_v42  ;;  %v282_v47 = vmul.f32 %v694_v39, %v694_v39 }
  0xae   : > { %v702_v48 = vsub.f32 %v235_v12, %v269_v44  ;;  %v293_v50 = vsel %vm237_vm0, %v281_v46, 0.0 }
  0xaf   : > { %v704_v49 = vsub.f32 %v236_v13, %v270_v45  ;;  %303 = vadd.xlane.f32.xlu1 %v302_v43  ;;  %294 = vadd.xlane.f32.xlu0 %v293_v50  ;;  %v296_v51 = vsel %vm237_vm0, %v282_v47, 0.0 }
  0xb0   : > { %v285_v52 = vmul.f32 %v702_v48, %v702_v48 }
  0xb1   : > { %v286_v53 = vmul.f32 %v704_v49, %v704_v49 }
  0xb2   : > { %v305_v54 = vsel %vm237_vm0, %v285_v52, 0.0 }
  0xb3   : > { %297 = vadd.xlane.f32.xlu1 %v296_v51  ;;  %306 = vadd.xlane.f32.xlu0 %v305_v54  ;;  %v308_v55 = vsel %vm237_vm0, %v286_v53, 0.0 }
  0xb7   : > { %309 = vadd.xlane.f32.xlu1 %v308_v55 }
 0x134   : > { %v289_v59 = vpop.xlane.xlu0 %288 }
 0x135   : > { %v311_v60 = vmul.f32 0.041666668, %v289_v59 }
 0x137   : > { %v319_v61 = vadd.f32 1e-05, %v311_v60 }
 0x138   : > { %v292_v62 = vpop.xlane.xlu1 %291  ;;  %v301_v63 = vpop.xlane.xlu0 %300 }
 0x139   : > { %596 = vrsqrt.f32 %v319_v61  ;;  %v312_v0 = vmul.f32 0.041666668, %v292_v62  ;;  %v315_v1 = vmul.f32 0.041666668, %v301_v63 }
 0x13b   : > { %v320_v2 = vadd.f32 1e-05, %v312_v0  ;;  %v323_v3 = vadd.f32 1e-05, %v315_v1 }
 0x13c   : > { %v304_v4 = vpop.xlane.xlu1 %303  ;;  %v295_v5 = vpop.xlane.xlu0 %294 }
 0x13d   : > { %598 = vrsqrt.f32 %v320_v2  ;;  %v316_v6 = vmul.f32 0.041666668, %v304_v4  ;;  %v313_v7 = vmul.f32 0.041666668, %v295_v5 }
 0x13e   : > { %600 = vrsqrt.f32 %v323_v3 }
 0x13f   : > { %v324_v8 = vadd.f32 1e-05, %v316_v6  ;;  %v321_v9 = vadd.f32 1e-05, %v313_v7 }
 0x140   : > { %v298_v10 = vpop.xlane.xlu1 %297  ;;  %v307_v11 = vpop.xlane.xlu0 %306 }
 0x141   : > { %602 = vrsqrt.f32 %v324_v8  ;;  %v314_v12 = vmul.f32 0.041666668, %v298_v10  ;;  %v317_v13 = vmul.f32 0.041666668, %v307_v11 }
 0x142   : > { %604 = vrsqrt.f32 %v321_v9 }
 0x143   : > { %v597_v14 = vpop.eup %596  ;;  %v322_v15 = vadd.f32 1e-05, %v314_v12  ;;  %v325_v16 = vadd.f32 1e-05, %v317_v13 }
 0x144   : > { %v310_v17 = vpop.xlane.xlu1 %309  ;;  %v335_v18 = vmul.f32 %v597_v14, %v674_v20 }
 0x145   : > { %606 = vrsqrt.f32 %v322_v15  ;;  %v318_v19 = vmul.f32 0.041666668, %v310_v17 }
 0x146   : > { %608 = vrsqrt.f32 %v325_v16  ;;  %v350_v27 = vmul.f32 %v551_v22, %v335_v18 }
 0x147   : > { %v599_v23 = vpop.eup %598  ;;  %v326_v24 = vadd.f32 1e-05, %v318_v19 }
 0x148   : > { %v601_v25 = vpop.eup %600  ;;  %v336_v26 = vmul.f32 %v599_v23, %v682_v28  ;;  %v365_v34 = vadd.f32 %v552_v30, %v350_v27 }
 0x149   : > { %610 = vrsqrt.f32 %v326_v24  ;;  %v339_v20 = vmul.f32 %v601_v25, %v676_v21 }
 0x14a   : > { %v351_v31 = vmul.f32 %v551_v22, %v336_v26 }
 0x14b   : > { %v603_v32 = vpop.eup %602  ;;  %v354_v37 = vmul.f32 %v551_v22, %v339_v20 }
 0x14c   : > { %v605_v33 = vpop.eup %604  ;;  %v366_v35 = vadd.f32 %v552_v30, %v351_v31  ;;  %v340_v36 = vmul.f32 %v603_v32, %v684_v29 }
 0x14d   : > { %v337_v40 = vmul.f32 %v605_v33, %v692_v38  ;;  %v369_v45 = vadd.f32 %v552_v30, %v354_v37 }
 0x14e   : > { %v373_v41 = vpack.c.bf16 %v366_v35, %v365_v34  ;;  %v355_v28 = vmul.f32 %v551_v22, %v340_v36 }
 0x14f   : > { %v607_v42 = vpop.eup %606  ;;  %v352_v46 = vmul.f32 %v551_v22, %v337_v40 }
 0x150   : > { %v609_v43 = vpop.eup %608  ;;  %v338_v44 = vmul.f32 %v607_v42, %v694_v39  ;;  %572 = vmatprep.mubr.msk.bf16.mxu0 %vm237_vm0, %v373_v41  ;;  %v370_v21 = vadd.f32 %v552_v30, %v355_v28 }
 0x151   : > { %v341_v47 = vmul.f32 %v609_v43, %v702_v48  ;;  %v367_v38 = vadd.f32 %v552_v30, %v352_v46  ;;  %v553_v48 = vld [vmem:[%s761_s4] ss:$0 sm:$0xff] }
 0x152   : > { %v375_v50 = vpack.c.bf16 %v370_v21, %v369_v45  ;;  %v353_v51 = vmul.f32 %v551_v22, %v338_v44 }
 0x153   : > { %v611_v29 = vpop.eup %610  ;;  %v356_v54 = vmul.f32 %v551_v22, %v341_v47 }
 0x154   : > { %v342_v52 = vmul.f32 %v611_v29, %v704_v49  ;;  %576 = vmatprep.mubr.msk.bf16.mxu1 %vm237_vm0, %v375_v50  ;;  %v368_v53 = vadd.f32 %v552_v30, %v353_v51 }
 0x155   : > { %v371_v56 = vadd.f32 %v552_v30, %v356_v54 }
 0x156   : > { %v374_v55 = vpack.c.bf16 %v368_v53, %v367_v38  ;;  %v357_v39 = vmul.f32 %v551_v22, %v342_v52 }
 0x158   : > { %573 = vmatmul.mubr.msk.bf16.vlgmr.msra.gmra.mrb[0].mxu0 %vm237_vm0, %v374_v55  ;;  %v372_v57 = vadd.f32 %v552_v30, %v357_v39 }
 0x15a   : > { %v376_v58 = vpack.c.bf16 %v372_v57, %v371_v56 }
 0x15c   : > { %577 = vmatmul.mubr.msk.bf16.vlgmr.msra.gmra.mrb[0].mxu1 %vm237_vm0, %v376_v58 }
 0x22b   : > { %v574_v49 = vpop.f32.mrb[0].mxu0 }
 0x22c   : > { %v455_v59 = vadd.f32 %v574_v49, %v553_v48  ;;  %v446_v60 = vpop.f32.mrb[1].mxu0 }
 0x22d   : > { %v447_v61 = vadd.f32 %v553_v48, %v446_v60  ;;  %v575_v62 = vpop.f32.mrb[2].mxu0 }
 0x22e   : > { %480 = vst.msk [vmem:[%s226_s12 + $0x10] sm:$0xff] %vm477_vm2, %v455_v59  ;;  %v458_v63 = vadd.f32 %v575_v62, %v553_v48  ;;  %v449_v0 = vpop.f32.mrb[3].mxu0 }
 0x22f   : > { %478 = vst.msk [vmem:[%s226_s12] sm:$0xff] %vm477_vm2, %v447_v61  ;;  %v450_v1 = vadd.f32 %v553_v48, %v449_v0  ;;  %v578_v2 = vpop.f32.mrb[0].mxu1 }
 0x230   : > { %481 = vst.msk [vmem:[%s226_s12 + $0x18] sm:$0xff] %vm477_vm2, %v458_v63  ;;  %v471_v3 = vadd.f32 %v578_v2, %v553_v48  ;;  %v462_v4 = vpop.f32.mrb[1].mxu1 }
 0x231   : > { %479 = vst.msk [vmem:[%s226_s12 + $0x8] sm:$0xff] %vm477_vm2, %v450_v1  ;;  %v463_v5 = vadd.f32 %v553_v48, %v462_v4  ;;  %v579_v6 = vpop.f32.mrb[2].mxu1 }
 0x232   : > { %484 = vst.msk [vmem:[%s226_s12 + $0x30] sm:$0xff] %vm477_vm2, %v471_v3  ;;  %v474_v7 = vadd.f32 %v579_v6, %v553_v48  ;;  %v465_v8 = vpop.f32.mrb[3].mxu1 }
 0x233   : > { %482 = vst.msk [vmem:[%s226_s12 + $0x20] sm:$0xff] %vm477_vm2, %v463_v5  ;;  %v466_v9 = vadd.f32 %v553_v48, %v465_v8 }
 0x234   : > { %485 = vst.msk [vmem:[%s226_s12 + $0x38] sm:$0xff] %vm477_vm2, %v474_v7 }
 0x235   : > { %483 = vst.msk [vmem:[%s226_s12 + $0x28] sm:$0xff] %vm477_vm2, %v466_v9 }
 0x236 PF: > { %s15_s18 = sadd.s32 1, %s618_s18  }
 0x237   : > { %p12_p4 = scmp.ge.s32.totalorder %s15_s18, 4  }
 0x239   :  { %14 = sbr.rel (!%p12_p4) target bundleno = 1 (0x1), region = 70 }

// kernel: atoca_forward.8
= control target key start
LH: loop header
LB: loop body
LE: loop exit
PB: predicated region body
PF: predicated region fallthrough
CT: control target
= control target key end

     0   :  { %s1916_s15 = smov 0   ;;  %s2403_s0 = inlined_call_operand.vmem [shape: f32[48,16,4], index: 0, kind: input, shape index: {}]   ;;  %s2404_s1 = inlined_call_operand.vmem [shape: f32[48,36,4], index: 1, kind: input, shape index: {}]   ;;  %s2405_s2 = inlined_call_operand.vmem [shape: f32[48,36,4], index: 2, kind: input, shape index: {}]   ;;  %s2406_s3 = inlined_call_operand.vmem [shape: f32[6,16,36], index: 3, kind: input, shape index: {}]   ;;  %s2407_s4 = inlined_call_operand.vmem [shape: f32[48,16,4], index: 4, kind: output, shape index: {}]  }
   0x1 LB: > { %s1922_s16 = sadd.s32 4294967295, %s1887_s15   ;;  %p1548_p0 = scmp.ge.s32.totalorder %s1887_s15, 1  ;;  %s1887_s15 = sphi %s1916_s15, %s14_s15  }
   0x2   : > { %p198_p1 = scmp.lt.s32.totalorder %s1887_s15, 7 }
   0x4   : > { %p199_p2 = pnand %p1548_p0, %p198_p1 }
   0x5   : > { %s1549_s17 = sshll.u32 (!%p199_p2), %s1922_s16, 3  ;;  %v1889_v0 = vmov (!%p199_p2), 0.0   ;;  %vm1890_vm0 = vmmov (!%p199_p2), 0   ;;  %vm447_vm1 = vcmask (!%p199_p2), 31744   ;;  %p264_p4 = scmp.lt.s32.totalorder (!%p199_p2), %s1922_s16, 5  ;;  %vm872_vm2 = vcmask (!%p199_p2), 293888  }
   0x6   : > { %202 = sbr.rel (%p199_p2) target bundleno = 867 (0x363), region = 36  ;;  %1646 = vmatprep.subr.bf16.mxu0 (!%p199_p2), %v1889_v0  ;;  %1656 = vmatprep.subr.bf16.mxu1 (!%p199_p2), %v1889_v0  ;;  %p244_p3 = scmp.lt.s32.totalorder (!%p199_p2), %s1549_s17, 47  ;;  %vm1060_vm3 = vcmask (!%p199_p2), 1041408  }
   0x7   : > { %1652 = vmatprep.mubr.msk.bf16.mxu0 (!%p199_p2), %vm1890_vm0, %v1889_v0  ;;  %1662 = vmatprep.mubr.msk.bf16.mxu1 (!%p199_p2), %vm1890_vm0, %v1889_v0 }
   0xd   : > { %s2409_s17 = smov (!%p244_p3, %s1549_s17), 47  ;;  %s2411_s16 = smov (!%p264_p4, %s1922_s16), 5 }
   0xe   : > { %s1806_s18 = smul.u32 40, %s2409_s17  ;;  %s1579_s22 = sshll.u32 %s2409_s17, 4 }
   0xf   : > { %s1966_s25 = scalar_lea.vmem %s2403_s0, %s1579_s22  ;;  %s1580_s26 = sshll.u32 %s2411_s16, 4 }
  0x10   : > { %s1941_s21 = scalar_lea.vmem %s2404_s1, %s1806_s18  ;;  %v277_v21 = vld [vmem:[%s1966_s25] sm:$0xff]  ;;  %v278_v22 = vld [vmem:[%s1966_s25 + $0x8] sm:$0xff]  ;;  %v279_v24 = vld [vmem:[%s1966_s25 + $0x10] sm:$0xff]  ;;  %s268_s29 = scalar_lea.vmem %s2406_s3, %s1580_s26 }
  0x11   : > { %v317_v1 = vld [vmem:[%s1941_s21] sm:$0xff]  ;;  %v318_v2 = vld [vmem:[%s1941_s21 + $0x8] sm:$0xff]  ;;  %v323_v5 = vld [vmem:[%s1941_s21 + $0x30] sm:$0xff]  ;;  %v293_v29 = vmul.f32 0.5, %v277_v21  ;;  %v294_v30 = vmul.f32 0.5, %v278_v22  ;;  %v295_v33 = vmul.f32 0.5, %v279_v24  ;;  %s2197_s6 = scalar_lea.vmem %s2405_s2, %s1806_s18  ;;  %s2366_s9 = scalar_lea.vmem %s2407_s4, %s1579_s22 }
  0x12   : > { %v322_v3 = vld [vmem:[%s1941_s21 + $0x28] sm:$0xff]  ;;  %v357_v4 = vpack.c.bf16 %v318_v2, %v317_v1  ;;  %v319_v7 = vld [vmem:[%s1941_s21 + $0x10] sm:$0xff]  ;;  %v320_v8 = vld [vmem:[%s1941_s21 + $0x18] sm:$0xff] }
  0x13   : > { %v360_v6 = vpack.c.bf16 %v323_v5, %v322_v3  ;;  %v324_v10 = vld [vmem:[%s1941_s21 + $0x38] sm:$0xff]  ;;  %v325_v11 = vld [vmem:[%s1941_s21 + $0x40] sm:$0xff]  ;;  %v358_v13 = vpack.c.bf16 %v320_v8, %v319_v7  ;;  %v326_v18 = vld [vmem:[%s1941_s21 + $0x48] sm:$0xf]  ;;  %v309_v37 = vpack.c.bf16 %v294_v30, %v293_v29 }
  0x14   : > { %v452_v9 = vsel %vm447_vm1, %v357_v4, 0  ;;  %v361_v14 = vpack.c.bf16 %v325_v11, %v324_v10  ;;  %v321_v17 = vld [vmem:[%s1941_s21 + $0x20] sm:$0xf]  ;;  %v362_v20 = vpack.c.bf16 %v326_v18, %v326_v18  ;;  %v280_v25 = vld [vmem:[%s1966_s25 + $0x18] sm:$0xff]  ;;  %v327_v27 = vld [vmem:[%s1941_s21 + $0x50] sm:$0xff] }
  0x15   : > { %1647 = vmatpush3.bf16.xpose.msra.mxu0 %v452_v9  ;;  %v505_v12 = vsel %vm447_vm1, %v360_v6, 0  ;;  %v455_v15 = vsel %vm447_vm1, %v358_v13, 0  ;;  %v359_v19 = vpack.c.bf16 %v321_v17, %v321_v17  ;;  %v328_v28 = vld [vmem:[%s1941_s21 + $0x58] sm:$0xff]  ;;  %v333_v32 = vld [vmem:[%s1941_s21 + $0x80] sm:$0xff]  ;;  %v296_v34 = vmul.f32 0.5, %v280_v25  ;;  %v330_v42 = vld [vmem:[%s1941_s21 + $0x68] sm:$0xff] }
  0x16   : > { %1657 = vmatpush3.bf16.xpose.msra.mxu1 %v505_v12  ;;  %1648 = vmatprep.subr.bf16.mxu0 %v1889_v0  ;;  %v508_v16 = vsel %vm447_vm1, %v361_v14, 0  ;;  %v511_v26 = vsel %vm447_vm1, %v362_v20, 0  ;;  %v332_v31 = vld [vmem:[%s1941_s21 + $0x78] sm:$0xff]  ;;  %v363_v35 = vpack.c.bf16 %v328_v28, %v327_v27  ;;  %v329_v41 = vld [vmem:[%s1941_s21 + $0x60] sm:$0xff]  ;;  %v334_v43 = vld [vmem:[%s1941_s21 + $0x88] sm:$0xff] }
  0x17   : > { %1658 = vmatprep.subr.bf16.mxu1 %v1889_v0  ;;  %v458_v23 = vsel %vm447_vm1, %v359_v19, 0  ;;  %v366_v36 = vpack.c.bf16 %v333_v32, %v332_v31  ;;  %v310_v38 = vpack.c.bf16 %v296_v34, %v295_v33  ;;  %v335_v44 = vld [vmem:[%s1941_s21 + $0x90] sm:$0xff]  ;;  %v364_v45 = vpack.c.bf16 %v330_v42, %v329_v41  ;;  %v336_v50 = vld [vmem:[%s1941_s21 + $0x98] sm:$0xf]  ;;  %v281_v53 = vld [vmem:[%s1966_s25 + $0x20] sm:$0xff] }
  0x18   : > { %v558_v39 = vsel %vm447_vm1, %v363_v35, 0  ;;  %v367_v46 = vpack.c.bf16 %v335_v44, %v334_v43  ;;  %v331_v49 = vld [vmem:[%s1941_s21 + $0x70] sm:$0xf]  ;;  %v368_v52 = vpack.c.bf16 %v336_v50, %v336_v50  ;;  %v282_v54 = vld [vmem:[%s1966_s25 + $0x28] sm:$0xff]  ;;  %v284_v57 = vld [vmem:[%s1966_s25 + $0x38] sm:$0xff]  ;;  %v297_v61 = vmul.f32 0.5, %v281_v53 }
  0x19   : > { %v611_v40 = vsel %vm447_vm1, %v366_v36, 0  ;;  %v561_v47 = vsel %vm447_vm1, %v364_v45, 0  ;;  %v365_v51 = vpack.c.bf16 %v331_v49, %v331_v49  ;;  %v283_v56 = vld [vmem:[%s1966_s25 + $0x30] sm:$0xff]  ;;  %v337_v59 = vld [vmem:[%s1941_s21 + $0xa0] sm:$0xff]  ;;  %v338_v60 = vld [vmem:[%s1941_s21 + $0xa8] sm:$0xff]  ;;  %v298_v62 = vmul.f32 0.5, %v282_v54 }
  0x1a   : > { %v614_v48 = vsel %vm447_vm1, %v367_v46, 0  ;;  %v617_v58 = vsel %vm447_vm1, %v368_v52, 0  ;;  %v342_v63 = vld [vmem:[%s1941_s21 + $0xc8] sm:$0xff]  ;;  %v343_v1 = vld [vmem:[%s1941_s21 + $0xd0] sm:$0xff]  ;;  %v299_v2 = vmul.f32 0.5, %v283_v56  ;;  %v300_v3 = vmul.f32 0.5, %v284_v57 }
  0x1b   : > { %v564_v55 = vsel %vm447_vm1, %v365_v51, 0  ;;  %v369_v4 = vpack.c.bf16 %v338_v60, %v337_v59  ;;  %v372_v5 = vpack.c.bf16 %v343_v1, %v342_v63  ;;  %v311_v6 = vpack.c.bf16 %v298_v62, %v297_v61  ;;  %v339_v10 = vld [vmem:[%s1941_s21 + $0xb0] sm:$0xff]  ;;  %v340_v11 = vld [vmem:[%s1941_s21 + $0xb8] sm:$0xff]  ;;  %v345_v13 = vld [vmem:[%s1941_s21 + $0xe0] sm:$0xff] }
  0x1c   : > { %v312_v7 = vpack.c.bf16 %v300_v3, %v299_v2  ;;  %v344_v12 = vld [vmem:[%s1941_s21 + $0xd8] sm:$0xff]  ;;  %v370_v14 = vpack.c.bf16 %v340_v11, %v339_v10  ;;  %v341_v18 = vld [vmem:[%s1941_s21 + $0xc0] sm:$0xf]  ;;  %v346_v19 = vld [vmem:[%s1941_s21 + $0xe8] sm:$0xf] }
  0x1d   : > { %1649 = vmatpush3.bf16.xpose.msra.mxu0 %v455_v15  ;;  %v664_v8 = vsel %vm447_vm1, %v369_v4, 0  ;;  %v717_v9 = vsel %vm447_vm1, %v372_v5, 0  ;;  %v373_v15 = vpack.c.bf16 %v345_v13, %v344_v12  ;;  %v371_v20 = vpack.c.bf16 %v341_v18, %v341_v18  ;;  %v285_v22 = vld [vmem:[%s1966_s25 + $0x40] sm:$0xff]  ;;  %v287_v25 = vld [vmem:[%s1966_s25 + $0x50] sm:$0xff]  ;;  %v348_v29 = vld [vmem:[%s1941_s21 + $0xf8] sm:$0xff] }
  0x1e   : > { %1659 = vmatpush3.bf16.xpose.msra.mxu1 %v508_v16  ;;  %1650 = vmatprep.subr.bf16.mxu0 %v1889_v0  ;;  %v667_v16 = vsel %vm447_vm1, %v370_v14, 0  ;;  %v374_v21 = vpack.c.bf16 %v346_v19, %v346_v19  ;;  %v347_v28 = vld [vmem:[%s1941_s21 + $0xf0] sm:$0xff]  ;;  %v301_v30 = vmul.f32 0.5, %v285_v22  ;;  %v352_v32 = vld [vmem:[%s1941_s21 + $0x118] sm:$0xff]  ;;  %v353_v33 = vld [vmem:[%s1941_s21 + $0x120] sm:$0xff]  ;;  %v303_v34 = vmul.f32 0.5, %v287_v25 }
  0x1f   : > { %1660 = vmatprep.subr.bf16.mxu1 %v1889_v0  ;;  %v720_v17 = vsel %vm447_vm1, %v373_v15, 0  ;;  %v670_v24 = vsel %vm447_vm1, %v371_v20, 0  ;;  %v375_v36 = vpack.c.bf16 %v348_v29, %v347_v28  ;;  %v349_v42 = vld [vmem:[%s1941_s21 + $0x100] sm:$0xff]  ;;  %v350_v43 = vld [vmem:[%s1941_s21 + $0x108] sm:$0xff]  ;;  %v355_v45 = vld [vmem:[%s1941_s21 + $0x130] sm:$0xff] }
  0x20   : > { %v723_v27 = vsel %vm447_vm1, %v374_v21, 0  ;;  %v354_v44 = vld [vmem:[%s1941_s21 + $0x128] sm:$0xff]  ;;  %v376_v46 = vpack.c.bf16 %v350_v43, %v349_v42  ;;  %v351_v50 = vld [vmem:[%s1941_s21 + $0x110] sm:$0xf]  ;;  %v356_v51 = vld [vmem:[%s1941_s21 + $0x138] sm:$0xf] }
  0x21   : > { %v377_v52 = vpack.c.bf16 %v351_v50, %v351_v50  ;;  %v380_v53 = vpack.c.bf16 %v356_v51, %v356_v51  ;;  %v289_v54 = vld [vmem:[%s1966_s25 + $0x60] sm:$0xff]  ;;  %v291_v57 = vld [vmem:[%s1966_s25 + $0x70] sm:$0xff]  ;;  %v2086_v5 = vld [vmem:[%s268_s29 + $0x8] sm:$0xff] }
  0x22   : > { %v305_v60 = vmul.f32 0.5, %v289_v54  ;;  %v307_v62 = vmul.f32 0.5, %v291_v57  ;;  %v2084_v3 = vld [vmem:[%s268_s29] sm:$0xff] }
  0x23   : > { %v776_v56 = vsel %vm447_vm1, %v377_v52, 0  ;;  %v829_v59 = vsel %vm447_vm1, %v380_v53, 0 }
  0x25   : > { %1651 = vmatpush3.bf16.xpose.msra.mxu0 %v458_v23  ;;  %v286_v23 = vld [vmem:[%s1966_s25 + $0x48] sm:$0xff] }
  0x26   : > { %1661 = vmatpush3.bf16.xpose.msra.mxu1 %v511_v26  ;;  %1666 = vmatprep.subr.bf16.mxu0 %v1889_v0  ;;  %v288_v26 = vld [vmem:[%s1966_s25 + $0x58] sm:$0xff]  ;;  %v302_v31 = vmul.f32 0.5, %v286_v23 }
  0x27   : > { %1676 = vmatprep.subr.bf16.mxu1 %v1889_v0  ;;  %v304_v35 = vmul.f32 0.5, %v288_v26 }
  0x2c   : > { %1653 = vmatmul.mubr.msk.bf16.vlgmr.msra.gmra.mrb[0].mxu0 %vm447_vm1, %v309_v37  ;;  %v378_v37 = vpack.c.bf16 %v353_v33, %v352_v32 }
  0x2d   : > { %1663 = vmatmul.mubr.msk.bf16.vlgmr.msra.gmra.mrb[0].mxu1 %vm447_vm1, %v310_v38  ;;  %1667 = vmatpush3.bf16.xpose.msra.mxu0 %v558_v39  ;;  %v313_v38 = vpack.c.bf16 %v302_v31, %v301_v30  ;;  %v314_v39 = vpack.c.bf16 %v304_v35, %v303_v34 }
  0x2e   : > { %1677 = vmatpush3.bf16.xpose.msra.mxu1 %v611_v40  ;;  %1668 = vmatprep.subr.bf16.mxu0 %v1889_v0  ;;  %v770_v40 = vsel %vm447_vm1, %v375_v36, 0  ;;  %v823_v41 = vsel %vm447_vm1, %v378_v37, 0 }
  0x2f   : > { %1678 = vmatprep.subr.bf16.mxu1 %v1889_v0  ;;  %1672 = vmatprep.mubr.msk.bf16.mxu0 %vm1890_vm0, %v1889_v0 }
  0x30   : > { %1682 = vmatprep.mubr.msk.bf16.mxu1 %vm1890_vm0, %v1889_v0 }
  0x35   : > { %1669 = vmatpush3.bf16.xpose.msra.mxu0 %v561_v47  ;;  %v379_v47 = vpack.c.bf16 %v355_v45, %v354_v44 }
  0x36   : > { %1679 = vmatpush3.bf16.xpose.msra.mxu1 %v614_v48  ;;  %1670 = vmatprep.subr.bf16.mxu0 %v1889_v0  ;;  %v773_v48 = vsel %vm447_vm1, %v376_v46, 0 }
  0x37   : > { %1680 = vmatprep.subr.bf16.mxu1 %v1889_v0  ;;  %v826_v49 = vsel %vm447_vm1, %v379_v47, 0 }
  0x3d   : > { %1671 = vmatpush3.bf16.xpose.msra.mxu0 %v564_v55  ;;  %v290_v55 = vld [vmem:[%s1966_s25 + $0x68] sm:$0xff] }
  0x3e   : > { %1681 = vmatpush3.bf16.xpose.msra.mxu1 %v617_v58  ;;  %1686 = vmatprep.subr.bf16.mxu0 %v1889_v0  ;;  %v292_v58 = vld [vmem:[%s1966_s25 + $0x78] sm:$0xff]  ;;  %v306_v61 = vmul.f32 0.5, %v290_v55 }
  0x3f   : > { %1696 = vmatprep.subr.bf16.mxu1 %v1889_v0  ;;  %v308_v63 = vmul.f32 0.5, %v292_v58 }
  0x40   : > { %v315_v1 = vpack.c.bf16 %v306_v61, %v305_v60 }
  0x41   : > { %v316_v2 = vpack.c.bf16 %v308_v63, %v307_v62 }
  0x44   : > { %1673 = vmatmul.mubr.msk.bf16.vlgmr.msra.gmra.mrb[4].mxu0 %vm447_vm1, %v311_v6 }
  0x45   : > { %1687 = vmatpush3.bf16.xpose.msra.mxu0 %v664_v8  ;;  %1683 = vmatmul.mubr.msk.bf16.vlgmr.msra.gmra.mrb[4].mxu1 %vm447_vm1, %v312_v7 }
  0x46   : > { %1697 = vmatpush3.bf16.xpose.msra.mxu1 %v717_v9  ;;  %1688 = vmatprep.subr.bf16.mxu0 %v1889_v0 }
  0x47   : > { %1698 = vmatprep.subr.bf16.mxu1 %v1889_v0  ;;  %1692 = vmatprep.mubr.msk.bf16.mxu0 %vm1890_vm0, %v1889_v0 }
  0x48   : > { %1702 = vmatprep.mubr.msk.bf16.mxu1 %vm1890_vm0, %v1889_v0 }
  0x4d   : > { %1689 = vmatpush3.bf16.xpose.msra.mxu0 %v667_v16 }
  0x4e   : > { %1699 = vmatpush3.bf16.xpose.msra.mxu1 %v720_v17  ;;  %1690 = vmatprep.subr.bf16.mxu0 %v1889_v0 }
  0x4f   : > { %1700 = vmatprep.subr.bf16.mxu1 %v1889_v0 }
  0x55   : > { %1691 = vmatpush3.bf16.xpose.msra.mxu0 %v670_v24 }
  0x56   : > { %1701 = vmatpush3.bf16.xpose.msra.mxu1 %v723_v27  ;;  %1706 = vmatprep.subr.bf16.mxu0 %v1889_v0 }
  0x57   : > { %1716 = vmatprep.subr.bf16.mxu1 %v1889_v0 }
  0x5c   : > { %1693 = vmatmul.mubr.msk.bf16.vlgmr.msra.gmra.mrb[8].mxu0 %vm447_vm1, %v313_v38 }
  0x5d   : > { %1707 = vmatpush3.bf16.xpose.msra.mxu0 %v770_v40  ;;  %1703 = vmatmul.mubr.msk.bf16.vlgmr.msra.gmra.mrb[8].mxu1 %vm447_vm1, %v314_v39 }
  0x5e   : > { %1717 = vmatpush3.bf16.xpose.msra.mxu1 %v823_v41  ;;  %1708 = vmatprep.subr.bf16.mxu0 %v1889_v0 }
  0x5f   : > { %1718 = vmatprep.subr.bf16.mxu1 %v1889_v0  ;;  %1712 = vmatprep.mubr.msk.bf16.mxu0 %vm1890_vm0, %v1889_v0 }
  0x60   : > { %1722 = vmatprep.mubr.msk.bf16.mxu1 %vm1890_vm0, %v1889_v0 }
  0x65   : > { %1709 = vmatpush3.bf16.xpose.msra.mxu0 %v773_v48 }
  0x66   : > { %1719 = vmatpush3.bf16.xpose.msra.mxu1 %v826_v49  ;;  %1710 = vmatprep.subr.bf16.mxu0 %v1889_v0 }
  0x67   : > { %1720 = vmatprep.subr.bf16.mxu1 %v1889_v0 }
  0x6d   : > { %1711 = vmatpush3.bf16.xpose.msra.mxu0 %v776_v56 }
  0x6e   : > { %1721 = vmatpush3.bf16.xpose.msra.mxu1 %v829_v59  ;;  %1726 = vmatprep.subr.bf16.mxu0 %v1889_v0 }
  0x6f   : > { %1736 = vmatprep.subr.bf16.mxu1 %v1889_v0 }
  0x74   : > { %1713 = vmatmul.mubr.msk.bf16.vlgmr.msra.gmra.mrb[12].mxu0 %vm447_vm1, %v315_v1 }
  0x75   : > { %1723 = vmatmul.mubr.msk.bf16.vlgmr.msra.gmra.mrb[12].mxu1 %vm447_vm1, %v316_v2  ;;  %1732 = vmatprep.mubr.msk.bf16.mxu0 %vm1890_vm0, %v1889_v0 }
  0x76   : > { %1742 = vmatprep.mubr.msk.bf16.mxu1 %vm1890_vm0, %v1889_v0 }
  0xff   : > { %v494_v4 = vpop.f32.mrb[0].mxu0 }
 0x100   : > { %v2089_v6 = vadd.f32 %v494_v4, %v2084_v3  ;;  %v547_v7 = vpop.f32.mrb[0].mxu1  ;;  %v1654_v8 = vpop.f32.mrb[1].mxu0 }
 0x101   : > { %v2092_v9 = vadd.f32 %v547_v7, %v2084_v3  ;;  %v497_v10 = vpop.f32.mrb[2].mxu0  ;;  %v1664_v11 = vpop.f32.mrb[1].mxu1 }
 0x102   : > { %v2095_v12 = vadd.f32 %v497_v10, %v2086_v5  ;;  %v1655_v13 = vpop.f32.mrb[3].mxu0  ;;  %v550_v14 = vpop.f32.mrb[2].mxu1  ;;  %v873_v15 = vsel %vm872_vm2, %v2089_v6, -inf }
 0x103   : > { %v879_v16 = vsel %vm872_vm2, %v2092_v9, -inf  ;;  %v2102_v17 = vadd.f32 %v550_v14, %v2086_v5  ;;  %874 = vmax.xlane.f32.xlu0 %v873_v15  ;;  %v1665_v18 = vpop.f32.mrb[3].mxu1 }
 0x104   : > { %880 = vmax.xlane.f32.xlu1 %v879_v16  ;;  %v876_v20 = vsel %vm872_vm2, %v2095_v12, -inf }
 0x105   : > { %v882_v19 = vsel %vm872_vm2, %v2102_v17, -inf }
 0x107   : > { %877 = vmax.xlane.f32.xlu0 %v876_v20 }
 0x108   : > { %883 = vmax.xlane.f32.xlu1 %v882_v19 }
 0x117   : > { %v600_v21 = vpop.f32.mrb[4].mxu0 }
 0x118   : > { %v2109_v22 = vadd.f32 %v600_v21, %v2084_v3  ;;  %v1674_v23 = vpop.f32.mrb[5].mxu0  ;;  %v653_v24 = vpop.f32.mrb[4].mxu1 }
 0x119   : > { %v603_v25 = vpop.f32.mrb[6].mxu0  ;;  %v2112_v26 = vadd.f32 %v653_v24, %v2084_v3  ;;  %v1684_v27 = vpop.f32.mrb[5].mxu1 }
 0x11a   : > { %v2115_v28 = vadd.f32 %v603_v25, %v2086_v5  ;;  %v1675_v29 = vpop.f32.mrb[7].mxu0  ;;  %v656_v30 = vpop.f32.mrb[6].mxu1  ;;  %v885_v31 = vsel %vm872_vm2, %v2109_v22, -inf }
 0x11b   : > { %v2120_v32 = vadd.f32 %v656_v30, %v2086_v5  ;;  %886 = vmax.xlane.f32.xlu0 %v885_v31  ;;  %v1685_v33 = vpop.f32.mrb[7].mxu1  ;;  %v891_v35 = vsel %vm872_vm2, %v2112_v26, -inf }
 0x11c   : > { %v888_v34 = vsel %vm872_vm2, %v2115_v28, -inf }
 0x11d   : > { %889 = vmax.xlane.f32.xlu1 %v888_v34  ;;  %v894_v36 = vsel %vm872_vm2, %v2120_v32, -inf }
 0x11f   : > { %892 = vmax.xlane.f32.xlu0 %v891_v35 }
 0x121   : > { %895 = vmax.xlane.f32.xlu1 %v894_v36 }
 0x12f   : > { %v706_v37 = vpop.f32.mrb[8].mxu0 }
 0x130   : > { %v2129_v38 = vadd.f32 %v706_v37, %v2084_v3  ;;  %v1694_v39 = vpop.f32.mrb[9].mxu0  ;;  %v759_v40 = vpop.f32.mrb[8].mxu1 }
 0x131   : > { %v709_v41 = vpop.f32.mrb[10].mxu0  ;;  %v2132_v42 = vadd.f32 %v759_v40, %v2084_v3  ;;  %v1704_v43 = vpop.f32.mrb[9].mxu1 }
 0x132   : > { %v2135_v44 = vadd.f32 %v709_v41, %v2086_v5  ;;  %v1695_v45 = vpop.f32.mrb[11].mxu0  ;;  %v762_v46 = vpop.f32.mrb[10].mxu1  ;;  %v897_v47 = vsel %vm872_vm2, %v2129_v38, -inf }
 0x133   : > { %v2140_v48 = vadd.f32 %v762_v46, %v2086_v5  ;;  %898 = vmax.xlane.f32.xlu0 %v897_v47  ;;  %v1705_v49 = vpop.f32.mrb[11].mxu1  ;;  %v903_v51 = vsel %vm872_vm2, %v2132_v42, -inf  ;;  %v383_v47 = vld [vmem:[%s2197_s6 + $0x10] sm:$0xff] }
 0x134   : > { %v900_v50 = vsel %vm872_vm2, %v2135_v44, -inf  ;;  %v384_v49 = vld [vmem:[%s2197_s6 + $0x18] sm:$0xff] }
 0x135   : > { %901 = vmax.xlane.f32.xlu1 %v900_v50  ;;  %v906_v52 = vsel %vm872_vm2, %v2140_v48, -inf  ;;  %v386_v50 = vld [vmem:[%s2197_s6 + $0x28] sm:$0xff] }
 0x137   : > { %904 = vmax.xlane.f32.xlu0 %v903_v51 }
 0x139   : > { %907 = vmax.xlane.f32.xlu1 %v906_v52  ;;  %v422_v52 = vpack.c.bf16 %v384_v49, %v383_v47 }
 0x147   : > { %v812_v53 = vpop.f32.mrb[12].mxu0 }
 0x148   : > { %v2149_v54 = vadd.f32 %v812_v53, %v2084_v3  ;;  %v1714_v55 = vpop.f32.mrb[13].mxu0  ;;  %v865_v56 = vpop.f32.mrb[12].mxu1  ;;  %v387_v53 = vld [vmem:[%s2197_s6 + $0x30] sm:$0xff] }
 0x149   : > { %v2152_v57 = vadd.f32 %v865_v56, %v2084_v3  ;;  %v815_v58 = vpop.f32.mrb[14].mxu0  ;;  %v1724_v59 = vpop.f32.mrb[13].mxu1  ;;  %v424_v56 = vpack.c.bf16 %v387_v53, %v386_v50 }
 0x14a   : > { %v2155_v60 = vadd.f32 %v815_v58, %v2086_v5  ;;  %v1715_v61 = vpop.f32.mrb[15].mxu0  ;;  %v868_v62 = vpop.f32.mrb[14].mxu1  ;;  %v909_v63 = vsel %vm872_vm2, %v2149_v54, -inf  ;;  %v385_v59 = vld [vmem:[%s2197_s6 + $0x20] sm:$0xf] }
 0x14b   : > { %v1725_v1 = vpop.f32.mrb[15].mxu1  ;;  %910 = vmax.xlane.f32.xlu0 %v909_v63  ;;  %v2160_v2 = vadd.f32 %v868_v62, %v2086_v5  ;;  %v915_v3 = vsel %vm872_vm2, %v2152_v57, -inf  ;;  %1737 = vmatpush3.bf16.msra.mxu1 %v424_v56  ;;  %v423_v62 = vpack.c.bf16 %v385_v59, %v385_v59  ;;  %v388_v63 = vld [vmem:[%s2197_s6 + $0x38] sm:$0xff]  ;;  %v391_v59 = vld [vmem:[%s2197_s6 + $0x50] sm:$0xff] }
 0x14c   : > { %v912_v4 = vsel %vm872_vm2, %v2155_v60, -inf  ;;  %v389_v1 = vld [vmem:[%s2197_s6 + $0x40] sm:$0xff]  ;;  %1738 = vmatprep.subr.bf16.mxu1 %v1889_v0 }
 0x14d   : > { %913 = vmax.xlane.f32.xlu1 %v912_v4  ;;  %v918_v7 = vsel %vm872_vm2, %v2160_v2, -inf }
 0x14f   : > { %916 = vmax.xlane.f32.xlu0 %v915_v3  ;;  %v425_v3 = vpack.c.bf16 %v389_v1, %v388_v63 }
 0x151   : > { %919 = vmax.xlane.f32.xlu1 %v918_v7  ;;  %v1062_v7 = vsel %vm1060_vm3, %v423_v62, 0  ;;  %1739 = vmatpush3.bf16.msra.mxu1 %v425_v3  ;;  %v392_v62 = vld [vmem:[%s2197_s6 + $0x58] sm:$0xff] }
 0x152   : > { %1740 = vmatprep.subr.bf16.mxu1 %v1889_v0 }
 0x190   : > { %v875_v8 = vpop.xlane.xlu0 %874 }
 0x191   : > { %v881_v10 = vpop.xlane.xlu1 %880  ;;  %v921_v11 = vsub.f32 %v2089_v6, %v875_v8 }
 0x192   : > { %v923_v13 = vsub.f32 %v2092_v9, %v881_v10  ;;  %v390_v10 = vld [vmem:[%s2197_s6 + $0x48] sm:$0xf] }
 0x193   : > { %v937_v5 = vmul.f32 1.442695, %v921_v11 }
 0x194   : > { %v941_v14 = vmul.f32 1.442695, %v923_v13  ;;  %v878_v15 = vpop.xlane.xlu0 %877  ;;  %v426_v13 = vpack.c.bf16 %v390_v10, %v390_v10  ;;  %v397_v10 = vld [vmem:[%s2197_s6 + $0x80] sm:$0xff] }
 0x195   : > { %1817 = vpow2.f32 %v937_v5  ;;  %v884_v16 = vpop.xlane.xlu1 %883  ;;  %v922_v18 = vsub.f32 %v2095_v12, %v878_v15 }
 0x196   : > { %v924_v19 = vsub.f32 %v2102_v17, %v884_v16  ;;  %1819 = vpow2.f32 %v941_v14  ;;  %v1109_v16 = vsel %vm1060_vm3, %v426_v13, 0 }
 0x197   : > { %v939_v20 = vmul.f32 1.442695, %v922_v18  ;;  %1741 = vmatpush3.bf16.msra.mxu1 %v1109_v16 }
 0x198   : > { %v943_v21 = vmul.f32 1.442695, %v924_v19  ;;  %1756 = vmatprep.subr.bf16.mxu1 %v1889_v0 }
 0x199   : > { %1821 = vpow2.f32 %v939_v20 }
 0x19a   : > { %1823 = vpow2.f32 %v943_v21 }
 0x19f   : > { %v2172_v23 = vpop.eup %1817 }
 0x1a0   : > { %v969_v6 = vsel %vm872_vm2, %v2172_v23, 0.0  ;;  %v2176_v9 = vpop.eup %1819 }
 0x1a1   : > { %970 = vadd.xlane.f32.xlu0 %v969_v6  ;;  %v975_v12 = vsel %vm872_vm2, %v2176_v9, 0.0 }
 0x1a3   : > { %v2178_v24 = vpop.eup %1821 }
 0x1a4   : > { %v972_v17 = vsel %vm872_vm2, %v2178_v24, 0.0  ;;  %v2184_v25 = vpop.eup %1823 }
 0x1a5   : > { %976 = vadd.xlane.f32.xlu0 %v975_v12  ;;  %973 = vadd.xlane.f32.xlu1 %v972_v17  ;;  %v978_v29 = vsel %vm872_vm2, %v2184_v25, 0.0 }
 0x1a8   : > { %v887_v27 = vpop.xlane.xlu0 %886 }
 0x1a9   : > { %v925_v30 = vsub.f32 %v2109_v22, %v887_v27  ;;  %979 = vadd.xlane.f32.xlu1 %v978_v29  ;;  %v381_v22 = vld [vmem:[%s2197_s6] sm:$0xff] }
 0x1aa   : > { %v890_v31 = vpop.xlane.xlu1 %889 }
 0x1ab   : > { %v945_v33 = vmul.f32 1.442695, %v925_v30  ;;  %v926_v34 = vsub.f32 %v2115_v28, %v890_v31 }
 0x1ac   : > { %v893_v35 = vpop.xlane.xlu0 %892 }
 0x1ad   : > { %1825 = vpow2.f32 %v945_v33  ;;  %v947_v36 = vmul.f32 1.442695, %v926_v34  ;;  %v927_v37 = vsub.f32 %v2112_v26, %v893_v35  ;;  %v382_v26 = vld [vmem:[%s2197_s6 + $0x8] sm:$0xff] }
 0x1ae   : > { %v896_v39 = vpop.xlane.xlu1 %895  ;;  %v421_v28 = vpack.c.bf16 %v382_v26, %v381_v22 }
 0x1af   : > { %1827 = vpow2.f32 %v947_v36  ;;  %v949_v40 = vmul.f32 1.442695, %v927_v37  ;;  %v928_v41 = vsub.f32 %v2120_v32, %v896_v39 }
 0x1b0   : > { %1727 = vmatpush3.bf16.msra.mxu0 %v421_v28 }
 0x1b1   : > { %1829 = vpow2.f32 %v949_v40  ;;  %v951_v43 = vmul.f32 1.442695, %v928_v41  ;;  %1728 = vmatprep.subr.bf16.mxu0 %v1889_v0 }
 0x1b3   : > { %1831 = vpow2.f32 %v951_v43 }
 0x1b4   : > { %1729 = vmatpush3.bf16.msra.mxu0 %v422_v52 }
 0x1b5   : > { %1730 = vmatprep.subr.bf16.mxu0 %v1889_v0 }
 0x1b7   : > { %v2201_v45 = vpop.eup %1825 }
 0x1b8   : > { %v981_v32 = vsel %vm872_vm2, %v2201_v45, 0.0  ;;  %1731 = vmatpush3.bf16.msra.mxu0 %v1062_v7  ;;  %v427_v7 = vpack.c.bf16 %v392_v62, %v391_v59  ;;  %v409_v59 = vld [vmem:[%s2197_s6 + $0xe0] sm:$0xff]  ;;  %v410_v62 = vld [vmem:[%s2197_s6 + $0xe8] sm:$0xf] }
 0x1b9   : > { %v2205_v46 = vpop.eup %1827  ;;  %982 = vadd.xlane.f32.xlu0 %v981_v32  ;;  %1746 = vmatprep.subr.bf16.mxu0 %v1889_v0 }
 0x1ba   : > { %v984_v51 = vsel %vm872_vm2, %v2205_v46, 0.0 }
 0x1bb   : > { %v2214_v55 = vpop.eup %1829  ;;  %985 = vadd.xlane.f32.xlu1 %v984_v51 }
 0x1bc   : > { %v987_v58 = vsel %vm872_vm2, %v2214_v55, 0.0 }
 0x1bd   : > { %v2219_v61 = vpop.eup %1831  ;;  %988 = vadd.xlane.f32.xlu0 %v987_v58 }
 0x1be   : > { %v990_v4 = vsel %vm872_vm2, %v2219_v61, 0.0 }
 0x1bf   : > { %991 = vadd.xlane.f32.xlu1 %v990_v4 }
 0x1c0   : > { %v899_v8 = vpop.xlane.xlu0 %898 }
 0x1c1   : > { %v929_v11 = vsub.f32 %v2129_v38, %v899_v8  ;;  %v396_v8 = vld [vmem:[%s2197_s6 + $0x78] sm:$0xff] }
 0x1c2   : > { %v902_v5 = vpop.xlane.xlu1 %901 }
 0x1c3   : > { %v953_v14 = vmul.f32 1.442695, %v929_v11  ;;  %v930_v15 = vsub.f32 %v2135_v44, %v902_v5  ;;  %v393_v5 = vld [vmem:[%s2197_s6 + $0x60] sm:$0xff] }
 0x1c4   : > { %v905_v18 = vpop.xlane.xlu0 %904 }
 0x1c5   : > { %1833 = vpow2.f32 %v953_v14  ;;  %v955_v19 = vmul.f32 1.442695, %v930_v15  ;;  %v931_v20 = vsub.f32 %v2132_v42, %v905_v18  ;;  %v394_v14 = vld [vmem:[%s2197_s6 + $0x68] sm:$0xff]  ;;  %v395_v18 = vld [vmem:[%s2197_s6 + $0x70] sm:$0xf] }
 0x1c6   : > { %v908_v21 = vpop.xlane.xlu1 %907 }
 0x1c7   : > { %1835 = vpow2.f32 %v955_v19  ;;  %v957_v38 = vmul.f32 1.442695, %v931_v20  ;;  %v932_v6 = vsub.f32 %v2140_v48, %v908_v21  ;;  %v398_v20 = vld [vmem:[%s2197_s6 + $0x88] sm:$0xff]  ;;  %v399_v21 = vld [vmem:[%s2197_s6 + $0x90] sm:$0xff] }
 0x1c9   : > { %1837 = vpow2.f32 %v957_v38  ;;  %v959_v12 = vmul.f32 1.442695, %v932_v6  ;;  %v429_v38 = vpack.c.bf16 %v395_v18, %v395_v18  ;;  %v400_v6 = vld [vmem:[%s2197_s6 + $0x98] sm:$0xf] }
 0x1cb   : > { %1839 = vpow2.f32 %v959_v12 }
 0x1cf   : > { %v2237_v17 = vpop.eup %1833 }
 0x1d0   : > { %v993_v44 = vsel %vm872_vm2, %v2237_v17, 0.0 }
 0x1d1   : > { %v2241_v27 = vpop.eup %1835  ;;  %994 = vadd.xlane.f32.xlu0 %v993_v44  ;;  %v432_v44 = vpack.c.bf16 %v400_v6, %v400_v6  ;;  %v415_v6 = vld [vmem:[%s2197_s6 + $0x110] sm:$0xf] }
 0x1d2   : > { %v996_v42 = vsel %vm872_vm2, %v2241_v27, 0.0 }
 0x1d3   : > { %v2245_v29 = vpop.eup %1837  ;;  %997 = vadd.xlane.f32.xlu1 %v996_v42  ;;  %v1156_v42 = vsel %vm1060_vm3, %v429_v38, 0 }
 0x1d4   : > { %v999_v48 = vsel %vm872_vm2, %v2245_v29, 0.0 }
 0x1d5   : > { %v2249_v30 = vpop.eup %1839  ;;  %1000 = vadd.xlane.f32.xlu0 %v999_v48 }
 0x1d6   : > { %v1002_v31 = vsel %vm872_vm2, %v2249_v30, 0.0 }
 0x1d7   : > { %1003 = vadd.xlane.f32.xlu1 %v1002_v31 }
 0x1d8   : > { %v911_v33 = vpop.xlane.xlu0 %910 }
 0x1d9   : > { %v933_v34 = vsub.f32 %v2149_v54, %v911_v33  ;;  %v1203_v33 = vsel %vm1060_vm3, %v432_v44, 0  ;;  %v441_v44 = vpack.c.bf16 %v415_v6, %v415_v6 }
 0x1da   : > { %v914_v35 = vpop.xlane.xlu1 %913 }
 0x1db   : > { %v961_v36 = vmul.f32 1.442695, %v933_v34  ;;  %v934_v37 = vsub.f32 %v2155_v60, %v914_v35  ;;  %v401_v35 = vld [vmem:[%s2197_s6 + $0xa0] sm:$0xff] }
 0x1dc   : > { %v917_v39 = vpop.xlane.xlu0 %916 }
 0x1dd   : > { %1841 = vpow2.f32 %v961_v36  ;;  %v963_v40 = vmul.f32 1.442695, %v934_v37  ;;  %v935_v41 = vsub.f32 %v2152_v57, %v917_v39  ;;  %v402_v36 = vld [vmem:[%s2197_s6 + $0xa8] sm:$0xff] }
 0x1de   : > { %v920_v43 = vpop.xlane.xlu1 %919 }
 0x1df   : > { %1843 = vpow2.f32 %v963_v40  ;;  %v965_v22 = vmul.f32 1.442695, %v935_v41  ;;  %v936_v26 = vsub.f32 %v2160_v2, %v920_v43  ;;  %v433_v43 = vpack.c.bf16 %v402_v36, %v401_v35 }
 0x1e1   : > { %1845 = vpow2.f32 %v965_v22  ;;  %v967_v28 = vmul.f32 1.442695, %v936_v26  ;;  %v403_v22 = vld [vmem:[%s2197_s6 + $0xb0] sm:$0xff] }
 0x1e3   : > { %1847 = vpow2.f32 %v967_v28  ;;  %v404_v28 = vld [vmem:[%s2197_s6 + $0xb8] sm:$0xff] }
 0x1e7   : > { %v2257_v32 = vpop.eup %1841 }
 0x1e8   : > { %v1005_v54 = vsel %vm872_vm2, %v2257_v32, 0.0 }
 0x1e9   : > { %v2261_v47 = vpop.eup %1843  ;;  %1006 = vadd.xlane.f32.xlu0 %v1005_v54  ;;  %v406_v54 = vld [vmem:[%s2197_s6 + $0xc8] sm:$0xff] }
 0x1ea   : > { %v1008_v60 = vsel %vm872_vm2, %v2261_v47, 0.0 }
 0x1eb   : > { %v2265_v57 = vpop.eup %1845  ;;  %1009 = vadd.xlane.f32.xlu1 %v1008_v60  ;;  %v407_v60 = vld [vmem:[%s2197_s6 + $0xd0] sm:$0xff] }
 0x1ec   : > { %v1011_v2 = vsel %vm872_vm2, %v2265_v57, 0.0 }
 0x1ed   : > { %v2269_v49 = vpop.eup %1847  ;;  %1012 = vadd.xlane.f32.xlu0 %v1011_v2 }
 0x1ee   : > { %v1014_v50 = vsel %vm872_vm2, %v2269_v49, 0.0 }
 0x1ef   : > { %1015 = vadd.xlane.f32.xlu1 %v1014_v50  ;;  %v405_v50 = vld [vmem:[%s2197_s6 + $0xc0] sm:$0xf] }
 0x22e   : > { %v971_v51 = vpop.xlane.xlu0 %970 }
 0x22f   : > { %1849 = vrcp.f32 %v971_v51 }
 0x232   : > { %v977_v52 = vpop.xlane.xlu0 %976  ;;  %v974_v53 = vpop.xlane.xlu1 %973 }
 0x233   : > { %1851 = vrcp.f32 %v974_v53 }
 0x234   : > { %1853 = vrcp.f32 %v977_v52 }
 0x236   : > { %v980_v56 = vpop.xlane.xlu1 %979 }
 0x237   : > { %1855 = vrcp.f32 %v980_v56  ;;  %v435_v56 = vpack.c.bf16 %v405_v50, %v405_v50 }
 0x239   : > { %v1850_v58 = vpop.eup %1849 }
 0x23a   : > { %v1033_v4 = vmul.f32 %v1850_v58, %v2172_v23  ;;  %v430_v23 = vpack.c.bf16 %v397_v10, %v396_v8  ;;  %v408_v58 = vld [vmem:[%s2197_s6 + $0xd8] sm:$0xff] }
 0x23d   : > { %v1852_v63 = vpop.eup %1851 }
 0x23e   : > { %v1854_v1 = vpop.eup %1853  ;;  %v1034_v3 = vmul.f32 %v1852_v63, %v2178_v24  ;;  %v428_v24 = vpack.c.bf16 %v394_v14, %v393_v5  ;;  %v1250_v63 = vsel %vm1060_vm3, %v435_v56, 0 }
 0x23f   : > { %v1035_v15 = vmul.f32 %v1854_v1, %v2176_v9  ;;  %v431_v9 = vpack.c.bf16 %v399_v21, %v398_v20  ;;  %v438_v1 = vpack.c.bf16 %v410_v62, %v410_v62  ;;  %v416_v20 = vld [vmem:[%s2197_s6 + $0x118] sm:$0xff]  ;;  %v417_v21 = vld [vmem:[%s2197_s6 + $0x120] sm:$0xff] }
 0x240   : > { %v1049_v13 = vpack.c.bf16 %v1034_v3, %v1033_v4 }
 0x241   : > { %v1856_v11 = vpop.eup %1855 }
 0x242   : > { %v1036_v16 = vmul.f32 %v1856_v11, %v2184_v25  ;;  %1733 = vmatmul.mubr.msk.bf16.vlgmr.msra.gmra.mrb[16].mxu0 %vm872_vm2, %v1049_v13  ;;  %v411_v11 = vld [vmem:[%s2197_s6 + $0xf0] sm:$0xff]  ;;  %v412_v13 = vld [vmem:[%s2197_s6 + $0xf8] sm:$0xff] }
 0x243   : > { %1747 = vmatpush3.bf16.msra.mxu0 %v427_v7  ;;  %1752 = vmatprep.mubr.msk.bf16.mxu0 %vm1890_vm0, %v1889_v0  ;;  %v1297_v7 = vsel %vm1060_vm3, %v438_v1, 0  ;;  %v439_v18 = vpack.c.bf16 %v412_v13, %v411_v11 }
 0x244   : > { %v1050_v19 = vpack.c.bf16 %v1036_v16, %v1035_v15  ;;  %1748 = vmatprep.subr.bf16.mxu0 %v1889_v0 }
 0x246   : > { %v983_v12 = vpop.xlane.xlu0 %982  ;;  %1743 = vmatmul.mubr.msk.bf16.vlgmr.msra.gmra.mrb[16].mxu1 %vm872_vm2, %v1050_v19 }
 0x247   : > { %1857 = vrcp.f32 %v983_v12  ;;  %1757 = vmatpush3.bf16.msra.mxu1 %v430_v23  ;;  %1762 = vmatprep.mubr.msk.bf16.mxu1 %vm1890_vm0, %v1889_v0  ;;  %v413_v23 = vld [vmem:[%s2197_s6 + $0x100] sm:$0xff] }
 0x248   : > { %v986_v25 = vpop.xlane.xlu1 %985  ;;  %1749 = vmatpush3.bf16.msra.mxu0 %v428_v24  ;;  %1758 = vmatprep.subr.bf16.mxu1 %v1889_v0  ;;  %v414_v24 = vld [vmem:[%s2197_s6 + $0x108] sm:$0xff] }
 0x249   : > { %1859 = vrcp.f32 %v986_v25  ;;  %1750 = vmatprep.subr.bf16.mxu0 %v1889_v0 }
 0x24a   : > { %v989_v48 = vpop.xlane.xlu0 %988 }
 0x24b   : > { %1861 = vrcp.f32 %v989_v48  ;;  %1759 = vmatpush3.bf16.msra.mxu1 %v431_v9  ;;  %v419_v48 = vld [vmem:[%s2197_s6 + $0x130] sm:$0xff] }
 0x24c   : > { %v992_v31 = vpop.xlane.xlu1 %991  ;;  %1751 = vmatpush3.bf16.msra.mxu0 %v1156_v42  ;;  %1760 = vmatprep.subr.bf16.mxu1 %v1889_v0  ;;  %v418_v42 = vld [vmem:[%s2197_s6 + $0x128] sm:$0xff] }
 0x24d   : > { %1863 = vrcp.f32 %v992_v31  ;;  %1766 = vmatprep.subr.bf16.mxu0 %v1889_v0  ;;  %v420_v31 = vld [vmem:[%s2197_s6 + $0x138] sm:$0xf] }
 0x24f   : > { %1761 = vmatpush3.bf16.msra.mxu1 %v1203_v33  ;;  %v1344_v33 = vsel %vm1060_vm3, %v441_v44, 0 }
 0x250   : > { %1776 = vmatprep.subr.bf16.mxu1 %v1889_v0 }
 0x251   : > { %v1858_v34 = vpop.eup %1857 }
 0x252   : > { %v1037_v39 = vmul.f32 %v1858_v34, %v2201_v45  ;;  %v434_v45 = vpack.c.bf16 %v404_v28, %v403_v22  ;;  %v444_v34 = vpack.c.bf16 %v420_v31, %v420_v31 }
 0x253   : > { %v1860_v37 = vpop.eup %1859 }
 0x254   : > { %v1038_v40 = vmul.f32 %v1860_v37, %v2205_v46  ;;  %v436_v46 = vpack.c.bf16 %v407_v60, %v406_v54  ;;  %v1391_v37 = vsel %vm1060_vm3, %v444_v34, 0 }
 0x255   : > { %v1862_v41 = vpop.eup %1861 }
 0x256   : > { %v1051_v26 = vpack.c.bf16 %v1038_v40, %v1037_v39  ;;  %v1039_v51 = vmul.f32 %v1862_v41, %v2214_v55  ;;  %v437_v55 = vpack.c.bf16 %v409_v59, %v408_v58 }
 0x257   : > { %v1864_v2 = vpop.eup %1863 }
 0x258   : > { %v1040_v52 = vmul.f32 %v1864_v2, %v2219_v61  ;;  %1753 = vmatmul.mubr.msk.bf16.vlgmr.msra.gmra.mrb[20].mxu0 %vm872_vm2, %v1051_v26 }
 0x259   : > { %1767 = vmatpush3.bf16.msra.mxu0 %v433_v43  ;;  %1772 = vmatprep.mubr.msk.bf16.mxu0 %vm1890_vm0, %v1889_v0 }
 0x25a   : > { %v1052_v53 = vpack.c.bf16 %v1040_v52, %v1039_v51  ;;  %1768 = vmatprep.subr.bf16.mxu0 %v1889_v0 }
 0x25c   : > { %1763 = vmatmul.mubr.msk.bf16.vlgmr.msra.gmra.mrb[20].mxu1 %vm872_vm2, %v1052_v53 }
 0x25d   : > { %1769 = vmatpush3.bf16.msra.mxu0 %v434_v45  ;;  %1777 = vmatpush3.bf16.msra.mxu1 %v436_v46 }
 0x25e   : > { %v995_v61 = vpop.xlane.xlu0 %994  ;;  %1770 = vmatprep.subr.bf16.mxu0 %v1889_v0  ;;  %1778 = vmatprep.subr.bf16.mxu1 %v1889_v0 }
 0x25f   : > { %1865 = vrcp.f32 %v995_v61  ;;  %1782 = vmatprep.mubr.msk.bf16.mxu1 %vm1890_vm0, %v1889_v0 }
 0x260   : > { %v998_v4 = vpop.xlane.xlu1 %997 }
 0x261   : > { %1867 = vrcp.f32 %v998_v4  ;;  %1771 = vmatpush3.bf16.msra.mxu0 %v1250_v63  ;;  %1779 = vmatpush3.bf16.msra.mxu1 %v437_v55 }
 0x262   : > { %v1001_v3 = vpop.xlane.xlu0 %1000  ;;  %1780 = vmatprep.subr.bf16.mxu1 %v1889_v0  ;;  %1786 = vmatprep.subr.bf16.mxu0 %v1889_v0 }
 0x263   : > { %1869 = vrcp.f32 %v1001_v3 }
 0x264   : > { %v1004_v8 = vpop.xlane.xlu1 %1003 }
 0x265   : > { %1871 = vrcp.f32 %v1004_v8  ;;  %1781 = vmatpush3.bf16.msra.mxu1 %v1297_v7 }
 0x266   : > { %1796 = vmatprep.subr.bf16.mxu1 %v1889_v0 }
 0x269   : > { %v1866_v10 = vpop.eup %1865 }
 0x26a   : > { %v1041_v14 = vmul.f32 %v1866_v10, %v2237_v17  ;;  %v440_v17 = vpack.c.bf16 %v414_v24, %v413_v23 }
 0x26b   : > { %v1868_v5 = vpop.eup %1867 }
 0x26c   : > { %v1042_v15 = vmul.f32 %v1868_v5, %v2241_v27  ;;  %v442_v27 = vpack.c.bf16 %v417_v21, %v416_v20 }
 0x26d   : > { %v1870_v16 = vpop.eup %1869 }
 0x26e   : > { %v1053_v19 = vpack.c.bf16 %v1042_v15, %v1041_v14  ;;  %v1043_v12 = vmul.f32 %v1870_v16, %v2245_v29  ;;  %v443_v29 = vpack.c.bf16 %v419_v48, %v418_v42 }
 0x26f   : > { %v1872_v38 = vpop.eup %1871 }
 0x270   : > { %v1044_v9 = vmul.f32 %v1872_v38, %v2249_v30  ;;  %1773 = vmatmul.mubr.msk.bf16.vlgmr.msra.gmra.mrb[24].mxu0 %vm872_vm2, %v1053_v19 }
 0x271   : > { %1787 = vmatpush3.bf16.msra.mxu0 %v439_v18  ;;  %1792 = vmatprep.mubr.msk.bf16.mxu0 %vm1890_vm0, %v1889_v0 }
 0x272   : > { %v1054_v25 = vpack.c.bf16 %v1044_v9, %v1043_v12  ;;  %1788 = vmatprep.subr.bf16.mxu0 %v1889_v0 }
 0x274   : > { %1783 = vmatmul.mubr.msk.bf16.vlgmr.msra.gmra.mrb[24].mxu1 %vm872_vm2, %v1054_v25 }
 0x275   : > { %1789 = vmatpush3.bf16.msra.mxu0 %v440_v17  ;;  %1797 = vmatpush3.bf16.msra.mxu1 %v442_v27 }
 0x276   : > { %v1007_v30 = vpop.xlane.xlu0 %1006  ;;  %1790 = vmatprep.subr.bf16.mxu0 %v1889_v0  ;;  %1798 = vmatprep.subr.bf16.mxu1 %v1889_v0 }
 0x277   : > { %1873 = vrcp.f32 %v1007_v30  ;;  %1802 = vmatprep.mubr.msk.bf16.mxu1 %vm1890_vm0, %v1889_v0 }
 0x278   : > { %v1010_v35 = vpop.xlane.xlu1 %1009 }
 0x279   : > { %1875 = vrcp.f32 %v1010_v35  ;;  %1791 = vmatpush3.bf16.msra.mxu0 %v1344_v33  ;;  %1799 = vmatpush3.bf16.msra.mxu1 %v443_v29 }
 0x27a   : > { %v1013_v36 = vpop.xlane.xlu0 %1012  ;;  %1800 = vmatprep.subr.bf16.mxu1 %v1889_v0 }
 0x27b   : > { %1877 = vrcp.f32 %v1013_v36 }
 0x27c   : > { %v1016_v39 = vpop.xlane.xlu1 %1015 }
 0x27d   : > { %1879 = vrcp.f32 %v1016_v39  ;;  %1801 = vmatpush3.bf16.msra.mxu1 %v1391_v37 }
 0x281   : > { %v1874_v40 = vpop.eup %1873 }
 0x282   : > { %v1045_v43 = vmul.f32 %v1874_v40, %v2257_v32 }
 0x283   : > { %v1876_v41 = vpop.eup %1875 }
 0x284   : > { %v1046_v22 = vmul.f32 %v1876_v41, %v2261_v47 }
 0x285   : > { %v1878_v26 = vpop.eup %1877 }
 0x286   : > { %v1055_v28 = vpack.c.bf16 %v1046_v22, %v1045_v43  ;;  %v1047_v60 = vmul.f32 %v1878_v26, %v2265_v57 }
 0x287   : > { %v1880_v54 = vpop.eup %1879 }
 0x288   : > { %v1048_v0 = vmul.f32 %v1880_v54, %v2269_v49  ;;  %1793 = vmatmul.mubr.msk.bf16.vlgmr.msra.gmra.mrb[28].mxu0 %vm872_vm2, %v1055_v28 }
 0x28a   : > { %v1056_v2 = vpack.c.bf16 %v1048_v0, %v1047_v60 }
 0x28c   : > { %1803 = vmatmul.mubr.msk.bf16.vlgmr.msra.gmra.mrb[28].mxu1 %vm872_vm2, %v1056_v2 }
 0x315   : > { %v1098_v32 = vpop.f32.mrb[16].mxu0 }
 0x316   : > { %1434 = vst.msk [vmem:[%s2366_s9] sm:$0xff] %vm447_vm1, %v1098_v32  ;;  %v1734_v47 = vpop.f32.mrb[17].mxu0 }
 0x317   : > { %v1101_v57 = vpop.f32.mrb[18].mxu0 }
 0x318   : > { %1435 = vst.msk [vmem:[%s2366_s9 + $0x8] sm:$0xff] %vm447_vm1, %v1101_v57  ;;  %v1735_v49 = vpop.f32.mrb[19].mxu0 }
 0x319   : > { %v1145_v50 = vpop.f32.mrb[16].mxu1 }
 0x31a   : > { %1436 = vst.msk [vmem:[%s2366_s9 + $0x10] sm:$0xff] %vm447_vm1, %v1145_v50  ;;  %v1744_v51 = vpop.f32.mrb[17].mxu1 }
 0x31b   : > { %v1148_v52 = vpop.f32.mrb[18].mxu1 }
 0x31c   : > { %1437 = vst.msk [vmem:[%s2366_s9 + $0x18] sm:$0xff] %vm447_vm1, %v1148_v52  ;;  %v1745_v45 = vpop.f32.mrb[19].mxu1 }
 0x32b   : > { %v1192_v46 = vpop.f32.mrb[20].mxu0 }
 0x32c   : > { %1438 = vst.msk [vmem:[%s2366_s9 + $0x20] sm:$0xff] %vm447_vm1, %v1192_v46  ;;  %v1754_v53 = vpop.f32.mrb[21].mxu0 }
 0x32d   : > { %v1195_v56 = vpop.f32.mrb[22].mxu0 }
 0x32e   : > { %1439 = vst.msk [vmem:[%s2366_s9 + $0x28] sm:$0xff] %vm447_vm1, %v1195_v56  ;;  %v1755_v58 = vpop.f32.mrb[23].mxu0 }
 0x32f   : > { %v1239_v59 = vpop.f32.mrb[20].mxu1 }
 0x330   : > { %1440 = vst.msk [vmem:[%s2366_s9 + $0x30] sm:$0xff] %vm447_vm1, %v1239_v59  ;;  %v1764_v62 = vpop.f32.mrb[21].mxu1 }
 0x331   : > { %v1242_v55 = vpop.f32.mrb[22].mxu1 }
 0x332   : > { %1441 = vst.msk [vmem:[%s2366_s9 + $0x38] sm:$0xff] %vm447_vm1, %v1242_v55  ;;  %v1765_v61 = vpop.f32.mrb[23].mxu1 }
 0x343   : > { %v1286_v63 = vpop.f32.mrb[24].mxu0 }
 0x344   : > { %1442 = vst.msk [vmem:[%s2366_s9 + $0x40] sm:$0xff] %vm447_vm1, %v1286_v63  ;;  %v1774_v1 = vpop.f32.mrb[25].mxu0 }
 0x345   : > { %v1289_v4 = vpop.f32.mrb[26].mxu0 }
 0x346   : > { %1443 = vst.msk [vmem:[%s2366_s9 + $0x48] sm:$0xff] %vm447_vm1, %v1289_v4  ;;  %v1775_v3 = vpop.f32.mrb[27].mxu0 }
 0x347   : > { %v1333_v7 = vpop.f32.mrb[24].mxu1 }
 0x348   : > { %1444 = vst.msk [vmem:[%s2366_s9 + $0x50] sm:$0xff] %vm447_vm1, %v1333_v7  ;;  %v1784_v8 = vpop.f32.mrb[25].mxu1 }
 0x349   : > { %v1336_v10 = vpop.f32.mrb[26].mxu1 }
 0x34a   : > { %1445 = vst.msk [vmem:[%s2366_s9 + $0x58] sm:$0xff] %vm447_vm1, %v1336_v10  ;;  %v1785_v11 = vpop.f32.mrb[27].mxu1 }
 0x35b   : > { %v1380_v13 = vpop.f32.mrb[28].mxu0 }
 0x35c   : > { %1446 = vst.msk [vmem:[%s2366_s9 + $0x60] sm:$0xff] %vm447_vm1, %v1380_v13  ;;  %v1794_v5 = vpop.f32.mrb[29].mxu0 }
 0x35d   : > { %v1383_v14 = vpop.f32.mrb[30].mxu0 }
 0x35e   : > { %1447 = vst.msk [vmem:[%s2366_s9 + $0x68] sm:$0xff] %vm447_vm1, %v1383_v14  ;;  %v1795_v15 = vpop.f32.mrb[31].mxu0 }
 0x35f   : > { %v1427_v16 = vpop.f32.mrb[28].mxu1 }
 0x360   : > { %1448 = vst.msk [vmem:[%s2366_s9 + $0x70] sm:$0xff] %vm447_vm1, %v1427_v16  ;;  %v1804_v18 = vpop.f32.mrb[29].mxu1 }
 0x361   : > { %v1430_v23 = vpop.f32.mrb[30].mxu1 }
 0x362   : > { %1449 = vst.msk [vmem:[%s2366_s9 + $0x78] sm:$0xff] %vm447_vm1, %v1430_v23  ;;  %v1805_v19 = vpop.f32.mrb[31].mxu1 }
 0x363 PF: > { %s14_s15 = sadd.s32 1, %s1887_s15  }
 0x364   : > { %p11_p5 = scmp.ge.s32.totalorder %s14_s15, 8  }
 0x366   :  { %13 = sbr.rel (!%p11_p5) target bundleno = 1 (0x1), region = 75 }

// kernel: atoca_forward.9
= control target key start
LH: loop header
LB: loop body
LE: loop exit
PB: predicated region body
PF: predicated region fallthrough
CT: control target
= control target key end

     0   :  { %s1394_s13 = smov 0   ;;  %s1718_s0 = inlined_call_operand.vmem [shape: f32[128,24], index: 0, kind: input, shape index: {}]   ;;  %s1719_s1 = inlined_call_operand.vmem [shape: f32[128,24], index: 1, kind: input, shape index: {}]   ;;  %s1720_s2 = inlined_call_operand.vmem [shape: bf16[24,24], index: 2, kind: input, shape index: {}]   ;;  %s1721_s3 = inlined_call_operand.vmem [shape: f32[1,24], index: 3, kind: input, shape index: {}]   ;;  %s1722_s4 = inlined_call_operand.vmem [shape: f32[1,24], index: 4, kind: input, shape index: {}]   ;;  %s1723_s5 = inlined_call_operand.vmem [shape: f32[1,24], index: 5, kind: input, shape index: {}]   ;;  %s1724_s6 = inlined_call_operand.vmem [shape: bf16[24,48], index: 6, kind: input, shape index: {}]   ;;  %s1725_s7 = inlined_call_operand.vmem [shape: f32[1,48], index: 7, kind: input, shape index: {}]   ;;  %s1726_s8 = inlined_call_operand.vmem [shape: bf16[48,24], index: 8, kind: input, shape index: {}]   ;;  %s1727_s9 = inlined_call_operand.vmem [shape: f32[1,24], index: 9, kind: input, shape index: {}]   ;;  %s1728_s10 = inlined_call_operand.vmem [shape: f32[128,24], index: 10, kind: output, shape index: {}]  }
   0x1 LB: > { %s1166_s14 = sadd.s32 4294967295, %s1337_s13   ;;  %p1170_p0 = scmp.ge.s32.totalorder %s1337_s13, 1  ;;  %s1337_s13 = sphi %s1394_s13, %s20_s13  }
   0x2   : > { %p324_p1 = scmp.lt.s32.totalorder %s1337_s13, 3 }
   0x4   : > { %p325_p2 = pnand %p1170_p0, %p324_p1 }
   0x5   : > { %v1276_v0 = vld [vmem:[%s1720_s2] sm:$0xff] (!%p325_p2)   ;;  %v1277_v1 = vld [vmem:[%s1720_s2 + $0x8] ss:$0 sps:$4 sm:$0xff] (!%p325_p2)   ;;  %vm430_vm0 = vcmask (!%p325_p2), 1043456   ;;  %s1171_s19 = sshll.u32 (!%p325_p2), %s1166_s14, 3  ;;  %vm417_vm1 = vcmask (!%p325_p2), 195584  }
   0x6   : > { %328 = sbr.rel (%p325_p2) target bundleno = 1063 (0x427), region = 60  ;;  %1222 = vmatprep.subr.bf16.mxu0 (!%p325_p2), %v1276_v0  ;;  %p368_p3 = scmp.lt.s32.totalorder (!%p325_p2), %s1171_s19, 15  ;;  %v432_v2 = vsel (!%p325_p2), %vm430_vm0, %v1277_v1, 0  ;;  %v1177_v15 = vld [vmem:[%s1721_s3] ss:$0 sm:$0xff] (!%p325_p2)  ;;  %vm1004_vm6 = vcmask (!%p325_p2), 392192  }
   0x7   : > { %1223 = vmatpush3.bf16.msra.mxu0 (!%p325_p2), %v1276_v0 }
   0x8   : > { %1266 = vmatprep.subr.msk.bf16.mxu0 (!%p325_p2), %vm430_vm0, %v1277_v1 }
   0xb   : > { %1225 = vmatpush3.bf16.msra.mxu0 (!%p325_p2), %v432_v2 }
   0xd   : > { %s1730_s19 = smov (!%p368_p3, %s1171_s19), 15 }
   0xe   : > { %s1410_s20 = sshll.u32 %s1730_s19, 3 }
   0xf   : > { %s371_s23 = scalar_lea.vmem %s1718_s0, %s1410_s20  ;;  %s1424_s26 = scalar_lea.vmem %s1719_s1, %s1410_s20 }
  0x10   : > { %v386_v3 = vld [vmem:[%s371_s23] sm:$0xff]  ;;  %v387_v4 = vld [vmem:[%s371_s23 + $0x8] sm:$0xff]  ;;  %v388_v5 = vld [vmem:[%s371_s23 + $0x10] sm:$0xff]  ;;  %s383_s11 = scalar_lea.vmem %s1728_s10, %s1410_s20 }
  0x11   : > { %v394_v6 = vpack.c.bf16 %v387_v4, %v386_v3  ;;  %v389_v7 = vld [vmem:[%s371_s23 + $0x18] sm:$0xff]  ;;  %v390_v8 = vld [vmem:[%s371_s23 + $0x20] sm:$0xff]  ;;  %v391_v9 = vld [vmem:[%s371_s23 + $0x28] sm:$0xff] }
  0x12   : > { %v395_v10 = vpack.c.bf16 %v389_v7, %v388_v5  ;;  %v396_v11 = vpack.c.bf16 %v391_v9, %v390_v8  ;;  %v392_v12 = vld [vmem:[%s371_s23 + $0x30] sm:$0xff]  ;;  %v393_v13 = vld [vmem:[%s371_s23 + $0x38] sm:$0xff]  ;;  %v499_v20 = vld [vmem:[%s1424_s26] sm:$0xff] }
  0x13   : > { %1226 = vmatprep.mubr.msk.bf16.mxu0 %vm417_vm1, %v394_v6  ;;  %v397_v14 = vpack.c.bf16 %v393_v13, %v392_v12  ;;  %v501_v17 = vld [vmem:[%s1424_s26 + $0x10] sm:$0xff]  ;;  %v502_v23 = vld [vmem:[%s1424_s26 + $0x18] sm:$0xff]  ;;  %v500_v27 = vld [vmem:[%s1424_s26 + $0x8] sm:$0xff] }
  0x14   : > { %1227 = vmatmul.mubr.msk.bf16.vlgmr.msra.gmra.mrb[0].mxu0 %vm417_vm1, %v395_v10  ;;  %v503_v36 = vld [vmem:[%s1424_s26 + $0x20] sm:$0xff]  ;;  %v505_v42 = vld [vmem:[%s1424_s26 + $0x30] sm:$0xff]  ;;  %v504_v44 = vld [vmem:[%s1424_s26 + $0x28] sm:$0xff] }
  0x15   : > { %1230 = vmatprep.mubr.msk.bf16.mxu0 %vm417_vm1, %v396_v11  ;;  %v506_v48 = vld [vmem:[%s1424_s26 + $0x38] sm:$0xff] }
  0x1c   : > { %1231 = vmatmul.mubr.msk.bf16.gmra.mrb[4].mxu0 %vm417_vm1, %v397_v14 }
  0xe7   : > { %v1228_v16 = vpop.f32.mrb[0].mxu0 }
  0xe8   : > { %v477_v18 = vadd.f32 %v1228_v16, %v1177_v15  ;;  %v468_v19 = vpop.f32.mrb[1].mxu0 }
  0xe9   : > { %v469_v21 = vadd.f32 %v1177_v15, %v468_v19  ;;  %v1229_v22 = vpop.f32.mrb[2].mxu0 }
  0xea   : > { %v1432_v24 = vadd.f32 %v501_v17, %v477_v18  ;;  %v480_v25 = vadd.f32 %v1229_v22, %v1177_v15  ;;  %v471_v26 = vpop.f32.mrb[3].mxu0 }
  0xeb   : > { %v1435_v28 = vadd.f32 %v499_v20, %v469_v21  ;;  %v472_v29 = vadd.f32 %v1177_v15, %v471_v26 }
  0xec   : > { %v1437_v30 = vadd.f32 %v502_v23, %v480_v25  ;;  %v521_v31 = vsel %vm417_vm1, %v1432_v24, 0.0 }
  0xed   : > { %v1441_v32 = vadd.f32 %v500_v27, %v472_v29  ;;  %522 = vadd.xlane.f32.xlu1 %v521_v31  ;;  %v515_v33 = vsel %vm417_vm1, %v1435_v28, 0.0 }
  0xee   : > { %516 = vadd.xlane.f32.xlu0 %v515_v33  ;;  %v524_v37 = vsel %vm417_vm1, %v1437_v30, 0.0 }
  0xef   : > { %v1232_v34 = vpop.f32.mrb[4].mxu0  ;;  %v518_v41 = vsel %vm417_vm1, %v1441_v32, 0.0 }
  0xf0   : > { %v484_v35 = vpop.f32.mrb[5].mxu0  ;;  %v493_v38 = vadd.f32 %v1232_v34, %v1177_v15 }
  0xf1   : > { %v485_v39 = vadd.f32 %v1177_v15, %v484_v35  ;;  %525 = vadd.xlane.f32.xlu1 %v524_v37  ;;  %v1233_v40 = vpop.f32.mrb[6].mxu0  ;;  %v1279_v37 = vld [vmem:[%s1724_s6 + $0x8] ss:$0 sps:$4 sm:$0xff]  }
  0xf2   : > { %v487_v43 = vpop.f32.mrb[7].mxu0  ;;  %519 = vadd.xlane.f32.xlu0 %v518_v41  ;;  %v496_v46 = vadd.f32 %v1233_v40, %v1177_v15  ;;  %v1455_v49 = vadd.f32 %v505_v42, %v493_v38  ;;  %v686_v38 = vsel %vm430_vm0, %v1279_v37, 0 }
  0xf3   : > { %v1452_v45 = vadd.f32 %v503_v36, %v485_v39  ;;  %v488_v47 = vadd.f32 %v1177_v15, %v487_v43  ;;  %v1278_v36 = vld [vmem:[%s1724_s6] sm:$0xff]  }
  0xf4   : > { %v1461_v52 = vadd.f32 %v506_v48, %v496_v46  ;;  %v533_v54 = vsel %vm417_vm1, %v1455_v49, 0.0  ;;  %1234 = vmatprep.subr.bf16.mxu1 %v1278_v36 }
  0xf5   : > { %v1457_v50 = vadd.f32 %v504_v44, %v488_v47  ;;  %v527_v51 = vsel %vm417_vm1, %v1452_v45, 0.0  ;;  %1235 = vmatpush3.bf16.msra.mxu1 %v1278_v36 }
  0xf6   : > { %528 = vadd.xlane.f32.xlu0 %v527_v51  ;;  %v536_v55 = vsel %vm417_vm1, %v1461_v52, 0.0  ;;  %1267 = vmatprep.subr.msk.bf16.mxu1 %vm430_vm0, %v1279_v37 }
  0xf7   : > { %v530_v53 = vsel %vm417_vm1, %v1457_v50, 0.0 }
  0xf8   : > { %531 = vadd.xlane.f32.xlu1 %v530_v53 }
  0xf9   : > { %1237 = vmatpush3.bf16.msra.mxu1 %v686_v38 }
  0xfa   : > { %534 = vadd.xlane.f32.xlu0 %v533_v54 }
  0xfc   : > { %537 = vadd.xlane.f32.xlu1 %v536_v55 }
 0x17a   : > { %v523_v56 = vpop.xlane.xlu1 %522 }
 0x17b   : > { %v542_v57 = vmul.f32 0.041666668, %v523_v56  ;;  %v517_v58 = vpop.xlane.xlu0 %516 }
 0x17c   : > { %v540_v59 = vmul.f32 0.041666668, %v517_v58 }
 0x17d   : > { %v1470_v60 = vsub.f32 %v1432_v24, %v542_v57 }
 0x17e   : > { %v1473_v61 = vsub.f32 %v1435_v28, %v540_v59  ;;  %v526_v62 = vpop.xlane.xlu1 %525 }
 0x17f   : > { %v543_v63 = vmul.f32 0.041666668, %v526_v62  ;;  %v520_v0 = vpop.xlane.xlu0 %519  ;;  %v558_v6 = vmul.f32 %v1470_v60, %v1470_v60 }
 0x180   : > { %v541_v1 = vmul.f32 0.041666668, %v520_v0  ;;  %v556_v2 = vmul.f32 %v1473_v61, %v1473_v61 }
 0x181   : > { %v1478_v3 = vsub.f32 %v1437_v30, %v543_v63  ;;  %v570_v14 = vsel %vm417_vm1, %v558_v6, 0.0 }
 0x182   : > { %v1481_v4 = vsub.f32 %v1441_v32, %v541_v1  ;;  %v564_v5 = vsel %vm417_vm1, %v556_v2, 0.0 }
 0x183   : > { %565 = vadd.xlane.f32.xlu0 %v564_v5  ;;  %v529_v7 = vpop.xlane.xlu0 %528  ;;  %v559_v11 = vmul.f32 %v1478_v3, %v1478_v3 }
 0x184   : > { %v544_v8 = vmul.f32 0.041666668, %v529_v7  ;;  %v557_v9 = vmul.f32 %v1481_v4, %v1481_v4 }
 0x185   : > { %v532_v10 = vpop.xlane.xlu1 %531  ;;  %v573_v21 = vsel %vm417_vm1, %v559_v11, 0.0 }
 0x186   : > { %v1491_v12 = vsub.f32 %v1452_v45, %v544_v8  ;;  %v545_v13 = vmul.f32 0.041666668, %v532_v10  ;;  %v567_v15 = vsel %vm417_vm1, %v557_v9, 0.0  ;;  %v1184_v8 = vld [vmem:[%s1722_s4] ss:$0 sm:$0xff] }
 0x187   : > { %571 = vadd.xlane.f32.xlu0 %v570_v14  ;;  %568 = vadd.xlane.f32.xlu1 %v567_v15  ;;  %v535_v16 = vpop.xlane.xlu0 %534 }
 0x188   : > { %v1496_v17 = vsub.f32 %v1457_v50, %v545_v13  ;;  %v546_v18 = vmul.f32 0.041666668, %v535_v16  ;;  %v560_v19 = vmul.f32 %v1491_v12, %v1491_v12 }
 0x189   : > { %v538_v20 = vpop.xlane.xlu1 %537 }
 0x18a   : > { %v1502_v22 = vsub.f32 %v1455_v49, %v546_v18  ;;  %v547_v23 = vmul.f32 0.041666668, %v538_v20  ;;  %v576_v25 = vsel %vm417_vm1, %v560_v19, 0.0  ;;  %v561_v26 = vmul.f32 %v1496_v17, %v1496_v17 }
 0x18b   : > { %574 = vadd.xlane.f32.xlu1 %v573_v21  ;;  %577 = vadd.xlane.f32.xlu0 %v576_v25 }
 0x18c   : > { %v1508_v27 = vsub.f32 %v1461_v52, %v547_v23  ;;  %v562_v29 = vmul.f32 %v1502_v22, %v1502_v22  ;;  %v579_v31 = vsel %vm417_vm1, %v561_v26, 0.0 }
 0x18e   : > { %v582_v33 = vsel %vm417_vm1, %v562_v29, 0.0  ;;  %v563_v34 = vmul.f32 %v1508_v27, %v1508_v27 }
 0x18f   : > { %580 = vadd.xlane.f32.xlu1 %v579_v31  ;;  %583 = vadd.xlane.f32.xlu0 %v582_v33 }
 0x190   : > { %v585_v35 = vsel %vm417_vm1, %v563_v34, 0.0 }
 0x193   : > { %586 = vadd.xlane.f32.xlu1 %v585_v35 }
 0x210   : > { %v566_v39 = vpop.xlane.xlu0 %565 }
 0x211   : > { %v588_v40 = vmul.f32 0.041666668, %v566_v39 }
 0x213   : > { %v596_v41 = vadd.f32 1e-05, %v588_v40 }
 0x214   : > { %v569_v42 = vpop.xlane.xlu1 %568  ;;  %v572_v43 = vpop.xlane.xlu0 %571 }
 0x215   : > { %1283 = vrsqrt.f32 %v596_v41  ;;  %v589_v44 = vmul.f32 0.041666668, %v569_v42  ;;  %v590_v46 = vmul.f32 0.041666668, %v572_v43 }
 0x217   : > { %v597_v47 = vadd.f32 1e-05, %v589_v44  ;;  %v598_v48 = vadd.f32 1e-05, %v590_v46 }
 0x218   : > { %v575_v51 = vpop.xlane.xlu1 %574  ;;  %v578_v53 = vpop.xlane.xlu0 %577 }
 0x219   : > { %1285 = vrsqrt.f32 %v597_v47  ;;  %v591_v54 = vmul.f32 0.041666668, %v575_v51  ;;  %v592_v55 = vmul.f32 0.041666668, %v578_v53  ;;  %v1186_v51 = vld [vmem:[%s1725_s7] ss:$0 sm:$0xff] }
 0x21a   : > { %1287 = vrsqrt.f32 %v598_v48  ;;  %v1282_v48 = vld [vmem:[%s1726_s8 + $0x10] sm:$0xff]  }
 0x21b   : > { %v599_v56 = vadd.f32 1e-05, %v591_v54  ;;  %v600_v57 = vadd.f32 1e-05, %v592_v55 }
 0x21c   : > { %v581_v58 = vpop.xlane.xlu1 %580  ;;  %v584_v59 = vpop.xlane.xlu0 %583 }
 0x21d   : > { %1289 = vrsqrt.f32 %v599_v56  ;;  %v593_v62 = vmul.f32 0.041666668, %v581_v58  ;;  %v594_v63 = vmul.f32 0.041666668, %v584_v59 }
 0x21e   : > { %1291 = vrsqrt.f32 %v600_v57 }
 0x21f   : > { %v1284_v0 = vpop.eup %1283  ;;  %v601_v1 = vadd.f32 1e-05, %v593_v62  ;;  %v602_v2 = vadd.f32 1e-05, %v594_v63 }
 0x220   : > { %v587_v5 = vpop.xlane.xlu1 %586  ;;  %v612_v6 = vmul.f32 %v1284_v0, %v1473_v61  ;;  %v1185_v61 = vld [vmem:[%s1723_s5] ss:$0 sm:$0xff] }
 0x221   : > { %1293 = vrsqrt.f32 %v601_v1  ;;  %v595_v7 = vmul.f32 0.041666668, %v587_v5 }
 0x222   : > { %1295 = vrsqrt.f32 %v602_v2  ;;  %v627_v14 = vmul.f32 %v1184_v8, %v612_v6 }
 0x223   : > { %v1286_v9 = vpop.eup %1285  ;;  %v603_v10 = vadd.f32 1e-05, %v595_v7 }
 0x224   : > { %v1288_v11 = vpop.eup %1287  ;;  %v613_v13 = vmul.f32 %v1286_v9, %v1481_v4  ;;  %v642_v21 = vadd.f32 %v1185_v61, %v627_v14 }
 0x225   : > { %v614_v15 = vmul.f32 %v1288_v11, %v1470_v60  ;;  %1297 = vrsqrt.f32 %v603_v10 }
 0x226   : > { %v628_v16 = vmul.f32 %v1184_v8, %v613_v13 }
 0x227   : > { %v1290_v18 = vpop.eup %1289  ;;  %v629_v25 = vmul.f32 %v1184_v8, %v614_v15 }
 0x228   : > { %v1292_v19 = vpop.eup %1291  ;;  %v615_v20 = vmul.f32 %v1290_v18, %v1478_v3  ;;  %v643_v23 = vadd.f32 %v1185_v61, %v628_v16 }
 0x229   : > { %v616_v26 = vmul.f32 %v1292_v19, %v1491_v12  ;;  %v644_v34 = vadd.f32 %v1185_v61, %v629_v25 }
 0x22a   : > { %v650_v29 = vpack.c.bf16 %v643_v23, %v642_v21  ;;  %v630_v4 = vmul.f32 %v1184_v8, %v615_v20 }
 0x22b   : > { %v1294_v31 = vpop.eup %1293  ;;  %v631_v36 = vmul.f32 %v1184_v8, %v616_v26 }
 0x22c   : > { %v1296_v33 = vpop.eup %1295  ;;  %v617_v60 = vmul.f32 %v1294_v31, %v1496_v17  ;;  %1238 = vmatprep.mubr.msk.bf16.mxu1 %vm417_vm1, %v650_v29  ;;  %v645_v35 = vadd.f32 %v1185_v61, %v630_v4 }
 0x22d   : > { %v618_v37 = vmul.f32 %v1296_v33, %v1502_v22  ;;  %v646_v12 = vadd.f32 %v1185_v61, %v631_v36  ;;  %v1280_v22 = vld [vmem:[%s1726_s8] sm:$0xff]  }
 0x22e   : > { %v651_v38 = vpack.c.bf16 %v645_v35, %v644_v34  ;;  %v632_v3 = vmul.f32 %v1184_v8, %v617_v60  ;;  %1246 = vmatprep.subr.bf16.mxu0 %v1280_v22  ;;  %1260 = vmatprep.subr.bf16.mxu1 %v1280_v22 }
 0x22f   : > { %v1298_v39 = vpop.eup %1297  ;;  %v633_v42 = vmul.f32 %v1184_v8, %v618_v37  ;;  %1247 = vmatpush3.bf16.msra.mxu0 %v1280_v22 }
 0x230   : > { %v619_v40 = vmul.f32 %v1298_v39, %v1508_v27  ;;  %1239 = vmatmul.mubr.msk.bf16.vlgmr.msra.gmra.mrb[0].mxu1 %vm417_vm1, %v651_v38  ;;  %v647_v41 = vadd.f32 %v1185_v61, %v632_v3  ;;  %v1281_v27 = vld [vmem:[%s1726_s8 + $0x8] sm:$0xff]  }
 0x231   : > { %v648_v17 = vadd.f32 %v1185_v61, %v633_v42  ;;  %1263 = vmatpush3.bf16.msra.mxu1 %v1280_v22  ;;  %1248 = vmatprep.subr.bf16.mxu0 %v1281_v27 }
 0x232   : > { %v652_v43 = vpack.c.bf16 %v647_v41, %v646_v12  ;;  %v634_v44 = vmul.f32 %v1184_v8, %v619_v40  ;;  %1261 = vmatprep.subr.bf16.mxu1 %v1281_v27 }
 0x233   : > { %1249 = vmatpush3.bf16.msra.mxu0 %v1281_v27 }
 0x234   : > { %1242 = vmatprep.mubr.msk.bf16.mxu1 %vm417_vm1, %v652_v43  ;;  %v649_v46 = vadd.f32 %v1185_v61, %v634_v44  ;;  %1250 = vmatprep.subr.bf16.mxu0 %v1282_v48 }
 0x235   : > { %1264 = vmatpush3.bf16.msra.mxu1 %v1281_v27 }
 0x236   : > { %v653_v47 = vpack.c.bf16 %v649_v46, %v648_v17  ;;  %1262 = vmatprep.subr.bf16.mxu1 %v1282_v48 }
 0x237   : > { %1251 = vmatpush3.bf16.msra.mxu0 %v1282_v48 }
 0x238   : > { %1243 = vmatmul.mubr.msk.bf16.gmra.mrb[4].mxu1 %vm417_vm1, %v653_v47 }
 0x239   : > { %1265 = vmatpush3.bf16.msra.mxu1 %v1282_v48 }
 0x303   : > { %v1240_v53 = vpop.f32.mrb[0].mxu1 }
 0x304   : > { %v731_v54 = vadd.f32 %v1240_v53, %v1186_v51  ;;  %v722_v55 = vpop.f32.mrb[1].mxu1 }
 0x305   : > { %v1555_v56 = vadd.f32 %v1186_v51, %v722_v55  ;;  %v1241_v57 = vpop.f32.mrb[2].mxu1 }
 0x306   : > { %v1557_v58 = vmul.f32 0.70710677, %v731_v54  ;;  %v1559_v59 = vadd.f32 %v1241_v57, %v1186_v51  ;;  %v725_v62 = vpop.f32.mrb[3].mxu1  ;;  %v1599_v12 = vmul.f32 0.5, %v731_v54 }
 0x307   : > { %v1562_v63 = vmul.f32 0.70710677, %v1555_v56  ;;  %v1564_v0 = vadd.f32 %v1186_v51, %v725_v62 }
 0x308   : > { %v771_v1 = vand.u32 2147483647, %v1557_v58  ;;  %v1568_v2 = vmul.f32 0.70710677, %v1559_v59  ;;  %vm931_vm2 = vcmp.ge.f32.partialorder %v1557_v58, 0.0 }
 0x309   : > { %v769_v5 = vand.u32 2147483647, %v1562_v63  ;;  %v1572_v6 = vmul.f32 0.70710677, %v1564_v0  ;;  %vm929_vm3 = vcmp.ge.f32.partialorder %v1562_v63, 0.0 }
 0x30a   : > { %v779_v7 = vmul.f32 0.3275911, %v771_v1  ;;  %v772_v8 = vand.u32 2147483647, %v1568_v2  ;;  %v883_v31 = vsub.f32 0.0, %v771_v1  ;;  %vm932_vm4 = vcmp.ge.f32.partialorder %v1568_v2, 0.0 }
 0x30b   : > { %v777_v9 = vmul.f32 0.3275911, %v769_v5  ;;  %v770_v10 = vand.u32 2147483647, %v1572_v6  ;;  %v1244_v14 = vpop.f32.mrb[4].mxu1  ;;  %v881_v34 = vsub.f32 0.0, %v769_v5 }
 0x30c   : > { %v787_v11 = vadd.f32 1.0, %v779_v7  ;;  %v780_v13 = vmul.f32 0.3275911, %v772_v8  ;;  %v738_v16 = vpop.f32.mrb[5].mxu1  ;;  %v1576_v23 = vadd.f32 %v1244_v14, %v1186_v51  ;;  %v884_v36 = vsub.f32 0.0, %v772_v8 }
 0x30d   : > { %v785_v15 = vadd.f32 1.0, %v777_v9  ;;  %v778_v61 = vmul.f32 0.3275911, %v770_v10  ;;  %v1245_v19 = vpop.f32.mrb[6].mxu1  ;;  %v1578_v25 = vadd.f32 %v1186_v51, %v738_v16  ;;  %v882_v37 = vsub.f32 0.0, %v770_v10 }
 0x30e   : > { %1299 = vrcp.f32 %v787_v11  ;;  %v788_v18 = vadd.f32 1.0, %v780_v13  ;;  %v741_v20 = vpop.f32.mrb[7].mxu1  ;;  %v1580_v26 = vadd.f32 %v1245_v19, %v1186_v51  ;;  %v1583_v29 = vmul.f32 0.70710677, %v1576_v23 }
 0x30f   : > { %1301 = vrcp.f32 %v785_v15  ;;  %v786_v21 = vadd.f32 1.0, %v778_v61  ;;  %v1585_v4 = vadd.f32 %v1186_v51, %v741_v20  ;;  %v1588_v33 = vmul.f32 0.70710677, %v1578_v25 }
 0x310   : > { %1303 = vrcp.f32 %v788_v18  ;;  %v1591_v60 = vmul.f32 0.70710677, %v1580_v26  ;;  %v775_v35 = vand.u32 2147483647, %v1583_v29  ;;  %v891_v41 = vmul.f32 %v883_v31, %v771_v1 }
 0x311   : > { %1305 = vrcp.f32 %v786_v21  ;;  %v773_v38 = vand.u32 2147483647, %v1588_v33  ;;  %v1597_v40 = vmul.f32 0.70710677, %v1585_v4  ;;  %v889_v17 = vmul.f32 %v881_v34, %v769_v5 }
 0x312   : > { %v776_v3 = vand.u32 2147483647, %v1591_v60  ;;  %v783_v39 = vmul.f32 0.3275911, %v775_v35  ;;  %v887_v47 = vsub.f32 0.0, %v775_v35  ;;  %v892_v51 = vmul.f32 %v884_v36, %v772_v8 }
 0x313   : > { %v781_v42 = vmul.f32 0.3275911, %v773_v38  ;;  %v774_v22 = vand.u32 2147483647, %v1597_v40  ;;  %v890_v53 = vmul.f32 %v882_v37, %v770_v10  ;;  %v885_v57 = vsub.f32 0.0, %v773_v38 }
 0x314   : > { %v784_v43 = vmul.f32 0.3275911, %v776_v3  ;;  %v791_v46 = vadd.f32 1.0, %v783_v39  ;;  %v901_v7 = vmul.f32 1.442695, %v891_v41  ;;  %v895_v14 = vmul.f32 %v887_v47, %v775_v35 }
 0x315   : > { %v789_v55 = vadd.f32 1.0, %v781_v42  ;;  %v782_v5 = vmul.f32 0.3275911, %v774_v22  ;;  %v897_v13 = vmul.f32 1.442695, %v889_v17  ;;  %v888_v15 = vsub.f32 0.0, %v776_v3 }
 0x316   : > { %1307 = vrcp.f32 %v791_v46  ;;  %v792_v62 = vadd.f32 1.0, %v784_v43  ;;  %v903_v10 = vmul.f32 1.442695, %v892_v51  ;;  %v899_v20 = vmul.f32 1.442695, %v890_v53 }
 0x317   : > { %1309 = vrcp.f32 %v789_v55  ;;  %v790_v16 = vadd.f32 1.0, %v782_v5  ;;  %v893_v21 = vmul.f32 %v885_v57, %v773_v38  ;;  %v909_v37 = vmul.f32 1.442695, %v895_v14 }
 0x318   : > { %v1601_v44 = vpop.eup %1299  ;;  %1311 = vrcp.f32 %v792_v62  ;;  %v896_v39 = vmul.f32 %v888_v15, %v776_v3  ;;  %v886_v46 = vsub.f32 0.0, %v774_v22  ;;  %v1623_v3 = vmul.f32 0.5, %v1555_v56 }
 0x319   : > { %v1604_v27 = vpop.eup %1301  ;;  %v811_v48 = vmul.f32 1.0614054, %v1601_v44  ;;  %1313 = vpow2.f32 %v901_v7  ;;  %v905_v38 = vmul.f32 1.442695, %v893_v21  ;;  %vm930_vm5 = vcmp.ge.f32.partialorder %v1572_v6, 0.0 }
 0x31a   : > { %v809_v54 = vmul.f32 1.0614054, %v1604_v27  ;;  %v1608_v9 = vpop.eup %1303  ;;  %1315 = vrcp.f32 %v790_v16  ;;  %v894_v14 = vmul.f32 %v886_v46, %v774_v22  ;;  %vm935_vm7 = vcmp.ge.f32.partialorder %v1583_v29, 0.0 }
 0x31b   : > { %v819_v1 = vadd.f32 -1.4531521, %v811_v48  ;;  %v812_v8 = vmul.f32 1.0614054, %v1608_v9  ;;  %v1612_v18 = vpop.eup %1305  ;;  %1317 = vpow2.f32 %v897_v13  ;;  %vm936_vm8 = vcmp.ge.f32.partialorder %v1591_v60, 0.0 }
 0x31c   : > { %v817_v11 = vadd.f32 -1.4531521, %v809_v54  ;;  %v810_v36 = vmul.f32 1.0614054, %v1612_v18  ;;  %1319 = vpow2.f32 %v903_v10  ;;  %v911_v54 = vmul.f32 1.442695, %v896_v39 }
 0x31d   : > { %v827_v61 = vmul.f32 %v1601_v44, %v819_v1  ;;  %v820_v34 = vadd.f32 -1.4531521, %v812_v8  ;;  %1321 = vpow2.f32 %v899_v20  ;;  %vm933_vm9 = vcmp.ge.f32.partialorder %v1588_v33, 0.0 }
 0x31e   : > { %v825_v19 = vmul.f32 %v1604_v27, %v817_v11  ;;  %v818_v43 = vadd.f32 -1.4531521, %v810_v36  ;;  %1323 = vpow2.f32 %v909_v37  ;;  %vm934_vm10 = vcmp.ge.f32.partialorder %v1597_v40, 0.0 }
 0x31f   : > { %v835_v31 = vadd.f32 1.4214138, %v827_v61  ;;  %v828_v42 = vmul.f32 %v1608_v9, %v820_v34  ;;  %1325 = vpow2.f32 %v905_v38 }
 0x320   : > { %v833_v35 = vadd.f32 1.4214138, %v825_v19  ;;  %v826_v51 = vmul.f32 %v1612_v18, %v818_v43  ;;  %v1620_v53 = vpop.eup %1307  ;;  %v1637_v19 = vmul.f32 0.5, %v1559_v59  ;;  %1327 = vpow2.f32 %v911_v54 }
 0x321   : > { %v843_v41 = vmul.f32 %v1601_v44, %v835_v31  ;;  %v836_v48 = vadd.f32 1.4214138, %v828_v42  ;;  %v1625_v57 = vpop.eup %1309  ;;  %v815_v5 = vmul.f32 1.0614054, %v1620_v53 }
 0x322   : > { %v841_v17 = vmul.f32 %v1604_v27, %v833_v35  ;;  %v834_v7 = vadd.f32 1.4214138, %v826_v51  ;;  %v813_v13 = vmul.f32 1.0614054, %v1625_v57  ;;  %v1633_v10 = vpop.eup %1311 }
 0x323   : > { %v851_v47 = vadd.f32 -0.28449672, %v843_v41  ;;  %v844_v1 = vmul.f32 %v1608_v9, %v836_v48  ;;  %v823_v8 = vadd.f32 -1.4531521, %v815_v5  ;;  %v1314_v21 = vpop.eup %1313  ;;  %v816_v59 = vmul.f32 1.0614054, %v1633_v10 }
 0x324   : > { %v849_v55 = vadd.f32 -0.28449672, %v841_v17  ;;  %v842_v61 = vmul.f32 %v1612_v18, %v834_v7  ;;  %v821_v20 = vadd.f32 -1.4531521, %v813_v13  ;;  %v1643_v35 = vpop.eup %1315  ;;  %v907_v41 = vmul.f32 1.442695, %v894_v14 }
 0x325   : > { %v859_v62 = vmul.f32 %v1601_v44, %v851_v47  ;;  %v852_v15 = vadd.f32 -0.28449672, %v844_v1  ;;  %v831_v36 = vmul.f32 %v1620_v53, %v823_v8  ;;  %v1318_v42 = vpop.eup %1317  ;;  %v824_v51 = vadd.f32 -1.4531521, %v816_v59 }
 0x326   : > { %v857_v11 = vmul.f32 %v1604_v27, %v849_v55  ;;  %v850_v34 = vadd.f32 -0.28449672, %v842_v61  ;;  %v829_v39 = vmul.f32 %v1625_v57, %v821_v20  ;;  %v1320_v46 = vpop.eup %1319  ;;  %v814_v55 = vmul.f32 1.0614054, %v1643_v35 }
 0x327   : > { %v867_v56 = vadd.f32 0.2548296, %v859_v62  ;;  %v860_v22 = vmul.f32 %v1608_v9, %v852_v15  ;;  %v839_v38 = vadd.f32 1.4214138, %v831_v36  ;;  %v832_v14 = vmul.f32 %v1633_v10, %v824_v51 }
 0x328   : > { %v865_v16 = vadd.f32 0.2548296, %v857_v11  ;;  %v837_v48 = vadd.f32 1.4214138, %v829_v39  ;;  %1329 = vpow2.f32 %v907_v41 }
 0x329   : > { %v875_v31 = vmul.f32 %v1601_v44, %v867_v56  ;;  %v868_v17 = vadd.f32 0.2548296, %v860_v22  ;;  %v858_v44 = vmul.f32 %v1612_v18, %v850_v34  ;;  %v847_v7 = vmul.f32 %v1620_v53, %v839_v38 }
 0x32a   : > { %v873_v37 = vmul.f32 %v1604_v27, %v865_v16  ;;  %v1322_v27 = vpop.eup %1321  ;;  %v845_v13 = vmul.f32 %v1625_v57, %v837_v48  ;;  %v822_v56 = vadd.f32 -1.4531521, %v814_v55  ;;  %v840_v22 = vadd.f32 1.4214138, %v832_v14 }
 0x32b   : > { %v915_v43 = vmul.f32 %v1314_v21, %v875_v31  ;;  %v876_v62 = vmul.f32 %v1608_v9, %v868_v17  ;;  %v866_v1 = vadd.f32 0.2548296, %v858_v44  ;;  %v1324_v5 = vpop.eup %1323  ;;  %v855_v16 = vadd.f32 -0.28449672, %v847_v7 }
 0x32c   : > { %v913_v47 = vmul.f32 %v1318_v42, %v873_v37  ;;  %v1326_v20 = vpop.eup %1325  ;;  %v853_v31 = vadd.f32 -0.28449672, %v845_v13  ;;  %v830_v9 = vmul.f32 %v1643_v35, %v822_v56  ;;  %v754_v13 = vmul.f32 0.5, %v1564_v0 }
 0x32d   : > { %v923_v54 = vsub.f32 1.0, %v915_v43  ;;  %v916_v61 = vmul.f32 %v1320_v46, %v876_v62  ;;  %v874_v8 = vmul.f32 %v1612_v18, %v866_v1  ;;  %v863_v39 = vmul.f32 %v1620_v53, %v855_v16  ;;  %v1328_v59 = vpop.eup %1327 }
 0x32e   : > { %v921_v11 = vsub.f32 1.0, %v913_v47  ;;  %v861_v18 = vmul.f32 %v1625_v57, %v853_v31  ;;  %v848_v43 = vmul.f32 %v1633_v10, %v840_v22  ;;  %v838_v48 = vadd.f32 1.4214138, %v830_v9 }
 0x32f   : > { %v939_v15 = vsub.f32 0.0, %v923_v54  ;;  %v924_v36 = vsub.f32 1.0, %v916_v61  ;;  %v914_v37 = vmul.f32 %v1322_v27, %v874_v8  ;;  %v871_v46 = vadd.f32 0.2548296, %v863_v39 }
 0x330   : > { %v937_v21 = vsub.f32 0.0, %v921_v11  ;;  %v869_v58 = vadd.f32 0.2548296, %v861_v18  ;;  %v856_v47 = vadd.f32 -0.28449672, %v848_v43  ;;  %v846_v7 = vmul.f32 %v1643_v35, %v838_v48 }
 0x331   : > { %v947_v34 = vsel %vm931_vm2, %v923_v54, %v939_v15  ;;  %v940_v44 = vsub.f32 0.0, %v924_v36  ;;  %v922_v38 = vsub.f32 1.0, %v914_v37  ;;  %v879_v27 = vmul.f32 %v1620_v53, %v871_v46 }
 0x332   : > { %v945_v42 = vsel %vm929_vm3, %v921_v11, %v937_v21  ;;  %v955_v17 = vadd.f32 1.0, %v947_v34  ;;  %v877_v62 = vmul.f32 %v1625_v57, %v869_v58  ;;  %v864_v1 = vmul.f32 %v1633_v10, %v856_v47 }
 0x333   : > { %v953_v51 = vadd.f32 1.0, %v945_v42  ;;  %v948_v55 = vsel %vm932_vm4, %v924_v36, %v940_v44  ;;  %v938_v63 = vsub.f32 0.0, %v922_v38  ;;  %v919_v14 = vmul.f32 %v1324_v5, %v879_v27 }
 0x334   : > { %v956_v54 = vadd.f32 1.0, %v948_v55  ;;  %v963_v11 = vmul.f32 %v955_v17, %v1599_v12  ;;  %v917_v15 = vmul.f32 %v1326_v20, %v877_v62  ;;  %v872_v53 = vadd.f32 0.2548296, %v864_v1  ;;  %v1330_v20 = vpop.eup %1329 }
 0x335   : > { %v946_v41 = vsel %vm930_vm5, %v922_v38, %v938_v63  ;;  %v927_v61 = vsub.f32 1.0, %v919_v14  ;;  %v854_v8 = vadd.f32 -0.28449672, %v846_v7  ;;  %v961_v57 = vmul.f32 %v953_v51, %v1623_v3 }
 0x336   : > { %v964_v2 = vmul.f32 %v956_v54, %v1637_v19  ;;  %v954_v56 = vadd.f32 1.0, %v946_v41  ;;  %v880_v31 = vmul.f32 %v1633_v10, %v872_v53  ;;  %v925_v22 = vsub.f32 1.0, %v917_v15 }
 0x337   : > { %v943_v12 = vsub.f32 0.0, %v927_v61  ;;  %v862_v0 = vmul.f32 %v1643_v35, %v854_v8  ;;  %v760_v18 = vmul.f32 0.5, %v1580_v26  ;;  %v757_v47 = vmul.f32 0.5, %v1578_v25  ;;  %v1193_v26 = vld [vmem:[%s1727_s9] ss:$0 sm:$0xff] }
 0x338   : > { %v970_v16 = vpack.c.bf16 %v964_v2, %v963_v11  ;;  %v962_v21 = vmul.f32 %v954_v56, %v754_v13  ;;  %v920_v5 = vmul.f32 %v1328_v59, %v880_v31  ;;  %v941_v3 = vsub.f32 0.0, %v925_v22 }
 0x339   : > { %v870_v19 = vadd.f32 0.2548296, %v862_v0  ;;  %v951_v9 = vsel %vm935_vm7, %v927_v61, %v943_v12  ;;  %v759_v59 = vmul.f32 0.5, %v1576_v23  ;;  %v758_v23 = vmul.f32 0.5, %v1585_v4 }
 0x33a   : > { %v969_v6 = vpack.c.bf16 %v962_v21, %v961_v57  ;;  %v928_v34 = vsub.f32 1.0, %v920_v5  ;;  %v959_v37 = vadd.f32 1.0, %v951_v9  ;;  %v949_v42 = vsel %vm933_vm9, %v925_v22, %v941_v3 }
 0x33b   : > { %v878_v36 = vmul.f32 %v1643_v35, %v870_v19  ;;  %v957_v46 = vadd.f32 1.0, %v949_v42 }
 0x33c   : > { %1252 = vmatprep.mubr.msk.bf16.mxu0 %vm1004_vm6, %v969_v6  ;;  %v944_v10 = vsub.f32 0.0, %v928_v34  ;;  %v967_v44 = vmul.f32 %v959_v37, %v759_v59 }
 0x33d   : > { %1253 = vmatmul.mubr.msk.bf16.vlgmr.msra.gmra.mrb[8].mxu0 %vm1004_vm6, %v970_v16  ;;  %v918_v39 = vmul.f32 %v1330_v20, %v878_v36  ;;  %v965_v48 = vmul.f32 %v957_v46, %v757_v47 }
 0x33e   : > { %v952_v29 = vsel %vm936_vm8, %v928_v34, %v944_v10 }
 0x33f   : > { %v960_v43 = vadd.f32 1.0, %v952_v29  ;;  %v926_v17 = vsub.f32 1.0, %v918_v39 }
 0x341   : > { %v968_v38 = vmul.f32 %v960_v43, %v760_v18  ;;  %v942_v35 = vsub.f32 0.0, %v926_v17 }
 0x343   : > { %v972_v58 = vpack.c.bf16 %v968_v38, %v967_v44  ;;  %v950_v60 = vsel %vm934_vm10, %v926_v17, %v942_v35 }
 0x344   : > { %v958_v33 = vadd.f32 1.0, %v950_v60 }
 0x346   : > { %v966_v51 = vmul.f32 %v958_v33, %v758_v23 }
 0x348   : > { %v971_v55 = vpack.c.bf16 %v966_v51, %v965_v48 }
 0x34a   : > { %1256 = vmatprep.mubr.msk.bf16.mxu1 %vm1004_vm6, %v971_v55 }
 0x34b   : > { %1257 = vmatmul.mubr.msk.bf16.vlgmr.msra.gmra.mrb[8].mxu1 %vm1004_vm6, %v972_v58 }
 0x410   : > { %v1254_v63 = vpop.f32.mrb[8].mxu0 }
 0x411   : > { %v1060_v40 = vadd.f32 %v1254_v63, %v1193_v26  ;;  %v1051_v27 = vpop.f32.mrb[9].mxu0 }
 0x412   : > { %v1052_v25 = vadd.f32 %v1193_v26, %v1051_v27  ;;  %v1255_v4 = vpop.f32.mrb[10].mxu0 }
 0x413   : > { %v1084_v54 = vadd.f32 %v1060_v40, %v1432_v24  ;;  %v1063_v62 = vadd.f32 %v1255_v4, %v1193_v26  ;;  %v1054_v1 = vpop.f32.mrb[11].mxu0 }
 0x414   : > { %v1082_v7 = vadd.f32 %v1052_v25, %v1435_v28  ;;  %v1055_v11 = vadd.f32 %v1193_v26, %v1054_v1 }
 0x415   : > { %1092 = vst.msk [vmem:[%s383_s11 + $0x10] sm:$0xff] %vm417_vm1, %v1084_v54  ;;  %v1085_v13 = vadd.f32 %v1063_v62, %v1437_v30 }
 0x416   : > { %1090 = vst.msk [vmem:[%s383_s11] sm:$0xff] %vm417_vm1, %v1082_v7  ;;  %v1083_v41 = vadd.f32 %v1055_v11, %v1441_v32 }
 0x417   : > { %1093 = vst.msk [vmem:[%s383_s11 + $0x18] sm:$0xff] %vm417_vm1, %v1085_v13 }
 0x418   : > { %1091 = vst.msk [vmem:[%s383_s11 + $0x8] sm:$0xff] %vm417_vm1, %v1083_v41 }
 0x41e   : > { %v1258_v14 = vpop.f32.mrb[8].mxu1 }
 0x41f   : > { %v1076_v2 = vadd.f32 %v1258_v14, %v1193_v26  ;;  %v1067_v24 = vpop.f32.mrb[9].mxu1 }
 0x420   : > { %v1068_v56 = vadd.f32 %v1193_v26, %v1067_v24  ;;  %v1259_v15 = vpop.f32.mrb[10].mxu1 }
 0x421   : > { %v1088_v28 = vadd.f32 %v1076_v2, %v1455_v49  ;;  %v1079_v53 = vadd.f32 %v1259_v15, %v1193_v26  ;;  %v1070_v61 = vpop.f32.mrb[11].mxu1 }
 0x422   : > { %v1086_v8 = vadd.f32 %v1068_v56, %v1452_v45  ;;  %v1071_v30 = vadd.f32 %v1193_v26, %v1070_v61 }
 0x423   : > { %1096 = vst.msk [vmem:[%s383_s11 + $0x30] sm:$0xff] %vm417_vm1, %v1088_v28  ;;  %v1089_v32 = vadd.f32 %v1079_v53, %v1461_v52 }
 0x424   : > { %1094 = vst.msk [vmem:[%s383_s11 + $0x20] sm:$0xff] %vm417_vm1, %v1086_v8  ;;  %v1087_v57 = vadd.f32 %v1071_v30, %v1457_v50 }
 0x425   : > { %1097 = vst.msk [vmem:[%s383_s11 + $0x38] sm:$0xff] %vm417_vm1, %v1089_v32 }
 0x426   : > { %1095 = vst.msk [vmem:[%s383_s11 + $0x28] sm:$0xff] %vm417_vm1, %v1087_v57 }
 0x427 PF: > { %s20_s13 = sadd.s32 1, %s1337_s13  }
 0x428   : > { %p17_p4 = scmp.ge.s32.totalorder %s20_s13, 4  }
 0x42a   :  { %19 = sbr.rel (!%p17_p4) target bundleno = 1 (0x1), region = 93 }

// kernel: atoca_forward.11
= control target key start
LH: loop header
LB: loop body
LE: loop exit
PB: predicated region body
PF: predicated region fallthrough
CT: control target
= control target key end

     0   :  { %s467_s15 = smov 0   ;;  %s509_s0 = inlined_call_operand.vmem [shape: f32[2,24,64], index: 0, kind: input, shape index: {}]   ;;  %s510_s1 = inlined_call_operand.vmem [shape: bf16[24,24], index: 1, kind: input, shape index: {}]   ;;  %s511_s2 = inlined_call_operand.vmem [shape: f32[24,1], index: 2, kind: input, shape index: {}]   ;;  %s512_s3 = inlined_call_operand.vmem [shape: f32[2,24,64], index: 3, kind: input, shape index: {}]   ;;  %s513_s4 = inlined_call_operand.vmem [shape: f32[2,24,64], index: 4, kind: output, shape index: {}]  }
   0x1 LB: > { %s392_s16 = sadd.s32 4294967295, %s439_s15   ;;  %p396_p0 = scmp.ge.s32.totalorder %s439_s15, 1  ;;  %s439_s15 = sphi %s467_s15, %s14_s15  }
   0x2   : > { %p172_p1 = scmp.lt.s32.totalorder %s439_s15, 3 }
   0x4   : > { %p173_p2 = pnand %p396_p0, %p172_p1 }
   0x5   : > { %p203_p3 = scmp.lt.s32.totalorder (!%p173_p2), %s392_s16, 1  ;;  %v431_v0 = vld [vmem:[%s510_s1] sm:$0xff] (!%p173_p2)   ;;  %vm253_vm0 = vcmask (!%p173_p2), 195584   ;;  %v229_v2 = vld [vmem:[%s511_s2 + $0x10] sm:$0xff] (!%p173_p2)  ;;  %v441_v3 = vmov (!%p173_p2), 0   ;;  %v228_v4 = vld [vmem:[%s511_s2 + $0x8] sm:$0xff] (!%p173_p2) }
   0x6   : > { %176 = sbr.rel (%p173_p2) target bundleno = 250 (0xfa), region = 36  ;;  %v227_v1 = vld [vmem:[%s511_s2] sm:$0xff] (!%p173_p2)  ;;  %414 = vmatprep.mubr.msk.bf16.mxu0 (!%p173_p2), %vm253_vm0, %v431_v0  ;;  %429 = vset.pattern.permute.xlu0 (!%p173_p2), %v441_v3  ;;  %vm260_vm1 = vcmask (!%p173_p2), 1043456   ;;  %v432_v11 = vld [vmem:[%s510_s1 + $0x8] ss:$0 sps:$4 sm:$0xff] (!%p173_p2)   ;;  %vm321_vm2 = vcmask (!%p173_p2), 523264  }
   0x7   : > { %232 = vperm.xlu0 (!%p173_p2), %429, %v227_v1   ;;  %430 = vset.pattern.permute.xlu1 (!%p173_p2), %v441_v3 }
   0x8   : > { %242 = vperm.xlu1 (!%p173_p2), %430, %v229_v2  }
   0xb   : > { %237 = vperm.xlu0 (!%p173_p2), %429, %v228_v4  }
   0xd   : > { %s515_s16 = smov (!%p203_p3, %s392_s16), 1 }
   0xe   : > { %s485_s23 = smul.u32 24, %s515_s16 }
  0x10   : > { %s207_s28 = scalar_lea.vmem %s509_s0, %s485_s23  ;;  %s212_s7 = scalar_lea.vmem %s512_s3, %s485_s23 }
  0x11   : > { %v222_v5 = vld [vmem:[%s207_s28] sm:$0xff]  ;;  %v223_v6 = vld [vmem:[%s207_s28 + $0x8] sm:$0xff]  ;;  %v224_v7 = vld [vmem:[%s207_s28 + $0x10] sm:$0xff]  ;;  %s217_s10 = scalar_lea.vmem %s513_s4, %s485_s23 }
  0x12   : > { %v225_v8 = vpack.c.bf16 %v223_v6, %v222_v5  ;;  %v226_v9 = vpack.c.bf16 %v224_v7, %v224_v7  ;;  %v314_v15 = vld [vmem:[%s212_s7 + $0x10] sm:$0xff]  ;;  %v312_v18 = vld [vmem:[%s212_s7] sm:$0xff]  ;;  %v313_v24 = vld [vmem:[%s212_s7 + $0x8] sm:$0xff] }
  0x14   : > { %410 = vmatprep.subr.bf16.mxu0 %v225_v8  ;;  %v262_v10 = vsel %vm260_vm1, %v226_v9, 0 }
  0x15   : > { %411 = vmatpush3.bf16.msra.mxu0 %v225_v8 }
  0x16   : > { %418 = vmatprep.subr.msk.bf16.mxu0 %vm260_vm1, %v226_v9 }
  0x19   : > { %413 = vmatpush3.bf16.msra.mxu0 %v262_v10 }
  0x1c   : > { %415 = vmatmul.mubr.msk.bf16.vlgmr.msra.gmra.mrb[0].mxu0 %vm253_vm0, %v432_v11 }
  0x86   : > { %v233_v12 = vpop.permute.xlu0 %232 }
  0x87   : > { %v243_v13 = vpop.permute.xlu1 %242 }
  0x8a   : > { %v238_v21 = vpop.permute.xlu0 %237 }
  0xef   : > { %v416_v14 = vpop.f32.mrb[0].mxu0 }
  0xf0   : > { %v307_v16 = vadd.f32 %v416_v14, %v243_v13  ;;  %v298_v17 = vpop.f32.mrb[1].mxu0 }
  0xf1   : > { %v299_v19 = vadd.f32 %v298_v17, %v233_v12  ;;  %v417_v20 = vpop.f32.mrb[2].mxu0 }
  0xf2   : > { %v317_v22 = vadd.f32 %v314_v15, %v307_v16  ;;  %v301_v23 = vpop.f32.mrb[3].mxu0 }
  0xf3   : > { %v315_v25 = vadd.f32 %v312_v18, %v299_v19  ;;  %v302_v26 = vadd.f32 %v301_v23, %v238_v21 }
  0xf4   : > { %v320_v27 = vmax.f32 %v317_v22, 0.0 }
  0xf5   : > { %v318_v28 = vmax.f32 %v315_v25, 0.0  ;;  %v316_v29 = vadd.f32 %v313_v24, %v302_v26 }
  0xf6   : > { %324 = vst.msk [vmem:[%s217_s10 + $0x10] sm:$0xff] %vm321_vm2, %v320_v27 }
  0xf7   : > { %322 = vst.msk [vmem:[%s217_s10] sm:$0xff] %vm321_vm2, %v318_v28  ;;  %v319_v30 = vmax.f32 %v316_v29, 0.0 }
  0xf9   : > { %323 = vst.msk [vmem:[%s217_s10 + $0x8] sm:$0xff] %vm321_vm2, %v319_v30 }
  0xfa PF: > { %s14_s15 = sadd.s32 1, %s439_s15  }
  0xfb   : > { %p11_p4 = scmp.ge.s32.totalorder %s14_s15, 4  }
  0xfd   :  { %13 = sbr.rel (!%p11_p4) target bundleno = 1 (0x1), region = 69 }

// kernel: atoca_forward.10
= control target key start
LH: loop header
LB: loop body
LE: loop exit
PB: predicated region body
PF: predicated region fallthrough
CT: control target
= control target key end

     0   :  { %s1871_s18 = smov 0   ;;  %s2231_s0 = inlined_call_operand.vmem [shape: bf16[128,216], index: 0, kind: input, shape index: {}]   ;;  %s2232_s1 = inlined_call_operand.vmem [shape: bf16[216,24], index: 1, kind: input, shape index: {}]   ;;  %s2233_s2 = inlined_call_operand.vmem [shape: f32[1,24], index: 2, kind: input, shape index: {}]   ;;  %s2234_s3 = inlined_call_operand.vmem [shape: f32[1,24], index: 3, kind: input, shape index: {}]   ;;  %s2235_s4 = inlined_call_operand.vmem [shape: f32[1,24], index: 4, kind: input, shape index: {}]   ;;  %s2236_s5 = inlined_call_operand.vmem [shape: f32[128,24], index: 5, kind: output, shape index: {}]  }
   0x1 LB: > { %s1478_s19 = sadd.s32 4294967295, %s1833_s18   ;;  %p1482_p0 = scmp.ge.s32.totalorder %s1833_s18, 1  ;;  %s1833_s18 = sphi %s1871_s18, %s15_s18  }
   0x2   : > { %p189_p1 = scmp.lt.s32.totalorder %s1833_s18, 3 }
   0x4   : > { %p190_p2 = pnand %p1482_p0, %p189_p1 }
   0x5   : > { %v1799_v0 = vld [vmem:[%s2232_s1] sm:$0xff] (!%p190_p2)   ;;  %v1835_v1 = vmov (!%p190_p2), 0   ;;  %v1800_v2 = vld [vmem:[%s2232_s1 + $0x8] sm:$0xff] (!%p190_p2)   ;;  %s1483_s24 = sshll.u32 (!%p190_p2), %s1478_s19, 3  ;;  %v473_v3 = vlaneseq (!%p190_p2)  ;;  %v1801_v4 = vld [vmem:[%s2232_s1 + $0x10] sm:$0xff] (!%p190_p2)   ;;  %vm391_vm0 = vcmask (!%p190_p2), 719872  }
   0x6   : > { %193 = sbr.rel (%p190_p2) target bundleno = 1436 (0x59c), region = 40  ;;  %408 = vmatprep.subr.bf16.mxu0 (!%p190_p2), %v1835_v1  ;;  %p219_p3 = scmp.lt.s32.totalorder (!%p190_p2), %s1483_s24, 15  ;;  %v1802_v7 = vld [vmem:[%s2232_s1 + $0x18] sm:$0xff] (!%p190_p2)   ;;  %v1803_v11 = vld [vmem:[%s2232_s1 + $0x20] sm:$0xff] (!%p190_p2)   ;;  %v1804_v14 = vld [vmem:[%s2232_s1 + $0x28] sm:$0xff] (!%p190_p2)   ;;  %vm404_vm8 = vcmask (!%p190_p2), 1043456  }
   0x7   : > { %409 = vmatpush1.bf16.msra.mxu0 (!%p190_p2), %v1799_v0  ;;  %v1894_v5 = vshrl.u32 (!%p190_p2), %v473_v3, 7  ;;  %v1896_v6 = vand.u32 (!%p190_p2), 127, %v473_v3  ;;  %v1805_v16 = vld [vmem:[%s2232_s1 + $0x30] sm:$0xff] (!%p190_p2)   ;;  %v1836_v17 = vmov (!%p190_p2), 1.0|1.0   ;;  %v1806_v18 = vld [vmem:[%s2232_s1 + $0x38] sm:$0xff] (!%p190_p2)  }
   0x8   : > { %410 = vmatprep.subr.bf16.mxu0 (!%p190_p2), %v1835_v1  ;;  %v1807_v19 = vld [vmem:[%s2232_s1 + $0x40] sm:$0xff] (!%p190_p2)   ;;  %v1808_v20 = vld [vmem:[%s2232_s1 + $0x48] sm:$0xff] (!%p190_p2)   ;;  %v1809_v21 = vld [vmem:[%s2232_s1 + $0x50] sm:$0xff] (!%p190_p2)   ;;  %v1837_v35 = vmov (!%p190_p2), 1.0   ;;  %vm2237_vm12 = vcmask (!%p190_p2), 195584   ;;  %v1838_v61 = vmov (!%p190_p2), 0.0|0.0  }
   0x9   : > { %v1910_v8 = vmul.u32 (!%p190_p2), 4, %v1896_v6  ;;  %v1913_v9 = vadd.s32 (!%p190_p2), 1, %v1896_v6  ;;  %v1916_v10 = vadd.s32 (!%p190_p2), 8, %v1894_v5  ;;  %v1810_v22 = vld [vmem:[%s2232_s1 + $0x58] sm:$0xff] (!%p190_p2)   ;;  %v1811_v23 = vld [vmem:[%s2232_s1 + $0x60] sm:$0xff] (!%p190_p2)   ;;  %v1989_v33 = vadd.s32 (!%p190_p2), 16, %v1894_v5 }
   0xa   : > { %v1812_v24 = vld [vmem:[%s2232_s1 + $0x68] ss:$0 sps:$4 sm:$0xff] (!%p190_p2)   ;;  %v1488_v36 = vld [vmem:[%s2233_s2] ss:$0 sm:$0xff] (!%p190_p2)  ;;  %vm2239_vm13 = vmmov (!%p190_p2), 0   ;;  %v1840_v62 = vmov (!%p190_p2), 0.0  }
   0xb   : > { %411 = vmatpush1.bf16.msra.mxu0 (!%p190_p2), %v1800_v2  ;;  %v484_v13 = vmul.u32 (!%p190_p2), 4, %v1913_v9  ;;  %vm480_vm1 = vcmp.ge.s32.totalorder (!%p190_p2), %v1894_v5, %v1910_v8  ;;  %vm481_vm3 = vcmp.ge.s32.totalorder (!%p190_p2), %v1916_v10, %v1910_v8  ;;  %v406_v25 = vsel (!%p190_p2), %vm404_vm8, %v1812_v24, 0 }
   0xc   : > { %412 = vmatprep.subr.bf16.mxu0 (!%p190_p2), %v1835_v1  ;;  %vm482_vm9 = vcmp.ge.s32.totalorder (!%p190_p2), %v1989_v33, %v1910_v8 }
   0xd   : > { %s2269_s24 = smov (!%p219_p3, %s1483_s24), 15  ;;  %vm485_vm2 = vcmp.lt.s32.totalorder %v1894_v5, %v484_v13  ;;  %vm486_vm4 = vcmp.lt.s32.totalorder %v1916_v10, %v484_v13  ;;  %vm487_vm10 = vcmp.lt.s32.totalorder %v1989_v33, %v484_v13  ;;  %v505_v13 = vmul.u32 16, %v1894_v5 }
   0xe   : > { %s1578_s27 = sshll.u32 %s2269_s24, 3  ;;  %vm488_vm5 = vmand %vm480_vm1, %vm485_vm2  ;;  %vm689_vm1 = vcmask 523264  }
   0xf   : > { %413 = vmatpush1.bf16.msra.mxu0 %v1801_v4  ;;  %s1907_s7 = scalar_lea.vmem %s2231_s0, %s1578_s27  ;;  %vm489_vm6 = vmand %vm481_vm3, %vm486_vm4  ;;  %vm506_vm14 = vcmp.ge.s32.totalorder %v1896_v6, %v505_v13  ;;  %s2205_s14 = scalar_lea.vmem %s2236_s5, %s1578_s27 }
  0x10   : > { %414 = vmatprep.subr.bf16.mxu0 %v1835_v1  ;;  %v1815_v12 = vld [vmem:[%s1907_s7 + $0x4] ss:$8 sps:$4 sm:$0xff]   ;;  %vm1935_vm7 = vmpackc.low %vm489_vm6, %vm488_vm5  ;;  %v1813_v26 = vld [vmem:[%s1907_s7] ss:$8 sps:$4 sm:$0xff]   ;;  %vm980_vm5 = vcmask 1045504   ;;  %vm2238_vm6 = vcmask 48128  }
  0x11   : > { %1511 = vmatprep.mubr.msk.bf16.mxu0 %vm391_vm0, %v1815_v12  ;;  %1754 = vmatprep.subr.msk.bf16.mxu1 %vm1935_vm7, %v1836_v17  ;;  %v1816_v27 = vld [vmem:[%s1907_s7 + $0x14] ss:$8 sps:$4 sm:$0xff]   ;;  %v1818_v28 = vld [vmem:[%s1907_s7 + $0x10] ss:$8 sps:$4 sm:$0xff]   ;;  %v1819_v29 = vld [vmem:[%s1907_s7 + $0x24] ss:$8 sps:$4 sm:$0xff]  }
  0x12   : > { %1756 = vmatpush3.bf16.msk.msra.mxu1 %vm1935_vm7, %v1836_v17  ;;  %v1821_v30 = vld [vmem:[%s1907_s7 + $0x20] ss:$8 sps:$4 sm:$0xff]   ;;  %v1822_v31 = vld [vmem:[%s1907_s7 + $0x34] ss:$8 sps:$4 sm:$0xff]   ;;  %v1824_v32 = vld [vmem:[%s1907_s7 + $0x30] ss:$8 sps:$4 sm:$0xff]  }
  0x13   : > { %415 = vmatpush1.bf16.msra.mxu0 %v1802_v7  ;;  %vm1994_vm11 = vmand %vm482_vm9, %vm487_vm10  ;;  %v499_v7 = vadd.s32 1, %v1894_v5 }
  0x14   : > { %416 = vmatprep.subr.bf16.mxu0 %v1835_v1  ;;  %1645 = vmatprep.subr.msk.mxu1 %vm1994_vm11, %v1837_v35 }
  0x16   : > { %1646 = vmatpush3.msk.msra.mxu1 %vm1994_vm11, %v1837_v35 }
  0x17   : > { %417 = vmatpush1.bf16.msra.mxu0 %v1803_v11  ;;  %1757 = vmatprep.subr.bf16.mxu1 %v1838_v61 }
  0x18   : > { %418 = vmatprep.subr.bf16.mxu0 %v1835_v1 }
  0x1b   : > { %419 = vmatpush1.bf16.msra.mxu0 %v1804_v14  ;;  %v507_v14 = vmul.u32 16, %v499_v7 }
  0x1c   : > { %420 = vmatprep.subr.bf16.mxu0 %v1835_v1 }
  0x1d   : > { %vm508_vm15 = vcmp.lt.s32.totalorder %v1896_v6, %v507_v14 }
  0x1f   : > { %421 = vmatpush1.bf16.msra.mxu0 %v1805_v16 }
  0x20   : > { %422 = vmatprep.subr.bf16.mxu0 %v1835_v1 }
  0x23   : > { %423 = vmatpush1.bf16.msra.mxu0 %v1806_v18 }
  0x24   : > { %424 = vmatprep.subr.bf16.mxu0 %v1835_v1 }
  0x27   : > { %425 = vmatpush1.bf16.msra.mxu0 %v1807_v19 }
  0x28   : > { %426 = vmatprep.subr.bf16.mxu0 %v1835_v1 }
  0x2b   : > { %427 = vmatpush1.bf16.msra.mxu0 %v1808_v20 }
  0x2c   : > { %428 = vmatprep.subr.bf16.mxu0 %v1835_v1 }
  0x2f   : > { %429 = vmatpush1.bf16.msra.mxu0 %v1809_v21 }
  0x30   : > { %430 = vmatprep.subr.bf16.mxu0 %v1835_v1 }
  0x33   : > { %431 = vmatpush1.bf16.msra.mxu0 %v1810_v22 }
  0x34   : > { %432 = vmatprep.subr.bf16.mxu0 %v1835_v1 }
  0x37   : > { %433 = vmatpush1.bf16.msra.mxu0 %v1811_v23 }
  0x38   : > { %434 = vmatprep.subr.bf16.mxu0 %v1835_v1 }
  0x3b   : > { %435 = vmatpush1.bf16.msra.mxu0 %v406_v25 }
  0x3e   : > { %441 = vmatmul.mubr.bf16.vlgmr.msra.gmra.mrb[0].mxu0 %v1813_v26 }
  0x3f   : > { %1512 = vmatprep.mubr.msk.bf16.mxu0 %vm391_vm0, %v1816_v27 }
  0x46   : > { %449 = vmatmul.mubr.bf16.gmra.mrb[4].mxu0 %v1818_v28 }
  0x47   : > { %1513 = vmatprep.mubr.msk.bf16.mxu0 %vm391_vm0, %v1819_v29 }
  0x4e   : > { %457 = vmatmul.mubr.bf16.gmra.mrb[8].mxu0 %v1821_v30 }
  0x4f   : > { %1514 = vmatprep.mubr.msk.bf16.mxu0 %vm391_vm0, %v1822_v31  ;;  %vm509_vm0 = vmand %vm506_vm14, %vm508_vm15  ;;  %vm1054_vm15 = vcmask 31744  }
  0x50   : > { %v1519_v20 = vsel %vm509_vm0, 1.0, %v1840_v62 }
  0x56   : > { %465 = vmatmul.mubr.bf16.gmra.mrb[12].mxu0 %v1824_v32 }
 0x111   : > { %v442_v37 = vpop.f32.mrb[0].mxu0 }
 0x112   : > { %v2007_v38 = vadd.f32 %v1488_v36, %v442_v37  ;;  %v444_v39 = vpop.f32.mrb[1].mxu0  ;;  %v500_v37 = vmul.u32 4, %v499_v7 }
 0x113   : > { %v445_v40 = vpop.f32.mrb[2].mxu0 }
 0x114   : > { %v2009_v41 = vadd.f32 %v1488_v36, %v445_v40  ;;  %v447_v42 = vpop.f32.mrb[3].mxu0  ;;  %1647 = vmatprep.mubr.msk.f32.mxu1 %vm2237_vm12, %v2007_v38  ;;  %v763_v21 = vmul.f32 %v2007_v38, %v2007_v38  ;;  %vm501_vm3 = vcmp.lt.s32.totalorder %v1896_v6, %v500_v37  ;;  %v1575_v37 = vld [vmem:[%s2235_s4] ss:$0 sm:$0xff] }
 0x116   : > { %1648 = vmatmul.mubr.msk.f32.vlgmr.msra.gmra.mrb[0].mxu1 %vm2237_vm12, %v2009_v41  ;;  %v764_v22 = vmul.f32 %v2009_v41, %v2009_v41 }
 0x119   : > { %v450_v43 = vpop.f32.mrb[4].mxu0 }
 0x11a   : > { %v2015_v44 = vadd.f32 %v1488_v36, %v450_v43  ;;  %v452_v45 = vpop.f32.mrb[5].mxu0 }
 0x11b   : > { %v453_v46 = vpop.f32.mrb[6].mxu0 }
 0x11c   : > { %v2017_v47 = vadd.f32 %v1488_v36, %v453_v46  ;;  %v455_v48 = vpop.f32.mrb[7].mxu0  ;;  %1650 = vmatprep.mubr.msk.f32.mxu1 %vm2237_vm12, %v2015_v44  ;;  %v765_v23 = vmul.f32 %v2015_v44, %v2015_v44 }
 0x11e   : > { %1651 = vmatmul.mubr.msk.f32.gmra.mrb[2].mxu1 %vm2237_vm12, %v2017_v47  ;;  %v766_v15 = vmul.f32 %v2017_v47, %v2017_v47 }
 0x121   : > { %v458_v49 = vpop.f32.mrb[8].mxu0 }
 0x122   : > { %v2023_v50 = vadd.f32 %v1488_v36, %v458_v49  ;;  %v460_v51 = vpop.f32.mrb[9].mxu0 }
 0x123   : > { %v461_v52 = vpop.f32.mrb[10].mxu0  ;;  %v526_v51 = vmul.u32 16, %v1913_v9 }
 0x124   : > { %v2025_v53 = vadd.f32 %v1488_v36, %v461_v52  ;;  %v463_v54 = vpop.f32.mrb[11].mxu0  ;;  %1653 = vmatprep.mubr.msk.f32.mxu1 %vm2237_vm12, %v2023_v50  ;;  %v517_v52 = vmul.u32 16, %v1896_v6 }
 0x125   : > { %vm527_vm9 = vcmp.lt.s32.totalorder %v1894_v5, %v526_v51  ;;  %vm528_vm14 = vcmp.lt.s32.totalorder %v1916_v10, %v526_v51 }
 0x126   : > { %1654 = vmatmul.mubr.msk.f32.gmra.mrb[4].mxu1 %vm2237_vm12, %v2025_v53  ;;  %v768_v24 = vmul.f32 %v2025_v53, %v2025_v53 }
 0x129   : > { %v466_v55 = vpop.f32.mrb[12].mxu0 }
 0x12a   : > { %v2031_v56 = vadd.f32 %v1488_v36, %v466_v55  ;;  %v468_v57 = vpop.f32.mrb[13].mxu0 }
 0x12b   : > { %v469_v58 = vpop.f32.mrb[14].mxu0  ;;  %v513_v57 = vadd.s32 32, %v1894_v5 }
 0x12c   : > { %v2033_v59 = vadd.f32 %v1488_v36, %v469_v58  ;;  %v471_v60 = vpop.f32.mrb[15].mxu0  ;;  %1656 = vmatprep.mubr.msk.f32.mxu1 %vm2237_vm12, %v2031_v56  ;;  %v769_v25 = vmul.f32 %v2031_v56, %v2031_v56  ;;  %v497_v36 = vmul.u32 4, %v1894_v5  ;;  %v514_v58 = vadd.s32 40, %v1894_v5 }
 0x12e   : > { %1657 = vmatmul.mubr.msk.f32.gmra.mrb[6].mxu1 %vm2237_vm12, %v2033_v59  ;;  %v770_v26 = vmul.f32 %v2033_v59, %v2033_v59  ;;  %vm498_vm2 = vcmp.ge.s32.totalorder %v1896_v6, %v497_v36  ;;  %v512_v6 = vadd.s32 24, %v1894_v5 }
 0x12f   : > { %1675 = vmatprep.mubr.msk.f32.mxu1 %vm2239_vm13, %v1840_v62  ;;  %vm502_vm4 = vmand %vm498_vm2, %vm501_vm3  ;;  %vm529_vm2 = vcmp.lt.s32.totalorder %v1989_v33, %v526_v51 }
 0x130   : > { %v1518_v48 = vsel %vm502_vm4, 1.0, %v1840_v62  ;;  %vm521_vm4 = vcmp.ge.s32.totalorder %v512_v6, %v517_v52 }
 0x1e9   : > { %v1649_v63 = vpop.f32.mrb[0].mxu1 }
 0x1ea   : > { %v650_v0 = vpop.f32.mrb[1].mxu1 }
 0x1eb   : > { %v1758_v1 = vpack.c.bf16 %v1649_v63, %v650_v0  ;;  %v516_v63 = vadd.s32 56, %v1894_v5 }
 0x1ed   : > { %1759 = vmatpush3.bf16.msra.mxu1 %v1758_v1 }
 0x1ee   : > { %1760 = vmatprep.subr.bf16.mxu1 %v1838_v61 }
 0x1f1   : > { %v1652_v2 = vpop.f32.mrb[2].mxu1 }
 0x1f2   : > { %v660_v3 = vpop.f32.mrb[3].mxu1 }
 0x1f3   : > { %v1761_v4 = vpack.c.bf16 %v1652_v2, %v660_v3 }
 0x1f5   : > { %1762 = vmatpush3.bf16.msra.mxu1 %v1761_v4 }
 0x1f6   : > { %1763 = vmatprep.subr.bf16.mxu1 %v1838_v61 }
 0x1f9   : > { %v1655_v8 = vpop.f32.mrb[4].mxu1 }
 0x1fa   : > { %v670_v11 = vpop.f32.mrb[5].mxu1 }
 0x1fb   : > { %v1764_v12 = vpack.c.bf16 %v1655_v8, %v670_v11 }
 0x1fd   : > { %1765 = vmatpush3.bf16.msra.mxu1 %v1764_v12 }
 0x1fe   : > { %1766 = vmatprep.subr.bf16.mxu1 %v1838_v61 }
 0x201   : > { %v1658_v16 = vpop.f32.mrb[6].mxu1 }
 0x202   : > { %v680_v18 = vpop.f32.mrb[7].mxu1 }
 0x203   : > { %v1767_v19 = vpack.c.bf16 %v1658_v16, %v680_v18 }
 0x205   : > { %1768 = vmatpush3.bf16.msra.mxu1 %v1767_v19 }
 0x206   : > { %1770 = vmatprep.subr.msk.bf16.mxu1 %vm1935_vm7, %v1836_v17 }
 0x208   : > { %1676 = vmatmul.mubr.msk.f32.vlgmr.msra.gmra.mrb[8].mxu1 %vm689_vm1, %v1519_v20 }
 0x209   : > { %1772 = vmatpush3.bf16.msk.msra.mxu1 %vm1935_vm7, %v1836_v17  ;;  %1684 = vmatprep.mubr.msk.f32.mxu1 %vm2237_vm12, %v763_v21  ;;  %v767_v17 = vmul.f32 %v2023_v50, %v2023_v50  ;;  %vm518_vm7 = vcmp.ge.s32.totalorder %v1894_v5, %v517_v52 }
 0x20a   : > { %1682 = vmatprep.subr.msk.mxu1 %vm1994_vm11, %v1837_v35  ;;  %vm535_vm10 = vmand %vm518_vm7, %vm527_vm9  ;;  %vm530_vm7 = vcmp.lt.s32.totalorder %v512_v6, %v526_v51 }
 0x20b   : > { %v1520_v54 = vsel %vm535_vm10, 1.0, %v1840_v62  ;;  %vm2122_vm9 = vmand %vm521_vm4, %vm530_vm7  ;;  %vm522_vm10 = vcmp.ge.s32.totalorder %v513_v57, %v517_v52 }
 0x20c   : > { %v1523_v16 = vsel %vm2122_vm9, 1.0, %v1840_v62 }
 0x20d   : > { %1683 = vmatpush3.msk.msra.mxu1 %vm1994_vm11, %v1837_v35  ;;  %vm519_vm11 = vcmp.ge.s32.totalorder %v1916_v10, %v517_v52 }
 0x20e   : > { %1685 = vmatmul.mubr.msk.f32.vlgmr.msra.gmra.mrb[10].mxu1 %vm2237_vm12, %v764_v22  ;;  %1773 = vmatprep.subr.bf16.mxu1 %v1838_v61  ;;  %vm2110_vm0 = vmand %vm519_vm11, %vm528_vm14  ;;  %vm531_vm11 = vcmp.lt.s32.totalorder %v513_v57, %v526_v51 }
 0x20f   : > { %1687 = vmatprep.mubr.msk.f32.mxu1 %vm2237_vm12, %v765_v23  ;;  %vm2128_vm14 = vmand %vm522_vm10, %vm531_vm11  ;;  %vm525_vm10 = vcmp.ge.s32.totalorder %v516_v63, %v517_v52  ;;  %vm534_vm11 = vcmp.lt.s32.totalorder %v516_v63, %v526_v51 }
 0x210   : > { %v1524_v18 = vsel %vm2128_vm14, 1.0, %v1840_v62 }
 0x212   : > { %1688 = vmatmul.mubr.msk.f32.gmra.mrb[12].mxu1 %vm2237_vm12, %v766_v15 }
 0x213   : > { %1690 = vmatprep.mubr.msk.f32.mxu1 %vm2237_vm12, %v767_v17 }
 0x216   : > { %1691 = vmatmul.mubr.msk.f32.gmra.mrb[14].mxu1 %vm2237_vm12, %v768_v24 }
 0x217   : > { %1693 = vmatprep.mubr.msk.f32.mxu1 %vm2237_vm12, %v769_v25 }
 0x21a   : > { %1694 = vmatmul.mubr.msk.f32.gmra.mrb[16].mxu1 %vm2237_vm12, %v770_v26 }
 0x21b   : > { %1712 = vmatprep.mubr.msk.f32.mxu1 %vm2239_vm13, %v1840_v62 }
 0x2db   : > { %v759_v27 = vpop.f32.mrb[8].mxu1 }
 0x2dc   : > { %v1677_v28 = vpop.f32.mrb[9].mxu1  ;;  %v970_v49 = vmul.f32 0.015625, %v759_v27 }
 0x2de   : > { %v972_v3 = vmul.f32 %v970_v49, %v970_v49 }
 0x2e1   : > { %v1686_v29 = vpop.f32.mrb[10].mxu1 }
 0x2e2   : > { %v861_v30 = vpop.f32.mrb[11].mxu1 }
 0x2e3   : > { %v1774_v31 = vpack.c.bf16 %v1686_v29, %v861_v30 }
 0x2e5   : > { %v1689_v32 = vpop.f32.mrb[12].mxu1  ;;  %1775 = vmatpush3.bf16.msra.mxu1 %v1774_v31 }
 0x2e6   : > { %v871_v34 = vpop.f32.mrb[13].mxu1  ;;  %1776 = vmatprep.subr.bf16.mxu1 %v1838_v61 }
 0x2e7   : > { %v1777_v35 = vpack.c.bf16 %v1689_v32, %v871_v34  ;;  %v1574_v34 = vld [vmem:[%s2234_s3] ss:$0 sm:$0xff] }
 0x2e9   : > { %v1692_v39 = vpop.f32.mrb[14].mxu1  ;;  %1778 = vmatpush3.bf16.msra.mxu1 %v1777_v35 }
 0x2ea   : > { %v881_v40 = vpop.f32.mrb[15].mxu1  ;;  %1779 = vmatprep.subr.bf16.mxu1 %v1838_v61 }
 0x2eb   : > { %v1780_v42 = vpack.c.bf16 %v1692_v39, %v881_v40 }
 0x2ed   : > { %v1695_v43 = vpop.f32.mrb[16].mxu1  ;;  %1781 = vmatpush3.bf16.msra.mxu1 %v1780_v42 }
 0x2ee   : > { %v891_v45 = vpop.f32.mrb[17].mxu1  ;;  %1782 = vmatprep.subr.bf16.mxu1 %v1838_v61  ;;  %v515_v61 = vadd.s32 48, %v1894_v5  ;;  %v1521_v5 = vsel %vm2110_vm0, 1.0, %v1840_v62  ;;  %vm2259_vm0 = vcmask 48128  }
 0x2ef   : > { %v1783_v46 = vpack.c.bf16 %v1695_v43, %v891_v45 }
 0x2f0   : > { %vm524_vm4 = vcmp.ge.s32.totalorder %v515_v61, %v517_v52  ;;  %vm533_vm7 = vcmp.lt.s32.totalorder %v515_v61, %v526_v51 }
 0x2f1   : > { %1784 = vmatpush3.bf16.msra.mxu1 %v1783_v46 }
 0x2f2   : > { %1715 = vmatprep.subr.mxu1 %v1840_v62 }
 0x2f4   : > { %1713 = vmatmul.mubr.msk.f32.vlgmr.msra.gmra.mrb[18].mxu1 %vm689_vm1, %v1519_v20  ;;  %vm520_vm1 = vcmp.ge.s32.totalorder %v1989_v33, %v517_v52 }
 0x2f5   : > { %1716 = vmatpush3.msk.msra.mxu1 %vm980_vm5, %v1518_v48  ;;  %1717 = vmatprep.mubr.msk.f32.mxu1 %vm2239_vm13, %v1840_v62  ;;  %vm2118_vm3 = vmand %vm520_vm1, %vm529_vm2  ;;  %vm523_vm1 = vcmp.ge.s32.totalorder %v514_v58, %v517_v52  ;;  %vm532_vm2 = vcmp.lt.s32.totalorder %v514_v58, %v526_v51 }
 0x2f6   : > { %vm2132_vm12 = vmand %vm523_vm1, %vm532_vm2  ;;  %v1522_v13 = vsel %vm2118_vm3, 1.0, %v1840_v62 }
 0x2f7   : > { %vm2142_vm13 = vmand %vm525_vm10, %vm534_vm11  ;;  %v1525_v19 = vsel %vm2132_vm12, 1.0, %v1840_v62 }
 0x2f8   : > { %1718 = vmatmul.mubr.msk.f32.vlgmr.msra.gmra.mrb[20].mxu1 %vm2238_vm6, %v970_v49  ;;  %vm2138_vm6 = vmand %vm524_vm4, %vm533_vm7  ;;  %v1527_v21 = vsel %vm2142_vm13, 1.0, %v1840_v62 }
 0x2f9   : > { %1722 = vmatprep.mubr.msk.f32.mxu1 %vm1054_vm15, %v1520_v54  ;;  %v1526_v20 = vsel %vm2138_vm6, 1.0, %v1840_v62 }
 0x3c7   : > { %v966_v2 = vpop.f32.mrb[18].mxu1 }
 0x3c8   : > { %v971_v4 = vmul.f32 0.015625, %v966_v2  ;;  %v1714_v7 = vpop.f32.mrb[19].mxu1 }
 0x3ca   : > { %v973_v8 = vsub.f32 %v971_v4, %v972_v3 }
 0x3cb   : > { %v1050_v11 = vpop.f32.mrb[20].mxu1 }
 0x3cc   : > { %v1719_v12 = vpop.f32.mrb[21].mxu1  ;;  %1720 = vmatprep.subr.msk.mxu1 %vm404_vm8, %v1050_v11  ;;  %v974_v14 = vadd.f32 1e-05, %v973_v8 }
 0x3cd   : > { %1721 = vmatpush3.msk.msra.mxu1 %vm404_vm8, %v1050_v11 }
 0x3ce   : > { %1723 = vmatmul.mubr.msk.f32.vlgmr.msra.gmra.mrb[22].mxu1 %vm1054_vm15, %v1521_v5  ;;  %1734 = vmatprep.subr.mxu1 %v1840_v62  ;;  %1825 = vrsqrt.f32 %v974_v14 }
 0x3cf   : > { %1725 = vmatprep.mubr.msk.f32.mxu1 %vm1054_vm15, %v1522_v13  ;;  %1735 = vmatpush3.msk.msra.mxu1 %vm980_vm5, %v1518_v48  ;;  %vm2258_vm5 = vmmov 0  }
 0x3d2   : > { %1726 = vmatmul.mubr.msk.f32.gmra.mrb[24].mxu1 %vm1054_vm15, %v1523_v16 }
 0x3d3   : > { %1728 = vmatprep.mubr.msk.f32.mxu1 %vm1054_vm15, %v1524_v18 }
 0x3d6   : > { %1729 = vmatmul.mubr.msk.f32.gmra.mrb[26].mxu1 %vm1054_vm15, %v1525_v19 }
 0x3d7   : > { %1731 = vmatprep.mubr.msk.f32.mxu1 %vm1054_vm15, %v1526_v20 }
 0x3d8   : > { %v1826_v22 = vpop.eup %1825 }
 0x3da   : > { %1732 = vmatmul.mubr.msk.f32.gmra.mrb[28].mxu1 %vm1054_vm15, %v1527_v21 }
 0x3db   : > { %1736 = vmatprep.mubr.msk.f32.mxu1 %vm2258_vm5, %v1840_v62 }
 0x3de   : > { %1737 = vmatmul.mubr.msk.f32.vlgmr.msra.gmra.mrb[30].mxu1 %vm2259_vm0, %v1826_v22 }
 0x3df   : > { %1741 = vmatprep.mubr.msk.f32.mxu1 %vm1054_vm15, %v1520_v54 }
 0x4a1   : > { %v1724_v23 = vpop.f32.mrb[22].mxu1 }
 0x4a2   : > { %v1148_v15 = vpop.f32.mrb[23].mxu1  ;;  %v1369_v62 = vsub.f32 %v2009_v41, %v1724_v23 }
 0x4a3   : > { %v1368_v31 = vsub.f32 %v2007_v38, %v1148_v15 }
 0x4a5   : > { %v1727_v17 = vpop.f32.mrb[24].mxu1 }
 0x4a6   : > { %v1158_v24 = vpop.f32.mrb[25].mxu1  ;;  %v1371_v40 = vsub.f32 %v2017_v47, %v1727_v17 }
 0x4a7   : > { %v1370_v38 = vsub.f32 %v2015_v44, %v1158_v24 }
 0x4a9   : > { %v1730_v25 = vpop.f32.mrb[26].mxu1 }
 0x4aa   : > { %v1168_v26 = vpop.f32.mrb[27].mxu1  ;;  %v1373_v47 = vsub.f32 %v2025_v53, %v1730_v25 }
 0x4ab   : > { %v1372_v54 = vsub.f32 %v2023_v50, %v1168_v26 }
 0x4ad   : > { %v1733_v27 = vpop.f32.mrb[28].mxu1 }
 0x4ae   : > { %v1178_v28 = vpop.f32.mrb[29].mxu1  ;;  %v1375_v60 = vsub.f32 %v2033_v59, %v1733_v27 }
 0x4af   : > { %v1374_v33 = vsub.f32 %v2031_v56, %v1178_v28 }
 0x4b1   : > { %v1256_v29 = vpop.f32.mrb[30].mxu1 }
 0x4b2   : > { %v1738_v30 = vpop.f32.mrb[31].mxu1  ;;  %1739 = vmatprep.subr.msk.mxu1 %vm404_vm8, %v1256_v29 }
 0x4b3   : > { %1740 = vmatpush3.msk.msra.mxu1 %vm404_vm8, %v1256_v29  ;;  %vm2260_vm8 = vcmask 195584  }
 0x4b4   : > { %1742 = vmatmul.mubr.msk.f32.vlgmr.msra.gmra.mrb[32].mxu1 %vm1054_vm15, %v1521_v5  ;;  %vm2261_vm12 = vmmov %vm2260_vm8 }
 0x4b5   : > { %1744 = vmatprep.mubr.msk.f32.mxu1 %vm1054_vm15, %v1522_v13  ;;  %vm2262_vm13 = vmmov %vm2260_vm8 }
 0x4b6   : > { %vm2263_vm6 = vmmov %vm2260_vm8 }
 0x4b7   : > { %vm2265_vm3 = vmmov %vm2263_vm6 }
 0x4b8   : > { %1745 = vmatmul.mubr.msk.f32.gmra.mrb[34].mxu1 %vm1054_vm15, %v1523_v16  ;;  %vm2266_vm9 = vmmov %vm2265_vm3 }
 0x4b9   : > { %1747 = vmatprep.mubr.msk.f32.mxu1 %vm1054_vm15, %v1524_v18  ;;  %vm2267_vm14 = vmmov %vm2265_vm3 }
 0x4bc   : > { %1748 = vmatmul.mubr.msk.f32.gmra.mrb[36].mxu1 %vm1054_vm15, %v1525_v19 }
 0x4bd   : > { %1750 = vmatprep.mubr.msk.f32.mxu1 %vm1054_vm15, %v1526_v20 }
 0x4c0   : > { %1751 = vmatmul.mubr.msk.f32.gmra.mrb[38].mxu1 %vm1054_vm15, %v1527_v21  ;;  %vm2264_vm15 = vmmov %vm2263_vm6 }
 0x587   : > { %v1743_v32 = vpop.f32.mrb[32].mxu1 }
 0x588   : > { %v1377_v35 = vmul.f32 %v1743_v32, %v1369_v62  ;;  %v1329_v36 = vpop.f32.mrb[33].mxu1 }
 0x589   : > { %v1376_v39 = vmul.f32 %v1368_v31, %v1329_v36 }
 0x58a   : > { %v1392_v42 = vmul.f32 %v1574_v34, %v1377_v35 }
 0x58b   : > { %v1391_v41 = vmul.f32 %v1574_v34, %v1376_v39  ;;  %v1746_v43 = vpop.f32.mrb[34].mxu1 }
 0x58c   : > { %v1407_v45 = vadd.f32 %v1575_v37, %v1392_v42  ;;  %v1379_v46 = vmul.f32 %v1746_v43, %v1371_v40  ;;  %v1339_v48 = vpop.f32.mrb[35].mxu1 }
 0x58d   : > { %v1406_v49 = vadd.f32 %v1575_v37, %v1391_v41  ;;  %v1378_v51 = vmul.f32 %v1370_v38, %v1339_v48 }
 0x58e   : > { %1415 = vst.msk [vmem:[%s2205_s14 + $0x8] sm:$0xff] %vm2260_vm8, %v1407_v45  ;;  %v1394_v52 = vmul.f32 %v1574_v34, %v1379_v46 }
 0x58f   : > { %1414 = vst.msk [vmem:[%s2205_s14] sm:$0xff] %vm2261_vm12, %v1406_v49  ;;  %v1393_v55 = vmul.f32 %v1574_v34, %v1378_v51  ;;  %v1749_v44 = vpop.f32.mrb[36].mxu1 }
 0x590   : > { %v1409_v6 = vadd.f32 %v1575_v37, %v1394_v52  ;;  %v1381_v9 = vmul.f32 %v1749_v44, %v1373_v47  ;;  %v1349_v10 = vpop.f32.mrb[37].mxu1 }
 0x591   : > { %v1408_v57 = vadd.f32 %v1575_v37, %v1393_v55  ;;  %v1380_v58 = vmul.f32 %v1372_v54, %v1349_v10 }
 0x592   : > { %1417 = vst.msk [vmem:[%s2205_s14 + $0x18] sm:$0xff] %vm2262_vm13, %v1409_v6  ;;  %v1396_v53 = vmul.f32 %v1574_v34, %v1381_v9 }
 0x593   : > { %1416 = vst.msk [vmem:[%s2205_s14 + $0x10] sm:$0xff] %vm2263_vm6, %v1408_v57  ;;  %v1395_v50 = vmul.f32 %v1574_v34, %v1380_v58  ;;  %v1752_v61 = vpop.f32.mrb[38].mxu1 }
 0x594   : > { %v1411_v63 = vadd.f32 %v1575_v37, %v1396_v53  ;;  %v1383_v0 = vmul.f32 %v1752_v61, %v1375_v60  ;;  %v1359_v1 = vpop.f32.mrb[39].mxu1 }
 0x595   : > { %v1410_v2 = vadd.f32 %v1575_v37, %v1395_v50  ;;  %v1382_v3 = vmul.f32 %v1374_v33, %v1359_v1 }
 0x596   : > { %1419 = vst.msk [vmem:[%s2205_s14 + $0x28] sm:$0xff] %vm2264_vm15, %v1411_v63  ;;  %v1398_v4 = vmul.f32 %v1574_v34, %v1383_v0 }
 0x597   : > { %1418 = vst.msk [vmem:[%s2205_s14 + $0x20] sm:$0xff] %vm2265_vm3, %v1410_v2  ;;  %v1397_v59 = vmul.f32 %v1574_v34, %v1382_v3 }
 0x598   : > { %v1413_v7 = vadd.f32 %v1575_v37, %v1398_v4 }
 0x599   : > { %v1412_v8 = vadd.f32 %v1575_v37, %v1397_v59 }
 0x59a   : > { %1421 = vst.msk [vmem:[%s2205_s14 + $0x38] sm:$0xff] %vm2266_vm9, %v1413_v7 }
 0x59b   : > { %1420 = vst.msk [vmem:[%s2205_s14 + $0x30] sm:$0xff] %vm2267_vm14, %v1412_v8 }
 0x59c PF: > { %s15_s18 = sadd.s32 1, %s1833_s18  }
 0x59d   : > { %p12_p4 = scmp.ge.s32.totalorder %s15_s18, 4  }
 0x59f   :  { %14 = sbr.rel (!%p12_p4) target bundleno = 1 (0x1), region = 70 }

</bundles_post_ra>
